<compile_context>
chip_gen: v7x
topology: tpu7x:2x2x1
jax: 0.10.0
libtpu: 0.0.40
codegen_flags: <defaults>
</compile_context>

<pallas_src>
import functools
import math

import jax
import jax.numpy as jnp
from jax.experimental import pallas as pl
from jax.experimental.pallas import tpu as pltpu


def _round_up(x, m):
    return ((x + m - 1) // m) * m


def _pick_tile_and_pad(n):
    """Pick (row_tile, padded_rows).

    Tile is a multiple of 128; aims for >= 2 grid steps (so the 'parallel'
    axis keeps both v7x TensorCores busy) whenever padding allows, capped at
    512 rows (measured ~85% of HBM roofline; bigger tiles give little more).
    """
    n_min = _round_up(max(n, 1), 128)
    if n_min <= 128:
        tile = 128                      # tiny input: single step
    elif n_min <= 1024:
        tile = _round_up(n_min // 2, 128)   # exactly 2 steps
    else:
        tile = 512
    return tile, _round_up(n_min, tile)


# ----------------------------------------------------------------------------
# Fused MLP Pallas kernel
#   h0 = act( concat(x_0..x_{k-1}) @ W0 + b0 )     (single K=sum_d matmul)
#   h1 = act( h0 @ W1 + b1 )
#   y  = h1 @ W2 + b2
#   [ y = LayerNorm(y) ]    [ y = y + residual ]
# Matmul inputs in bf16, f32 accumulation; LN/tanh in f32; store in o_ref dtype.
# ----------------------------------------------------------------------------
def _mlp_kernel(*refs, act, use_ln, n_in, has_res):
    idx = 0
    x_refs = refs[idx:idx + n_in]; idx += n_in
    w0 = refs[idx]; idx += 1
    b0 = refs[idx]; idx += 1
    w1 = refs[idx]; idx += 1
    b1 = refs[idx]; idx += 1
    w2 = refs[idx]; idx += 1
    b2 = refs[idx]; idx += 1
    if use_ln:
        g = refs[idx]; be = refs[idx + 1]; idx += 2
    res = refs[idx] if has_res else None
    o_ref = refs[-1]

    def _act(v):
        return jnp.tanh(v) if act == "tanh" else jnp.maximum(v, 0.0)

    # first layer: concat the (already-in-VMEM) operands along the lane axis
    # and do one K = sum(in_dims) matmul (no per-operand f32 add chain).
    if n_in == 1:
        xc = x_refs[0][...].astype(jnp.bfloat16)
    else:
        xc = jnp.concatenate([r[...].astype(jnp.bfloat16) for r in x_refs],
                             axis=-1)
    h = _act(jnp.dot(xc, w0[...], preferred_element_type=jnp.float32)
             + b0[...])

    h = _act(jnp.dot(h.astype(jnp.bfloat16), w1[...],
                     preferred_element_type=jnp.float32) + b1[...])

    y = jnp.dot(h.astype(jnp.bfloat16), w2[...],
                preferred_element_type=jnp.float32) + b2[...]

    if use_ln:  # torch.nn.LayerNorm(out_dim), eps=1e-5
        mu = jnp.mean(y, axis=-1, keepdims=True)
        var = jnp.mean((y - mu) ** 2, axis=-1, keepdims=True)
        y = (y - mu) * jax.lax.rsqrt(var + 1e-5) * g[...] + be[...]

    if has_res:
        y = y + res[...].astype(jnp.float32)

    o_ref[...] = y.astype(o_ref.dtype)


def fused_mlp(params, inputs, *, act, use_ln, residual=None,
              out_dtype=jnp.bfloat16, tile_n=128):
    """Fused MLP over the rows of `inputs` (a list of [n, d_k] operands that
    conceptually are concatenated along the feature axis).

    Inputs (and the optional residual) must already be padded so that
    n % tile_n == 0 — padding happens once, outside, before the MP loop.
    """
    if not isinstance(inputs, (list, tuple)):
        inputs = [inputs]
    inputs = list(inputs)
    n = inputs[0].shape[0]
    n_in = len(inputs)
    hid = params["w1"].shape[0]
    out_pad = params["w2"].shape[1]          # lane-dense (>=128) padded width
    has_res = residual is not None
    assert n % tile_n == 0, "inputs must be pre-padded to a tile multiple"

    args = list(inputs) + [params["w0"], params["b0"], params["w1"],
                           params["b1"], params["w2"], params["b2"]]

    in_specs = [pl.BlockSpec((tile_n, a.shape[1]), lambda i: (i, 0))
                for a in inputs]
    # Grid-invariant weight/bias blocks.  They are small (~hid*hid bf16), so
    # default double-buffering costs only ~100-200 KiB of VMEM; we skip the
    # pl.Buffered(1) single-buffering micro-opt to keep lowering simple.
    in_specs += [
        pl.BlockSpec(params["w0"].shape, lambda i: (0, 0)),
        pl.BlockSpec((1, hid), lambda i: (0, 0)),
        pl.BlockSpec((hid, hid), lambda i: (0, 0)),
        pl.BlockSpec((1, hid), lambda i: (0, 0)),
        pl.BlockSpec((hid, out_pad), lambda i: (0, 0)),
        pl.BlockSpec((1, out_pad), lambda i: (0, 0)),
    ]
    if use_ln:
        args += [params["gamma"], params["beta"]]
        in_specs += [pl.BlockSpec((1, out_pad), lambda i: (0, 0)),
                     pl.BlockSpec((1, out_pad), lambda i: (0, 0))]
    if has_res:
        args.append(residual)
        in_specs.append(pl.BlockSpec((tile_n, out_pad), lambda i: (i, 0)))

    return pl.pallas_call(
        functools.partial(_mlp_kernel, act=act, use_ln=use_ln,
                          n_in=n_in, has_res=has_res),
        out_shape=jax.ShapeDtypeStruct((n, out_pad), out_dtype),
        grid=(n // tile_n,),
        in_specs=in_specs,
        out_specs=pl.BlockSpec((tile_n, out_pad), lambda i: (i, 0)),
        compiler_params=pltpu.CompilerParams(
            dimension_semantics=("parallel",),
            vmem_limit_bytes=32 * 1024 * 1024),   # safe on v7x's 64 MiB VMEM
    )(*args)


# ----------------------------------------------------------------------------
# Parameter init (deterministic, torch.nn.Linear-style uniform init).
# Weights in bf16 (MXU-native); biases / LN params in f32.
# out_dim<128 final layers are zero-padded to 128 lanes for dense stores.
# Dead decoders (node_decoder_x / node_decoder_r) are not initialized.
# ----------------------------------------------------------------------------
def _init_linear(key, fi, fo):
    kw, kb = jax.random.split(key)
    bound = 1.0 / math.sqrt(fi)
    w = jax.random.uniform(kw, (fi, fo), jnp.float32, -bound, bound)
    b = jax.random.uniform(kb, (1, fo), jnp.float32, -bound, bound)
    return w, b


def _init_mlp(key, in_dims, out_dim, hidden, use_ln):
    in_total = sum(in_dims)
    k0, k1, k2 = jax.random.split(key, 3)
    w0, b0 = _init_linear(k0, in_total, hidden)
    w1, b1 = _init_linear(k1, hidden, hidden)
    w2, b2 = _init_linear(k2, hidden, out_dim)

    out_pad = _round_up(max(out_dim, 128), 128)   # lane-dense output width
    if out_pad != out_dim:
        w2 = jnp.pad(w2, ((0, 0), (0, out_pad - out_dim)))
        b2 = jnp.pad(b2, ((0, 0), (0, out_pad - out_dim)))

    p = dict(w0=w0.astype(jnp.bfloat16), b0=b0,
             w1=w1.astype(jnp.bfloat16), b1=b1,
             w2=w2.astype(jnp.bfloat16), b2=b2)
    if use_ln:
        assert out_pad == out_dim, "LayerNorm MLPs must have lane-dense out_dim"
        p["gamma"] = jnp.ones((1, out_dim), jnp.float32)
        p["beta"] = jnp.zeros((1, out_dim), jnp.float32)
    return p


def init_net_params(key, in_dim_node, in_dim_edge, out_dim,
                    num_iterations, hidden=128):
    del out_dim  # node_decoder_x is dead (use_pred_x=False) and skipped
    keys = jax.random.split(key, 3 + 2 * num_iterations)
    it = iter(keys)
    params = {
        "node_encoder": _init_mlp(next(it), [in_dim_node], hidden, hidden, True),
        "edge_encoder": _init_mlp(next(it), [in_dim_edge], hidden, hidden, True),
        "mp_layers": [],
        "edge_decoder_L": _init_mlp(next(it), [hidden], 1, hidden, False),
    }
    for _ in range(num_iterations):
        params["mp_layers"].append({
            # edge MLP consumes [x_src, x_dst, e]  -> K = 3*hidden
            "edge_mlp": _init_mlp(next(it), [hidden, hidden, hidden],
                                  hidden, hidden, True),
            # node MLP consumes [x, agg]           -> K = 2*hidden
            "node_mlp": _init_mlp(next(it), [hidden, hidden],
                                  hidden, hidden, True),
        })
    return params


# ----------------------------------------------------------------------------
# Graph glue (plain JAX: data-dependent gather / scatter)
# ----------------------------------------------------------------------------
def mp_scatter(x, L, edge_index, num_nodes):
    """postprocess MP: out[target] += L_e * x[source] (source_to_target, sum)."""
    src, dst = edge_index[0], edge_index[1]
    msg = L * jnp.take(x, src, axis=0)
    return jax.ops.segment_sum(msg, dst, num_segments=num_nodes)


# ----------------------------------------------------------------------------
# Net.forward  (include_r=False, use_global=False, use_pred_x=False, pde='syn')
# ----------------------------------------------------------------------------
def net_forward(params, node_attr, edge_attr, edge_index, input_r, input_x,
                dirichlet_idx=3):
    num_nodes = node_attr.shape[0]
    num_edges = edge_index.shape[1]

    # Row tiles / padded extents chosen once; everything dense stays padded
    # (and in bf16) for the whole processor loop — no per-call pad/slice.
    node_tile, n_pad = _pick_tile_and_pad(num_nodes)
    edge_tile, e_pad = _pick_tile_and_pad(num_edges)

    node_attr_p = jnp.pad(node_attr, ((0, n_pad - num_nodes), (0, 0)))
    edge_attr_p = jnp.pad(edge_attr, ((0, e_pad - num_edges), (0, 0)))

    # encoders (Pallas, bf16 activations).  NOTE: edge features are encoded
    # BEFORE the sort and, like the reference, NOT re-permuted by the sort.
    x = fused_mlp(params["node_encoder"], node_attr_p,
                  act="tanh", use_ln=True, tile_n=node_tile)
    edge_feat = fused_mlp(params["edge_encoder"], edge_attr_p,
                          act="tanh", use_ln=True, tile_n=edge_tile)

    dirichlet_mask = node_attr[:, dirichlet_idx].astype(bool)

    # sort_edge_index (row-major order) permutes edge_index / edge_attr only.
    order = jnp.argsort(edge_index[0] * num_nodes + edge_index[1])
    edge_index = edge_index[:, order]
    edge_attr = edge_attr[order]
    src, dst = edge_index[0], edge_index[1]
    # NOTE: zero_mask is computed in the reference forward but never used.

    # Padded gather/scatter indices (built once, reused every iteration).
    # Gather pads point at row 0 (always valid); scatter pads point at n_pad
    # which is out-of-range for segment_sum and therefore dropped.
    src_g = jnp.pad(src, (0, e_pad - num_edges))
    dst_g = jnp.pad(dst, (0, e_pad - num_edges))
    dst_s = jnp.pad(dst, (0, e_pad - num_edges), constant_values=n_pad)

    # processor (Pallas MLPs inside each MeshMP layer, bf16 activations)
    for lp in params["mp_layers"]:
        # TODO(synk): fuse the endpoint gathers into the edge-MLP kernel
        # (scalar-prefetched indices + in-kernel DMA gather) to avoid two
        # (E,128) activation round-trips per iteration.
        x_src = jnp.take(x, src_g, axis=0)
        x_dst = jnp.take(x, dst_g, axis=0)
        e_upd = fused_mlp(lp["edge_mlp"], [x_src, x_dst, edge_feat],
                          act="tanh", use_ln=True, residual=edge_feat,
                          tile_n=edge_tile)
        # TODO(synk): dst-sort edges once and fuse this segment reduction into
        # the edge-MLP epilogue via PrefetchScalarGridSpec segment offsets.
        agg = jax.ops.segment_sum(e_upd, dst_s, num_segments=n_pad)
        x = fused_mlp(lp["node_mlp"], [x, agg],
                      act="tanh", use_ln=True, residual=x, tile_n=node_tile)
        edge_feat = e_upd

    # decoders (Pallas).  node_decoder_x / node_decoder_r are dead under
    # use_pred_x=False / include_r=False and are skipped entirely.
    decoded_L = fused_mlp(params["edge_decoder_L"], edge_feat,
                          act="tanh", use_ln=False, out_dtype=jnp.float32,
                          tile_n=edge_tile)[:num_edges, :1]   # fused in-jit slice
    decoded_r = jnp.zeros_like(input_r)          # include_r=False branch
    del decoded_r                                # (not returned by reference)

    diag_mask = (src == dst)

    # pde == 'syn': diag_ele = edge_attr[:, -1][src == dst] (one self-loop/node)
    diag_ele = jax.ops.segment_sum(
        jnp.where(diag_mask, edge_attr[:, -1], 0.0), src,
        num_segments=num_nodes).reshape(-1, 1)

    # to_undirected(reduce='mean'): the input graph already holds both edge
    # directions and all self loops, so the coalesced result is the symmetric
    # average on the same (sorted) edge set.
    # TODO(synk): general coalescing for graphs missing reverse edges.
    keys = src * num_nodes + dst
    rev_keys = dst * num_nodes + src
    rev_pos = jnp.searchsorted(keys, rev_keys)
    decoded_L_mean = 0.5 * (decoded_L + decoded_L[rev_pos])
    mean_edge_index = edge_index

    decoded_L_mean = jnp.where((src < dst)[:, None], 0.0, decoded_L_mean)
    decoded_L_mean = jnp.where(diag_mask[:, None],
                               jnp.sqrt(edge_attr[:, -1:]), decoded_L_mean)
    decoded_edge_indices = mean_edge_index
    decoded_L = decoded_L_mean

    # use_pred_x=False
    decoded_x = input_x

    LTx = mp_scatter(decoded_x, decoded_L, decoded_edge_indices, num_nodes)
    trans_edge_index = decoded_edge_indices[jnp.array([1, 0])]
    LLTx = mp_scatter(LTx, decoded_L, trans_edge_index, num_nodes)

    b_pred = jnp.where(dirichlet_mask[:, None], input_x, LLTx)   # pde != 'wave'
    output_x = jnp.zeros_like(input_x)                           # use_pred_x=False
    reverse_factor = 1
    return b_pred, ((decoded_L, diag_ele, reverse_factor),
                    decoded_edge_indices), output_x


# ----------------------------------------------------------------------------
# Demo
# ----------------------------------------------------------------------------
if __name__ == "__main__":
    key = jax.random.PRNGKey(0)
    k_param, k_node, k_edge, k_x, k_r = jax.random.split(key, 5)

    N = 32                 # nodes
    in_dim_node = 6        # node attributes (column 3 = dirichlet flag)
    in_dim_edge = 3        # edge attributes
    out_dim = 1            # u_t dim
    num_iterations = 3     # MP iterations (module default 30; small for demo)

    # ring mesh: forward edges, backward edges, self loops (both directions
    # present + all self loops, as the to_undirected glue assumes), pre-sorted
    idx = jnp.arange(N, dtype=jnp.int32)
    fwd = jnp.stack([idx, (idx + 1) % N])
    bwd = jnp.stack([(idx + 1) % N, idx])
    self_loops = jnp.stack([idx, idx])
    edge_index = jnp.concatenate([fwd, bwd, self_loops], axis=1)  # (2, 96)
    order = jnp.argsort(edge_index[0] * N + edge_index[1])
    edge_index = edge_index[:, order]
    E = edge_index.shape[1]

    node_attr = jax.random.normal(k_node, (N, in_dim_node), jnp.float32)
    node_attr = node_attr.at[:, 3].set((idx % 5 == 0).astype(jnp.float32))
    edge_attr = jnp.abs(jax.random.normal(k_edge, (E, in_dim_edge),
                                          jnp.float32)) + 0.1
    input_x = jax.random.normal(k_x, (N, out_dim), jnp.float32)
    input_r = jax.random.normal(k_r, (N, 1), jnp.float32)

    params = init_net_params(k_param, in_dim_node, in_dim_edge, out_dim,
                             num_iterations, hidden=128)

    # jit the whole forward so the thin decoder slice and padding copies fuse.
    forward = jax.jit(net_forward, static_argnames=("dirichlet_idx",))

    b_pred, ((dec_L, diag_ele, rev_factor), dec_ei), output_x = forward(
        params, node_attr, edge_attr, edge_index, input_r, input_x)

    jax.block_until_ready((b_pred, dec_L, diag_ele, output_x))
    assert b_pred.shape == (N, out_dim)
    assert dec_L.shape == (E, 1)
    assert diag_ele.shape == (N, 1)
    assert bool(jnp.all(jnp.isfinite(b_pred)))
    assert bool(jnp.all(jnp.isfinite(dec_L)))
    print("KERNEL_OK")
</pallas_src>

<mosaic_0001>
module attributes {stable_mosaic.version = 11 : i64} {
  func.func private @main(%arg0: i32) attributes {dimension_semantics = [#tpu.dimension_semantics<core_parallel>], iteration_bounds = array<i64: 2>, tpu.core_type = #tpu.core_type<sc_scalar_subcore>, window_params = []} {
    return
  }
}

module attributes {stable_mosaic.version = 11 : i64} {
  func.func private @main(%arg0: i32) attributes {dimension_semantics = [#tpu.dimension_semantics<core_parallel>], iteration_bounds = array<i64: 2>, tpu.core_type = #tpu.core_type<sc_scalar_subcore>, window_params = []} {
    return
  }
}

module attributes {stable_mosaic.version = 11 : i64} {
  func.func @_mlp_kernel(%arg0: i32, %arg1: memref<128x6xf32, #tpu.memory_space<vmem>>, %arg2: memref<6x128xbf16, #tpu.memory_space<vmem>>, %arg3: memref<1x128xf32, #tpu.memory_space<vmem>>, %arg4: memref<128x128xbf16, #tpu.memory_space<vmem>>, %arg5: memref<1x128xf32, #tpu.memory_space<vmem>>, %arg6: memref<128x128xbf16, #tpu.memory_space<vmem>>, %arg7: memref<1x128xf32, #tpu.memory_space<vmem>>, %arg8: memref<1x128xf32, #tpu.memory_space<vmem>>, %arg9: memref<1x128xf32, #tpu.memory_space<vmem>>, %arg10: memref<128x128xbf16, #tpu.memory_space<vmem>>) attributes {dimension_semantics = [#tpu.dimension_semantics<parallel>], iteration_bounds = array<i64: 1>, scalar_prefetch = 0 : i64, scratch_operands = 0 : i64, tpu.core_type = #tpu.core_type<tc>, window_params = [{transform_indices = @transform_0, window_bounds = array<i64: 128, 6>}, {pipeline_mode = #tpu.pipeline_mode<synchronous>, transform_indices = @transform_1, window_bounds = array<i64: 6, 128>}, {pipeline_mode = #tpu.pipeline_mode<synchronous>, transform_indices = @transform_2, window_bounds = array<i64: 1, 128>}, {pipeline_mode = #tpu.pipeline_mode<synchronous>, transform_indices = @transform_3, window_bounds = array<i64: 128, 128>}, {pipeline_mode = #tpu.pipeline_mode<synchronous>, transform_indices = @transform_4, window_bounds = array<i64: 1, 128>}, {pipeline_mode = #tpu.pipeline_mode<synchronous>, transform_indices = @transform_5, window_bounds = array<i64: 128, 128>}, {pipeline_mode = #tpu.pipeline_mode<synchronous>, transform_indices = @transform_6, window_bounds = array<i64: 1, 128>}, {pipeline_mode = #tpu.pipeline_mode<synchronous>, transform_indices = @transform_7, window_bounds = array<i64: 1, 128>}, {pipeline_mode = #tpu.pipeline_mode<synchronous>, transform_indices = @transform_8, window_bounds = array<i64: 1, 128>}, {transform_indices = @transform_9, window_bounds = array<i64: 128, 128>}]} {
    %c0 = arith.constant 0 : index
    %c0_0 = arith.constant 0 : index
    %0 = vector.load %arg1[%c0, %c0_0] : memref<128x6xf32, #tpu.memory_space<vmem>>, vector<128x6xf32>
    %1 = arith.truncf %0 : vector<128x6xf32> to vector<128x6xbf16>
    %c0_1 = arith.constant 0 : index
    %c0_2 = arith.constant 0 : index
    %2 = vector.load %arg2[%c0_1, %c0_2] : memref<6x128xbf16, #tpu.memory_space<vmem>>, vector<6x128xbf16>
    %cst = arith.constant dense<0.000000e+00> : vector<128x128xf32>
    %3 = tpu.matmul %1, %2, %cst {dimension_numbers = #tpu.dot_dimension_numbers<[1], [0], [0], [1], [0, 0, 1, 1], [], []>} : vector<128x6xbf16>, vector<6x128xbf16>, vector<128x128xf32> -> vector<128x128xf32>
    %c0_3 = arith.constant 0 : index
    %c0_4 = arith.constant 0 : index
    %4 = vector.load %arg3[%c0_3, %c0_4] : memref<1x128xf32, #tpu.memory_space<vmem>>, vector<1x128xf32>
    %5 = vector.broadcast %4 : vector<1x128xf32> to vector<128x128xf32>
    %6 = arith.addf %3, %5 : vector<128x128xf32>
    %7 = math.tanh %6 : vector<128x128xf32>
    %8 = arith.truncf %7 : vector<128x128xf32> to vector<128x128xbf16>
    %c0_5 = arith.constant 0 : index
    %c0_6 = arith.constant 0 : index
    %9 = vector.load %arg4[%c0_5, %c0_6] : memref<128x128xbf16, #tpu.memory_space<vmem>>, vector<128x128xbf16>
    %cst_7 = arith.constant dense<0.000000e+00> : vector<128x128xf32>
    %10 = tpu.matmul %8, %9, %cst_7 {dimension_numbers = #tpu.dot_dimension_numbers<[1], [0], [0], [1], [0, 0, 1, 1], [], []>} : vector<128x128xbf16>, vector<128x128xbf16>, vector<128x128xf32> -> vector<128x128xf32>
    %c0_8 = arith.constant 0 : index
    %c0_9 = arith.constant 0 : index
    %11 = vector.load %arg5[%c0_8, %c0_9] : memref<1x128xf32, #tpu.memory_space<vmem>>, vector<1x128xf32>
    %12 = vector.broadcast %11 : vector<1x128xf32> to vector<128x128xf32>
    %13 = arith.addf %10, %12 : vector<128x128xf32>
    %14 = math.tanh %13 : vector<128x128xf32>
    %15 = arith.truncf %14 : vector<128x128xf32> to vector<128x128xbf16>
    %c0_10 = arith.constant 0 : index
    %c0_11 = arith.constant 0 : index
    %16 = vector.load %arg6[%c0_10, %c0_11] : memref<128x128xbf16, #tpu.memory_space<vmem>>, vector<128x128xbf16>
    %cst_12 = arith.constant dense<0.000000e+00> : vector<128x128xf32>
    %17 = tpu.matmul %15, %16, %cst_12 {dimension_numbers = #tpu.dot_dimension_numbers<[1], [0], [0], [1], [0, 0, 1, 1], [], []>} : vector<128x128xbf16>, vector<128x128xbf16>, vector<128x128xf32> -> vector<128x128xf32>
    %c0_13 = arith.constant 0 : index
    %c0_14 = arith.constant 0 : index
    %18 = vector.load %arg7[%c0_13, %c0_14] : memref<1x128xf32, #tpu.memory_space<vmem>>, vector<1x128xf32>
    %19 = vector.broadcast %18 : vector<1x128xf32> to vector<128x128xf32>
    %20 = arith.addf %17, %19 : vector<128x128xf32>
    %cst_15 = arith.constant dense<0.000000e+00> : vector<128xf32>
    %21 = vector.multi_reduction <add>, %20, %cst_15 [1] : vector<128x128xf32> to vector<128xf32>
    %22 = vector.shape_cast %21 : vector<128xf32> to vector<128x1xf32>
    %cst_16 = arith.constant 1.280000e+02 : f32
    %23 = vector.broadcast %cst_16 : f32 to vector<128x1xf32>
    %24 = arith.divf %22, %23 : vector<128x1xf32>
    %25 = vector.broadcast %24 : vector<128x1xf32> to vector<128x128xf32>
    %26 = arith.subf %20, %25 : vector<128x128xf32>
    %27 = arith.mulf %26, %26 : vector<128x128xf32>
    %cst_17 = arith.constant dense<0.000000e+00> : vector<128xf32>
    %28 = vector.multi_reduction <add>, %27, %cst_17 [1] : vector<128x128xf32> to vector<128xf32>
    %29 = vector.shape_cast %28 : vector<128xf32> to vector<128x1xf32>
    %cst_18 = arith.constant 1.280000e+02 : f32
    %30 = vector.broadcast %cst_18 : f32 to vector<128x1xf32>
    %31 = arith.divf %29, %30 : vector<128x1xf32>
    %32 = vector.broadcast %24 : vector<128x1xf32> to vector<128x128xf32>
    %33 = arith.subf %20, %32 : vector<128x128xf32>
    %cst_19 = arith.constant 9.99999974E-6 : f32
    %34 = vector.broadcast %cst_19 : f32 to vector<128x1xf32>
    %35 = arith.addf %31, %34 : vector<128x1xf32>
    %36 = math.rsqrt %35 : vector<128x1xf32>
    %37 = vector.broadcast %36 : vector<128x1xf32> to vector<128x128xf32>
    %38 = arith.mulf %33, %37 : vector<128x128xf32>
    %c0_20 = arith.constant 0 : index
    %c0_21 = arith.constant 0 : index
    %39 = vector.load %arg8[%c0_20, %c0_21] : memref<1x128xf32, #tpu.memory_space<vmem>>, vector<1x128xf32>
    %40 = vector.broadcast %39 : vector<1x128xf32> to vector<128x128xf32>
    %41 = arith.mulf %38, %40 : vector<128x128xf32>
    %c0_22 = arith.constant 0 : index
    %c0_23 = arith.constant 0 : index
    %42 = vector.load %arg9[%c0_22, %c0_23] : memref<1x128xf32, #tpu.memory_space<vmem>>, vector<1x128xf32>
    %43 = vector.broadcast %42 : vector<1x128xf32> to vector<128x128xf32>
    %44 = arith.addf %41, %43 : vector<128x128xf32>
    %45 = arith.truncf %44 : vector<128x128xf32> to vector<128x128xbf16>
    %c0_24 = arith.constant 0 : index
    %c0_25 = arith.constant 0 : index
    %46 = vector.load %arg10[%c0_24, %c0_25] : memref<128x128xbf16, #tpu.memory_space<vmem>>, vector<128x128xbf16>
    tpu.vector_store %arg10[%c0_24, %c0_25], %45 {strides = array<i32>} : memref<128x128xbf16, #tpu.memory_space<vmem>>, vector<128x128xbf16>,
    return
  }
  func.func @transform_0(%arg0: i32) -> (i32, i32) {
    %c0_i32 = arith.constant 0 : i32
    %c0_i32_0 = arith.constant 0 : i32
    return %arg0, %c0_i32 : i32, i32
  }
  func.func @transform_1(%arg0: i32) -> (i32, i32) {
    %c0_i32 = arith.constant 0 : i32
    %c0_i32_0 = arith.constant 0 : i32
    %c0_i32_1 = arith.constant 0 : i32
    return %c0_i32, %c0_i32_0 : i32, i32
  }
  func.func @transform_2(%arg0: i32) -> (i32, i32) {
    %c0_i32 = arith.constant 0 : i32
    %c0_i32_0 = arith.constant 0 : i32
    %c0_i32_1 = arith.constant 0 : i32
    return %c0_i32, %c0_i32_0 : i32, i32
  }
  func.func @transform_3(%arg0: i32) -> (i32, i32) {
    %c0_i32 = arith.constant 0 : i32
    %c0_i32_0 = arith.constant 0 : i32
    %c0_i32_1 = arith.constant 0 : i32
    return %c0_i32, %c0_i32_0 : i32, i32
  }
  func.func @transform_4(%arg0: i32) -> (i32, i32) {
    %c0_i32 = arith.constant 0 : i32
    %c0_i32_0 = arith.constant 0 : i32
    %c0_i32_1 = arith.constant 0 : i32
    return %c0_i32, %c0_i32_0 : i32, i32
  }
  func.func @transform_5(%arg0: i32) -> (i32, i32) {
    %c0_i32 = arith.constant 0 : i32
    %c0_i32_0 = arith.constant 0 : i32
    %c0_i32_1 = arith.constant 0 : i32
    return %c0_i32, %c0_i32_0 : i32, i32
  }
  func.func @transform_6(%arg0: i32) -> (i32, i32) {
    %c0_i32 = arith.constant 0 : i32
    %c0_i32_0 = arith.constant 0 : i32
    %c0_i32_1 = arith.constant 0 : i32
    return %c0_i32, %c0_i32_0 : i32, i32
  }
  func.func @transform_7(%arg0: i32) -> (i32, i32) {
    %c0_i32 = arith.constant 0 : i32
    %c0_i32_0 = arith.constant 0 : i32
    %c0_i32_1 = arith.constant 0 : i32
    return %c0_i32, %c0_i32_0 : i32, i32
  }
  func.func @transform_8(%arg0: i32) -> (i32, i32) {
    %c0_i32 = arith.constant 0 : i32
    %c0_i32_0 = arith.constant 0 : i32
    %c0_i32_1 = arith.constant 0 : i32
    return %c0_i32, %c0_i32_0 : i32, i32
  }
  func.func @transform_9(%arg0: i32) -> (i32, i32) {
    %c0_i32 = arith.constant 0 : i32
    %c0_i32_0 = arith.constant 0 : i32
    return %arg0, %c0_i32 : i32, i32
  }
}

module attributes {stable_mosaic.version = 11 : i64} {
  func.func @_mlp_kernel(%arg0: i32, %arg1: memref<128x3xf32, #tpu.memory_space<vmem>>, %arg2: memref<3x128xbf16, #tpu.memory_space<vmem>>, %arg3: memref<1x128xf32, #tpu.memory_space<vmem>>, %arg4: memref<128x128xbf16, #tpu.memory_space<vmem>>, %arg5: memref<1x128xf32, #tpu.memory_space<vmem>>, %arg6: memref<128x128xbf16, #tpu.memory_space<vmem>>, %arg7: memref<1x128xf32, #tpu.memory_space<vmem>>, %arg8: memref<1x128xf32, #tpu.memory_space<vmem>>, %arg9: memref<1x128xf32, #tpu.memory_space<vmem>>, %arg10: memref<128x128xbf16, #tpu.memory_space<vmem>>) attributes {dimension_semantics = [#tpu.dimension_semantics<parallel>], iteration_bounds = array<i64: 1>, scalar_prefetch = 0 : i64, scratch_operands = 0 : i64, tpu.core_type = #tpu.core_type<tc>, window_params = [{transform_indices = @transform_0, window_bounds = array<i64: 128, 3>}, {pipeline_mode = #tpu.pipeline_mode<synchronous>, transform_indices = @transform_1, window_bounds = array<i64: 3, 128>}, {pipeline_mode = #tpu.pipeline_mode<synchronous>, transform_indices = @transform_2, window_bounds = array<i64: 1, 128>}, {pipeline_mode = #tpu.pipeline_mode<synchronous>, transform_indices = @transform_3, window_bounds = array<i64: 128, 128>}, {pipeline_mode = #tpu.pipeline_mode<synchronous>, transform_indices = @transform_4, window_bounds = array<i64: 1, 128>}, {pipeline_mode = #tpu.pipeline_mode<synchronous>, transform_indices = @transform_5, window_bounds = array<i64: 128, 128>}, {pipeline_mode = #tpu.pipeline_mode<synchronous>, transform_indices = @transform_6, window_bounds = array<i64: 1, 128>}, {pipeline_mode = #tpu.pipeline_mode<synchronous>, transform_indices = @transform_7, window_bounds = array<i64: 1, 128>}, {pipeline_mode = #tpu.pipeline_mode<synchronous>, transform_indices = @transform_8, window_bounds = array<i64: 1, 128>}, {transform_indices = @transform_9, window_bounds = array<i64: 128, 128>}]} {
    %c0 = arith.constant 0 : index
    %c0_0 = arith.constant 0 : index
    %0 = vector.load %arg1[%c0, %c0_0] : memref<128x3xf32, #tpu.memory_space<vmem>>, vector<128x3xf32>
    %1 = arith.truncf %0 : vector<128x3xf32> to vector<128x3xbf16>
    %c0_1 = arith.constant 0 : index
    %c0_2 = arith.constant 0 : index
    %2 = vector.load %arg2[%c0_1, %c0_2] : memref<3x128xbf16, #tpu.memory_space<vmem>>, vector<3x128xbf16>
    %cst = arith.constant dense<0.000000e+00> : vector<128x128xf32>
    %3 = tpu.matmul %1, %2, %cst {dimension_numbers = #tpu.dot_dimension_numbers<[1], [0], [0], [1], [0, 0, 1, 1], [], []>} : vector<128x3xbf16>, vector<3x128xbf16>, vector<128x128xf32> -> vector<128x128xf32>
    %c0_3 = arith.constant 0 : index
    %c0_4 = arith.constant 0 : index
    %4 = vector.load %arg3[%c0_3, %c0_4] : memref<1x128xf32, #tpu.memory_space<vmem>>, vector<1x128xf32>
    %5 = vector.broadcast %4 : vector<1x128xf32> to vector<128x128xf32>
    %6 = arith.addf %3, %5 : vector<128x128xf32>
    %7 = math.tanh %6 : vector<128x128xf32>
    %8 = arith.truncf %7 : vector<128x128xf32> to vector<128x128xbf16>
    %c0_5 = arith.constant 0 : index
    %c0_6 = arith.constant 0 : index
    %9 = vector.load %arg4[%c0_5, %c0_6] : memref<128x128xbf16, #tpu.memory_space<vmem>>, vector<128x128xbf16>
    %cst_7 = arith.constant dense<0.000000e+00> : vector<128x128xf32>
    %10 = tpu.matmul %8, %9, %cst_7 {dimension_numbers = #tpu.dot_dimension_numbers<[1], [0], [0], [1], [0, 0, 1, 1], [], []>} : vector<128x128xbf16>, vector<128x128xbf16>, vector<128x128xf32> -> vector<128x128xf32>
    %c0_8 = arith.constant 0 : index
    %c0_9 = arith.constant 0 : index
    %11 = vector.load %arg5[%c0_8, %c0_9] : memref<1x128xf32, #tpu.memory_space<vmem>>, vector<1x128xf32>
    %12 = vector.broadcast %11 : vector<1x128xf32> to vector<128x128xf32>
    %13 = arith.addf %10, %12 : vector<128x128xf32>
    %14 = math.tanh %13 : vector<128x128xf32>
    %15 = arith.truncf %14 : vector<128x128xf32> to vector<128x128xbf16>
    %c0_10 = arith.constant 0 : index
    %c0_11 = arith.constant 0 : index
    %16 = vector.load %arg6[%c0_10, %c0_11] : memref<128x128xbf16, #tpu.memory_space<vmem>>, vector<128x128xbf16>
    %cst_12 = arith.constant dense<0.000000e+00> : vector<128x128xf32>
    %17 = tpu.matmul %15, %16, %cst_12 {dimension_numbers = #tpu.dot_dimension_numbers<[1], [0], [0], [1], [0, 0, 1, 1], [], []>} : vector<128x128xbf16>, vector<128x128xbf16>, vector<128x128xf32> -> vector<128x128xf32>
    %c0_13 = arith.constant 0 : index
    %c0_14 = arith.constant 0 : index
    %18 = vector.load %arg7[%c0_13, %c0_14] : memref<1x128xf32, #tpu.memory_space<vmem>>, vector<1x128xf32>
    %19 = vector.broadcast %18 : vector<1x128xf32> to vector<128x128xf32>
    %20 = arith.addf %17, %19 : vector<128x128xf32>
    %cst_15 = arith.constant dense<0.000000e+00> : vector<128xf32>
    %21 = vector.multi_reduction <add>, %20, %cst_15 [1] : vector<128x128xf32> to vector<128xf32>
    %22 = vector.shape_cast %21 : vector<128xf32> to vector<128x1xf32>
    %cst_16 = arith.constant 1.280000e+02 : f32
    %23 = vector.broadcast %cst_16 : f32 to vector<128x1xf32>
    %24 = arith.divf %22, %23 : vector<128x1xf32>
    %25 = vector.broadcast %24 : vector<128x1xf32> to vector<128x128xf32>
    %26 = arith.subf %20, %25 : vector<128x128xf32>
    %27 = arith.mulf %26, %26 : vector<128x128xf32>
    %cst_17 = arith.constant dense<0.000000e+00> : vector<128xf32>
    %28 = vector.multi_reduction <add>, %27, %cst_17 [1] : vector<128x128xf32> to vector<128xf32>
    %29 = vector.shape_cast %28 : vector<128xf32> to vector<128x1xf32>
    %cst_18 = arith.constant 1.280000e+02 : f32
    %30 = vector.broadcast %cst_18 : f32 to vector<128x1xf32>
    %31 = arith.divf %29, %30 : vector<128x1xf32>
    %32 = vector.broadcast %24 : vector<128x1xf32> to vector<128x128xf32>
    %33 = arith.subf %20, %32 : vector<128x128xf32>
    %cst_19 = arith.constant 9.99999974E-6 : f32
    %34 = vector.broadcast %cst_19 : f32 to vector<128x1xf32>
    %35 = arith.addf %31, %34 : vector<128x1xf32>
    %36 = math.rsqrt %35 : vector<128x1xf32>
    %37 = vector.broadcast %36 : vector<128x1xf32> to vector<128x128xf32>
    %38 = arith.mulf %33, %37 : vector<128x128xf32>
    %c0_20 = arith.constant 0 : index
    %c0_21 = arith.constant 0 : index
    %39 = vector.load %arg8[%c0_20, %c0_21] : memref<1x128xf32, #tpu.memory_space<vmem>>, vector<1x128xf32>
    %40 = vector.broadcast %39 : vector<1x128xf32> to vector<128x128xf32>
    %41 = arith.mulf %38, %40 : vector<128x128xf32>
    %c0_22 = arith.constant 0 : index
    %c0_23 = arith.constant 0 : index
    %42 = vector.load %arg9[%c0_22, %c0_23] : memref<1x128xf32, #tpu.memory_space<vmem>>, vector<1x128xf32>
    %43 = vector.broadcast %42 : vector<1x128xf32> to vector<128x128xf32>
    %44 = arith.addf %41, %43 : vector<128x128xf32>
    %45 = arith.truncf %44 : vector<128x128xf32> to vector<128x128xbf16>
    %c0_24 = arith.constant 0 : index
    %c0_25 = arith.constant 0 : index
    %46 = vector.load %arg10[%c0_24, %c0_25] : memref<128x128xbf16, #tpu.memory_space<vmem>>, vector<128x128xbf16>
    tpu.vector_store %arg10[%c0_24, %c0_25], %45 {strides = array<i32>} : memref<128x128xbf16, #tpu.memory_space<vmem>>, vector<128x128xbf16>,
    return
  }
  func.func @transform_0(%arg0: i32) -> (i32, i32) {
    %c0_i32 = arith.constant 0 : i32
    %c0_i32_0 = arith.constant 0 : i32
    return %arg0, %c0_i32 : i32, i32
  }
  func.func @transform_1(%arg0: i32) -> (i32, i32) {
    %c0_i32 = arith.constant 0 : i32
    %c0_i32_0 = arith.constant 0 : i32
    %c0_i32_1 = arith.constant 0 : i32
    return %c0_i32, %c0_i32_0 : i32, i32
  }
  func.func @transform_2(%arg0: i32) -> (i32, i32) {
    %c0_i32 = arith.constant 0 : i32
    %c0_i32_0 = arith.constant 0 : i32
    %c0_i32_1 = arith.constant 0 : i32
    return %c0_i32, %c0_i32_0 : i32, i32
  }
  func.func @transform_3(%arg0: i32) -> (i32, i32) {
    %c0_i32 = arith.constant 0 : i32
    %c0_i32_0 = arith.constant 0 : i32
    %c0_i32_1 = arith.constant 0 : i32
    return %c0_i32, %c0_i32_0 : i32, i32
  }
  func.func @transform_4(%arg0: i32) -> (i32, i32) {
    %c0_i32 = arith.constant 0 : i32
    %c0_i32_0 = arith.constant 0 : i32
    %c0_i32_1 = arith.constant 0 : i32
    return %c0_i32, %c0_i32_0 : i32, i32
  }
  func.func @transform_5(%arg0: i32) -> (i32, i32) {
    %c0_i32 = arith.constant 0 : i32
    %c0_i32_0 = arith.constant 0 : i32
    %c0_i32_1 = arith.constant 0 : i32
    return %c0_i32, %c0_i32_0 : i32, i32
  }
  func.func @transform_6(%arg0: i32) -> (i32, i32) {
    %c0_i32 = arith.constant 0 : i32
    %c0_i32_0 = arith.constant 0 : i32
    %c0_i32_1 = arith.constant 0 : i32
    return %c0_i32, %c0_i32_0 : i32, i32
  }
  func.func @transform_7(%arg0: i32) -> (i32, i32) {
    %c0_i32 = arith.constant 0 : i32
    %c0_i32_0 = arith.constant 0 : i32
    %c0_i32_1 = arith.constant 0 : i32
    return %c0_i32, %c0_i32_0 : i32, i32
  }
  func.func @transform_8(%arg0: i32) -> (i32, i32) {
    %c0_i32 = arith.constant 0 : i32
    %c0_i32_0 = arith.constant 0 : i32
    %c0_i32_1 = arith.constant 0 : i32
    return %c0_i32, %c0_i32_0 : i32, i32
  }
  func.func @transform_9(%arg0: i32) -> (i32, i32) {
    %c0_i32 = arith.constant 0 : i32
    %c0_i32_0 = arith.constant 0 : i32
    return %arg0, %c0_i32 : i32, i32
  }
}

module attributes {stable_mosaic.version = 11 : i64} {
  func.func @_mlp_kernel(%arg0: i32, %arg1: memref<128x128xbf16, #tpu.memory_space<vmem>>, %arg2: memref<128x128xbf16, #tpu.memory_space<vmem>>, %arg3: memref<128x128xbf16, #tpu.memory_space<vmem>>, %arg4: memref<384x128xbf16, #tpu.memory_space<vmem>>, %arg5: memref<1x128xf32, #tpu.memory_space<vmem>>, %arg6: memref<128x128xbf16, #tpu.memory_space<vmem>>, %arg7: memref<1x128xf32, #tpu.memory_space<vmem>>, %arg8: memref<128x128xbf16, #tpu.memory_space<vmem>>, %arg9: memref<1x128xf32, #tpu.memory_space<vmem>>, %arg10: memref<1x128xf32, #tpu.memory_space<vmem>>, %arg11: memref<1x128xf32, #tpu.memory_space<vmem>>, %arg12: memref<128x128xbf16, #tpu.memory_space<vmem>>, %arg13: memref<128x128xbf16, #tpu.memory_space<vmem>>) attributes {dimension_semantics = [#tpu.dimension_semantics<parallel>], iteration_bounds = array<i64: 1>, scalar_prefetch = 0 : i64, scratch_operands = 0 : i64, tpu.core_type = #tpu.core_type<tc>, window_params = [{transform_indices = @transform_0, window_bounds = array<i64: 128, 128>}, {transform_indices = @transform_1, window_bounds = array<i64: 128, 128>}, {transform_indices = @transform_2, window_bounds = array<i64: 128, 128>}, {pipeline_mode = #tpu.pipeline_mode<synchronous>, transform_indices = @transform_3, window_bounds = array<i64: 384, 128>}, {pipeline_mode = #tpu.pipeline_mode<synchronous>, transform_indices = @transform_4, window_bounds = array<i64: 1, 128>}, {pipeline_mode = #tpu.pipeline_mode<synchronous>, transform_indices = @transform_5, window_bounds = array<i64: 128, 128>}, {pipeline_mode = #tpu.pipeline_mode<synchronous>, transform_indices = @transform_6, window_bounds = array<i64: 1, 128>}, {pipeline_mode = #tpu.pipeline_mode<synchronous>, transform_indices = @transform_7, window_bounds = array<i64: 128, 128>}, {pipeline_mode = #tpu.pipeline_mode<synchronous>, transform_indices = @transform_8, window_bounds = array<i64: 1, 128>}, {pipeline_mode = #tpu.pipeline_mode<synchronous>, transform_indices = @transform_9, window_bounds = array<i64: 1, 128>}, {pipeline_mode = #tpu.pipeline_mode<synchronous>, transform_indices = @transform_10, window_bounds = array<i64: 1, 128>}, {transform_indices = @transform_11, window_bounds = array<i64: 128, 128>}, {transform_indices = @transform_12, window_bounds = array<i64: 128, 128>}]} {
    %c0 = arith.constant 0 : index
    %c0_0 = arith.constant 0 : index
    %0 = vector.load %arg1[%c0, %c0_0] : memref<128x128xbf16, #tpu.memory_space<vmem>>, vector<128x128xbf16>
    %c0_1 = arith.constant 0 : index
    %c0_2 = arith.constant 0 : index
    %1 = vector.load %arg2[%c0_1, %c0_2] : memref<128x128xbf16, #tpu.memory_space<vmem>>, vector<128x128xbf16>
    %c0_3 = arith.constant 0 : index
    %c0_4 = arith.constant 0 : index
    %2 = vector.load %arg3[%c0_3, %c0_4] : memref<128x128xbf16, #tpu.memory_space<vmem>>, vector<128x128xbf16>
    %3 = tpu.concatenate %0, %1, %2 in 1 : vector<128x128xbf16>, vector<128x128xbf16>, vector<128x128xbf16> -> vector<128x384xbf16>
    %c0_5 = arith.constant 0 : index
    %c0_6 = arith.constant 0 : index
    %4 = vector.load %arg4[%c0_5, %c0_6] : memref<384x128xbf16, #tpu.memory_space<vmem>>, vector<384x128xbf16>
    %cst = arith.constant dense<0.000000e+00> : vector<128x128xf32>
    %5 = tpu.matmul %3, %4, %cst {dimension_numbers = #tpu.dot_dimension_numbers<[1], [0], [0], [1], [0, 0, 1, 1], [], []>} : vector<128x384xbf16>, vector<384x128xbf16>, vector<128x128xf32> -> vector<128x128xf32>
    %c0_7 = arith.constant 0 : index
    %c0_8 = arith.constant 0 : index
    %6 = vector.load %arg5[%c0_7, %c0_8] : memref<1x128xf32, #tpu.memory_space<vmem>>, vector<1x128xf32>
    %7 = vector.broadcast %6 : vector<1x128xf32> to vector<128x128xf32>
    %8 = arith.addf %5, %7 : vector<128x128xf32>
    %9 = math.tanh %8 : vector<128x128xf32>
    %10 = arith.truncf %9 : vector<128x128xf32> to vector<128x128xbf16>
    %c0_9 = arith.constant 0 : index
    %c0_10 = arith.constant 0 : index
    %11 = vector.load %arg6[%c0_9, %c0_10] : memref<128x128xbf16, #tpu.memory_space<vmem>>, vector<128x128xbf16>
    %cst_11 = arith.constant dense<0.000000e+00> : vector<128x128xf32>
    %12 = tpu.matmul %10, %11, %cst_11 {dimension_numbers = #tpu.dot_dimension_numbers<[1], [0], [0], [1], [0, 0, 1, 1], [], []>} : vector<128x128xbf16>, vector<128x128xbf16>, vector<128x128xf32> -> vector<128x128xf32>
    %c0_12 = arith.constant 0 : index
    %c0_13 = arith.constant 0 : index
    %13 = vector.load %arg7[%c0_12, %c0_13] : memref<1x128xf32, #tpu.memory_space<vmem>>, vector<1x128xf32>
    %14 = vector.broadcast %13 : vector<1x128xf32> to vector<128x128xf32>
    %15 = arith.addf %12, %14 : vector<128x128xf32>
    %16 = math.tanh %15 : vector<128x128xf32>
    %17 = arith.truncf %16 : vector<128x128xf32> to vector<128x128xbf16>
    %c0_14 = arith.constant 0 : index
    %c0_15 = arith.constant 0 : index
    %18 = vector.load %arg8[%c0_14, %c0_15] : memref<128x128xbf16, #tpu.memory_space<vmem>>, vector<128x128xbf16>
    %cst_16 = arith.constant dense<0.000000e+00> : vector<128x128xf32>
    %19 = tpu.matmul %17, %18, %cst_16 {dimension_numbers = #tpu.dot_dimension_numbers<[1], [0], [0], [1], [0, 0, 1, 1], [], []>} : vector<128x128xbf16>, vector<128x128xbf16>, vector<128x128xf32> -> vector<128x128xf32>
    %c0_17 = arith.constant 0 : index
    %c0_18 = arith.constant 0 : index
    %20 = vector.load %arg9[%c0_17, %c0_18] : memref<1x128xf32, #tpu.memory_space<vmem>>, vector<1x128xf32>
    %21 = vector.broadcast %20 : vector<1x128xf32> to vector<128x128xf32>
    %22 = arith.addf %19, %21 : vector<128x128xf32>
    %cst_19 = arith.constant dense<0.000000e+00> : vector<128xf32>
    %23 = vector.multi_reduction <add>, %22, %cst_19 [1] : vector<128x128xf32> to vector<128xf32>
    %24 = vector.shape_cast %23 : vector<128xf32> to vector<128x1xf32>
    %cst_20 = arith.constant 1.280000e+02 : f32
    %25 = vector.broadcast %cst_20 : f32 to vector<128x1xf32>
    %26 = arith.divf %24, %25 : vector<128x1xf32>
    %27 = vector.broadcast %26 : vector<128x1xf32> to vector<128x128xf32>
    %28 = arith.subf %22, %27 : vector<128x128xf32>
    %29 = arith.mulf %28, %28 : vector<128x128xf32>
    %cst_21 = arith.constant dense<0.000000e+00> : vector<128xf32>
    %30 = vector.multi_reduction <add>, %29, %cst_21 [1] : vector<128x128xf32> to vector<128xf32>
    %31 = vector.shape_cast %30 : vector<128xf32> to vector<128x1xf32>
    %cst_22 = arith.constant 1.280000e+02 : f32
    %32 = vector.broadcast %cst_22 : f32 to vector<128x1xf32>
    %33 = arith.divf %31, %32 : vector<128x1xf32>
    %34 = vector.broadcast %26 : vector<128x1xf32> to vector<128x128xf32>
    %35 = arith.subf %22, %34 : vector<128x128xf32>
    %cst_23 = arith.constant 9.99999974E-6 : f32
    %36 = vector.broadcast %cst_23 : f32 to vector<128x1xf32>
    %37 = arith.addf %33, %36 : vector<128x1xf32>
    %38 = math.rsqrt %37 : vector<128x1xf32>
    %39 = vector.broadcast %38 : vector<128x1xf32> to vector<128x128xf32>
    %40 = arith.mulf %35, %39 : vector<128x128xf32>
    %c0_24 = arith.constant 0 : index
    %c0_25 = arith.constant 0 : index
    %41 = vector.load %arg10[%c0_24, %c0_25] : memref<1x128xf32, #tpu.memory_space<vmem>>, vector<1x128xf32>
    %42 = vector.broadcast %41 : vector<1x128xf32> to vector<128x128xf32>
    %43 = arith.mulf %40, %42 : vector<128x128xf32>
    %c0_26 = arith.constant 0 : index
    %c0_27 = arith.constant 0 : index
    %44 = vector.load %arg11[%c0_26, %c0_27] : memref<1x128xf32, #tpu.memory_space<vmem>>, vector<1x128xf32>
    %45 = vector.broadcast %44 : vector<1x128xf32> to vector<128x128xf32>
    %46 = arith.addf %43, %45 : vector<128x128xf32>
    %c0_28 = arith.constant 0 : index
    %c0_29 = arith.constant 0 : index
    %47 = vector.load %arg12[%c0_28, %c0_29] : memref<128x128xbf16, #tpu.memory_space<vmem>>, vector<128x128xbf16>
    %48 = arith.extf %47 : vector<128x128xbf16> to vector<128x128xf32>
    %49 = arith.addf %46, %48 : vector<128x128xf32>
    %50 = arith.truncf %49 : vector<128x128xf32> to vector<128x128xbf16>
    %c0_30 = arith.constant 0 : index
    %c0_31 = arith.constant 0 : index
    %51 = vector.load %arg13[%c0_30, %c0_31] : memref<128x128xbf16, #tpu.memory_space<vmem>>, vector<128x128xbf16>
    tpu.vector_store %arg13[%c0_30, %c0_31], %50 {strides = array<i32>} : memref<128x128xbf16, #tpu.memory_space<vmem>>, vector<128x128xbf16>,
    return
  }
  func.func @transform_0(%arg0: i32) -> (i32, i32) {
    %c0_i32 = arith.constant 0 : i32
    %c0_i32_0 = arith.constant 0 : i32
    return %arg0, %c0_i32 : i32, i32
  }
  func.func @transform_1(%arg0: i32) -> (i32, i32) {
    %c0_i32 = arith.constant 0 : i32
    %c0_i32_0 = arith.constant 0 : i32
    return %arg0, %c0_i32 : i32, i32
  }
  func.func @transform_2(%arg0: i32) -> (i32, i32) {
    %c0_i32 = arith.constant 0 : i32
    %c0_i32_0 = arith.constant 0 : i32
    return %arg0, %c0_i32 : i32, i32
  }
  func.func @transform_3(%arg0: i32) -> (i32, i32) {
    %c0_i32 = arith.constant 0 : i32
    %c0_i32_0 = arith.constant 0 : i32
    %c0_i32_1 = arith.constant 0 : i32
    return %c0_i32, %c0_i32_0 : i32, i32
  }
  func.func @transform_4(%arg0: i32) -> (i32, i32) {
    %c0_i32 = arith.constant 0 : i32
    %c0_i32_0 = arith.constant 0 : i32
    %c0_i32_1 = arith.constant 0 : i32
    return %c0_i32, %c0_i32_0 : i32, i32
  }
  func.func @transform_5(%arg0: i32) -> (i32, i32) {
    %c0_i32 = arith.constant 0 : i32
    %c0_i32_0 = arith.constant 0 : i32
    %c0_i32_1 = arith.constant 0 : i32
    return %c0_i32, %c0_i32_0 : i32, i32
  }
  func.func @transform_6(%arg0: i32) -> (i32, i32) {
    %c0_i32 = arith.constant 0 : i32
    %c0_i32_0 = arith.constant 0 : i32
    %c0_i32_1 = arith.constant 0 : i32
    return %c0_i32, %c0_i32_0 : i32, i32
  }
  func.func @transform_7(%arg0: i32) -> (i32, i32) {
    %c0_i32 = arith.constant 0 : i32
    %c0_i32_0 = arith.constant 0 : i32
    %c0_i32_1 = arith.constant 0 : i32
    return %c0_i32, %c0_i32_0 : i32, i32
  }
  func.func @transform_8(%arg0: i32) -> (i32, i32) {
    %c0_i32 = arith.constant 0 : i32
    %c0_i32_0 = arith.constant 0 : i32
    %c0_i32_1 = arith.constant 0 : i32
    return %c0_i32, %c0_i32_0 : i32, i32
  }
  func.func @transform_9(%arg0: i32) -> (i32, i32) {
    %c0_i32 = arith.constant 0 : i32
    %c0_i32_0 = arith.constant 0 : i32
    %c0_i32_1 = arith.constant 0 : i32
    return %c0_i32, %c0_i32_0 : i32, i32
  }
  func.func @transform_10(%arg0: i32) -> (i32, i32) {
    %c0_i32 = arith.constant 0 : i32
    %c0_i32_0 = arith.constant 0 : i32
    %c0_i32_1 = arith.constant 0 : i32
    return %c0_i32, %c0_i32_0 : i32, i32
  }
  func.func @transform_11(%arg0: i32) -> (i32, i32) {
    %c0_i32 = arith.constant 0 : i32
    %c0_i32_0 = arith.constant 0 : i32
    return %arg0, %c0_i32 : i32, i32
  }
  func.func @transform_12(%arg0: i32) -> (i32, i32) {
    %c0_i32 = arith.constant 0 : i32
    %c0_i32_0 = arith.constant 0 : i32
    return %arg0, %c0_i32 : i32, i32
  }
}

module attributes {stable_mosaic.version = 11 : i64} {
  func.func @_mlp_kernel(%arg0: i32, %arg1: memref<128x128xbf16, #tpu.memory_space<vmem>>, %arg2: memref<128x128xbf16, #tpu.memory_space<vmem>>, %arg3: memref<256x128xbf16, #tpu.memory_space<vmem>>, %arg4: memref<1x128xf32, #tpu.memory_space<vmem>>, %arg5: memref<128x128xbf16, #tpu.memory_space<vmem>>, %arg6: memref<1x128xf32, #tpu.memory_space<vmem>>, %arg7: memref<128x128xbf16, #tpu.memory_space<vmem>>, %arg8: memref<1x128xf32, #tpu.memory_space<vmem>>, %arg9: memref<1x128xf32, #tpu.memory_space<vmem>>, %arg10: memref<1x128xf32, #tpu.memory_space<vmem>>, %arg11: memref<128x128xbf16, #tpu.memory_space<vmem>>, %arg12: memref<128x128xbf16, #tpu.memory_space<vmem>>) attributes {dimension_semantics = [#tpu.dimension_semantics<parallel>], iteration_bounds = array<i64: 1>, scalar_prefetch = 0 : i64, scratch_operands = 0 : i64, tpu.core_type = #tpu.core_type<tc>, window_params = [{transform_indices = @transform_0, window_bounds = array<i64: 128, 128>}, {transform_indices = @transform_1, window_bounds = array<i64: 128, 128>}, {pipeline_mode = #tpu.pipeline_mode<synchronous>, transform_indices = @transform_2, window_bounds = array<i64: 256, 128>}, {pipeline_mode = #tpu.pipeline_mode<synchronous>, transform_indices = @transform_3, window_bounds = array<i64: 1, 128>}, {pipeline_mode = #tpu.pipeline_mode<synchronous>, transform_indices = @transform_4, window_bounds = array<i64: 128, 128>}, {pipeline_mode = #tpu.pipeline_mode<synchronous>, transform_indices = @transform_5, window_bounds = array<i64: 1, 128>}, {pipeline_mode = #tpu.pipeline_mode<synchronous>, transform_indices = @transform_6, window_bounds = array<i64: 128, 128>}, {pipeline_mode = #tpu.pipeline_mode<synchronous>, transform_indices = @transform_7, window_bounds = array<i64: 1, 128>}, {pipeline_mode = #tpu.pipeline_mode<synchronous>, transform_indices = @transform_8, window_bounds = array<i64: 1, 128>}, {pipeline_mode = #tpu.pipeline_mode<synchronous>, transform_indices = @transform_9, window_bounds = array<i64: 1, 128>}, {transform_indices = @transform_10, window_bounds = array<i64: 128, 128>}, {transform_indices = @transform_11, window_bounds = array<i64: 128, 128>}]} {
    %c0 = arith.constant 0 : index
    %c0_0 = arith.constant 0 : index
    %0 = vector.load %arg1[%c0, %c0_0] : memref<128x128xbf16, #tpu.memory_space<vmem>>, vector<128x128xbf16>
    %c0_1 = arith.constant 0 : index
    %c0_2 = arith.constant 0 : index
    %1 = vector.load %arg2[%c0_1, %c0_2] : memref<128x128xbf16, #tpu.memory_space<vmem>>, vector<128x128xbf16>
    %2 = tpu.concatenate %0, %1 in 1 : vector<128x128xbf16>, vector<128x128xbf16> -> vector<128x256xbf16>
    %c0_3 = arith.constant 0 : index
    %c0_4 = arith.constant 0 : index
    %3 = vector.load %arg3[%c0_3, %c0_4] : memref<256x128xbf16, #tpu.memory_space<vmem>>, vector<256x128xbf16>
    %cst = arith.constant dense<0.000000e+00> : vector<128x128xf32>
    %4 = tpu.matmul %2, %3, %cst {dimension_numbers = #tpu.dot_dimension_numbers<[1], [0], [0], [1], [0, 0, 1, 1], [], []>} : vector<128x256xbf16>, vector<256x128xbf16>, vector<128x128xf32> -> vector<128x128xf32>
    %c0_5 = arith.constant 0 : index
    %c0_6 = arith.constant 0 : index
    %5 = vector.load %arg4[%c0_5, %c0_6] : memref<1x128xf32, #tpu.memory_space<vmem>>, vector<1x128xf32>
    %6 = vector.broadcast %5 : vector<1x128xf32> to vector<128x128xf32>
    %7 = arith.addf %4, %6 : vector<128x128xf32>
    %8 = math.tanh %7 : vector<128x128xf32>
    %9 = arith.truncf %8 : vector<128x128xf32> to vector<128x128xbf16>
    %c0_7 = arith.constant 0 : index
    %c0_8 = arith.constant 0 : index
    %10 = vector.load %arg5[%c0_7, %c0_8] : memref<128x128xbf16, #tpu.memory_space<vmem>>, vector<128x128xbf16>
    %cst_9 = arith.constant dense<0.000000e+00> : vector<128x128xf32>
    %11 = tpu.matmul %9, %10, %cst_9 {dimension_numbers = #tpu.dot_dimension_numbers<[1], [0], [0], [1], [0, 0, 1, 1], [], []>} : vector<128x128xbf16>, vector<128x128xbf16>, vector<128x128xf32> -> vector<128x128xf32>
    %c0_10 = arith.constant 0 : index
    %c0_11 = arith.constant 0 : index
    %12 = vector.load %arg6[%c0_10, %c0_11] : memref<1x128xf32, #tpu.memory_space<vmem>>, vector<1x128xf32>
    %13 = vector.broadcast %12 : vector<1x128xf32> to vector<128x128xf32>
    %14 = arith.addf %11, %13 : vector<128x128xf32>
    %15 = math.tanh %14 : vector<128x128xf32>
    %16 = arith.truncf %15 : vector<128x128xf32> to vector<128x128xbf16>
    %c0_12 = arith.constant 0 : index
    %c0_13 = arith.constant 0 : index
    %17 = vector.load %arg7[%c0_12, %c0_13] : memref<128x128xbf16, #tpu.memory_space<vmem>>, vector<128x128xbf16>
    %cst_14 = arith.constant dense<0.000000e+00> : vector<128x128xf32>
    %18 = tpu.matmul %16, %17, %cst_14 {dimension_numbers = #tpu.dot_dimension_numbers<[1], [0], [0], [1], [0, 0, 1, 1], [], []>} : vector<128x128xbf16>, vector<128x128xbf16>, vector<128x128xf32> -> vector<128x128xf32>
    %c0_15 = arith.constant 0 : index
    %c0_16 = arith.constant 0 : index
    %19 = vector.load %arg8[%c0_15, %c0_16] : memref<1x128xf32, #tpu.memory_space<vmem>>, vector<1x128xf32>
    %20 = vector.broadcast %19 : vector<1x128xf32> to vector<128x128xf32>
    %21 = arith.addf %18, %20 : vector<128x128xf32>
    %cst_17 = arith.constant dense<0.000000e+00> : vector<128xf32>
    %22 = vector.multi_reduction <add>, %21, %cst_17 [1] : vector<128x128xf32> to vector<128xf32>
    %23 = vector.shape_cast %22 : vector<128xf32> to vector<128x1xf32>
    %cst_18 = arith.constant 1.280000e+02 : f32
    %24 = vector.broadcast %cst_18 : f32 to vector<128x1xf32>
    %25 = arith.divf %23, %24 : vector<128x1xf32>
    %26 = vector.broadcast %25 : vector<128x1xf32> to vector<128x128xf32>
    %27 = arith.subf %21, %26 : vector<128x128xf32>
    %28 = arith.mulf %27, %27 : vector<128x128xf32>
    %cst_19 = arith.constant dense<0.000000e+00> : vector<128xf32>
    %29 = vector.multi_reduction <add>, %28, %cst_19 [1] : vector<128x128xf32> to vector<128xf32>
    %30 = vector.shape_cast %29 : vector<128xf32> to vector<128x1xf32>
    %cst_20 = arith.constant 1.280000e+02 : f32
    %31 = vector.broadcast %cst_20 : f32 to vector<128x1xf32>
    %32 = arith.divf %30, %31 : vector<128x1xf32>
    %33 = vector.broadcast %25 : vector<128x1xf32> to vector<128x128xf32>
    %34 = arith.subf %21, %33 : vector<128x128xf32>
    %cst_21 = arith.constant 9.99999974E-6 : f32
    %35 = vector.broadcast %cst_21 : f32 to vector<128x1xf32>
    %36 = arith.addf %32, %35 : vector<128x1xf32>
    %37 = math.rsqrt %36 : vector<128x1xf32>
    %38 = vector.broadcast %37 : vector<128x1xf32> to vector<128x128xf32>
    %39 = arith.mulf %34, %38 : vector<128x128xf32>
    %c0_22 = arith.constant 0 : index
    %c0_23 = arith.constant 0 : index
    %40 = vector.load %arg9[%c0_22, %c0_23] : memref<1x128xf32, #tpu.memory_space<vmem>>, vector<1x128xf32>
    %41 = vector.broadcast %40 : vector<1x128xf32> to vector<128x128xf32>
    %42 = arith.mulf %39, %41 : vector<128x128xf32>
    %c0_24 = arith.constant 0 : index
    %c0_25 = arith.constant 0 : index
    %43 = vector.load %arg10[%c0_24, %c0_25] : memref<1x128xf32, #tpu.memory_space<vmem>>, vector<1x128xf32>
    %44 = vector.broadcast %43 : vector<1x128xf32> to vector<128x128xf32>
    %45 = arith.addf %42, %44 : vector<128x128xf32>
    %c0_26 = arith.constant 0 : index
    %c0_27 = arith.constant 0 : index
    %46 = vector.load %arg11[%c0_26, %c0_27] : memref<128x128xbf16, #tpu.memory_space<vmem>>, vector<128x128xbf16>
    %47 = arith.extf %46 : vector<128x128xbf16> to vector<128x128xf32>
    %48 = arith.addf %45, %47 : vector<128x128xf32>
    %49 = arith.truncf %48 : vector<128x128xf32> to vector<128x128xbf16>
    %c0_28 = arith.constant 0 : index
    %c0_29 = arith.constant 0 : index
    %50 = vector.load %arg12[%c0_28, %c0_29] : memref<128x128xbf16, #tpu.memory_space<vmem>>, vector<128x128xbf16>
    tpu.vector_store %arg12[%c0_28, %c0_29], %49 {strides = array<i32>} : memref<128x128xbf16, #tpu.memory_space<vmem>>, vector<128x128xbf16>,
    return
  }
  func.func @transform_0(%arg0: i32) -> (i32, i32) {
    %c0_i32 = arith.constant 0 : i32
    %c0_i32_0 = arith.constant 0 : i32
    return %arg0, %c0_i32 : i32, i32
  }
  func.func @transform_1(%arg0: i32) -> (i32, i32) {
    %c0_i32 = arith.constant 0 : i32
    %c0_i32_0 = arith.constant 0 : i32
    return %arg0, %c0_i32 : i32, i32
  }
  func.func @transform_2(%arg0: i32) -> (i32, i32) {
    %c0_i32 = arith.constant 0 : i32
    %c0_i32_0 = arith.constant 0 : i32
    %c0_i32_1 = arith.constant 0 : i32
    return %c0_i32, %c0_i32_0 : i32, i32
  }
  func.func @transform_3(%arg0: i32) -> (i32, i32) {
    %c0_i32 = arith.constant 0 : i32
    %c0_i32_0 = arith.constant 0 : i32
    %c0_i32_1 = arith.constant 0 : i32
    return %c0_i32, %c0_i32_0 : i32, i32
  }
  func.func @transform_4(%arg0: i32) -> (i32, i32) {
    %c0_i32 = arith.constant 0 : i32
    %c0_i32_0 = arith.constant 0 : i32
    %c0_i32_1 = arith.constant 0 : i32
    return %c0_i32, %c0_i32_0 : i32, i32
  }
  func.func @transform_5(%arg0: i32) -> (i32, i32) {
    %c0_i32 = arith.constant 0 : i32
    %c0_i32_0 = arith.constant 0 : i32
    %c0_i32_1 = arith.constant 0 : i32
    return %c0_i32, %c0_i32_0 : i32, i32
  }
  func.func @transform_6(%arg0: i32) -> (i32, i32) {
    %c0_i32 = arith.constant 0 : i32
    %c0_i32_0 = arith.constant 0 : i32
    %c0_i32_1 = arith.constant 0 : i32
    return %c0_i32, %c0_i32_0 : i32, i32
  }
  func.func @transform_7(%arg0: i32) -> (i32, i32) {
    %c0_i32 = arith.constant 0 : i32
    %c0_i32_0 = arith.constant 0 : i32
    %c0_i32_1 = arith.constant 0 : i32
    return %c0_i32, %c0_i32_0 : i32, i32
  }
  func.func @transform_8(%arg0: i32) -> (i32, i32) {
    %c0_i32 = arith.constant 0 : i32
    %c0_i32_0 = arith.constant 0 : i32
    %c0_i32_1 = arith.constant 0 : i32
    return %c0_i32, %c0_i32_0 : i32, i32
  }
  func.func @transform_9(%arg0: i32) -> (i32, i32) {
    %c0_i32 = arith.constant 0 : i32
    %c0_i32_0 = arith.constant 0 : i32
    %c0_i32_1 = arith.constant 0 : i32
    return %c0_i32, %c0_i32_0 : i32, i32
  }
  func.func @transform_10(%arg0: i32) -> (i32, i32) {
    %c0_i32 = arith.constant 0 : i32
    %c0_i32_0 = arith.constant 0 : i32
    return %arg0, %c0_i32 : i32, i32
  }
  func.func @transform_11(%arg0: i32) -> (i32, i32) {
    %c0_i32 = arith.constant 0 : i32
    %c0_i32_0 = arith.constant 0 : i32
    return %arg0, %c0_i32 : i32, i32
  }
}

module attributes {stable_mosaic.version = 11 : i64} {
  func.func @_mlp_kernel(%arg0: i32, %arg1: memref<128x128xbf16, #tpu.memory_space<vmem>>, %arg2: memref<128x128xbf16, #tpu.memory_space<vmem>>, %arg3: memref<1x128xf32, #tpu.memory_space<vmem>>, %arg4: memref<128x128xbf16, #tpu.memory_space<vmem>>, %arg5: memref<1x128xf32, #tpu.memory_space<vmem>>, %arg6: memref<128x128xbf16, #tpu.memory_space<vmem>>, %arg7: memref<1x128xf32, #tpu.memory_space<vmem>>, %arg8: memref<128x128xf32, #tpu.memory_space<vmem>>) attributes {dimension_semantics = [#tpu.dimension_semantics<parallel>], iteration_bounds = array<i64: 1>, scalar_prefetch = 0 : i64, scratch_operands = 0 : i64, tpu.core_type = #tpu.core_type<tc>, window_params = [{transform_indices = @transform_0, window_bounds = array<i64: 128, 128>}, {pipeline_mode = #tpu.pipeline_mode<synchronous>, transform_indices = @transform_1, window_bounds = array<i64: 128, 128>}, {pipeline_mode = #tpu.pipeline_mode<synchronous>, transform_indices = @transform_2, window_bounds = array<i64: 1, 128>}, {pipeline_mode = #tpu.pipeline_mode<synchronous>, transform_indices = @transform_3, window_bounds = array<i64: 128, 128>}, {pipeline_mode = #tpu.pipeline_mode<synchronous>, transform_indices = @transform_4, window_bounds = array<i64: 1, 128>}, {pipeline_mode = #tpu.pipeline_mode<synchronous>, transform_indices = @transform_5, window_bounds = array<i64: 128, 128>}, {pipeline_mode = #tpu.pipeline_mode<synchronous>, transform_indices = @transform_6, window_bounds = array<i64: 1, 128>}, {transform_indices = @transform_7, window_bounds = array<i64: 128, 128>}]} {
    %c0 = arith.constant 0 : index
    %c0_0 = arith.constant 0 : index
    %0 = vector.load %arg1[%c0, %c0_0] : memref<128x128xbf16, #tpu.memory_space<vmem>>, vector<128x128xbf16>
    %c0_1 = arith.constant 0 : index
    %c0_2 = arith.constant 0 : index
    %1 = vector.load %arg2[%c0_1, %c0_2] : memref<128x128xbf16, #tpu.memory_space<vmem>>, vector<128x128xbf16>
    %cst = arith.constant dense<0.000000e+00> : vector<128x128xf32>
    %2 = tpu.matmul %0, %1, %cst {dimension_numbers = #tpu.dot_dimension_numbers<[1], [0], [0], [1], [0, 0, 1, 1], [], []>} : vector<128x128xbf16>, vector<128x128xbf16>, vector<128x128xf32> -> vector<128x128xf32>
    %c0_3 = arith.constant 0 : index
    %c0_4 = arith.constant 0 : index
    %3 = vector.load %arg3[%c0_3, %c0_4] : memref<1x128xf32, #tpu.memory_space<vmem>>, vector<1x128xf32>
    %4 = vector.broadcast %3 : vector<1x128xf32> to vector<128x128xf32>
    %5 = arith.addf %2, %4 : vector<128x128xf32>
    %6 = math.tanh %5 : vector<128x128xf32>
    %7 = arith.truncf %6 : vector<128x128xf32> to vector<128x128xbf16>
    %c0_5 = arith.constant 0 : index
    %c0_6 = arith.constant 0 : index
    %8 = vector.load %arg4[%c0_5, %c0_6] : memref<128x128xbf16, #tpu.memory_space<vmem>>, vector<128x128xbf16>
    %cst_7 = arith.constant dense<0.000000e+00> : vector<128x128xf32>
    %9 = tpu.matmul %7, %8, %cst_7 {dimension_numbers = #tpu.dot_dimension_numbers<[1], [0], [0], [1], [0, 0, 1, 1], [], []>} : vector<128x128xbf16>, vector<128x128xbf16>, vector<128x128xf32> -> vector<128x128xf32>
    %c0_8 = arith.constant 0 : index
    %c0_9 = arith.constant 0 : index
    %10 = vector.load %arg5[%c0_8, %c0_9] : memref<1x128xf32, #tpu.memory_space<vmem>>, vector<1x128xf32>
    %11 = vector.broadcast %10 : vector<1x128xf32> to vector<128x128xf32>
    %12 = arith.addf %9, %11 : vector<128x128xf32>
    %13 = math.tanh %12 : vector<128x128xf32>
    %14 = arith.truncf %13 : vector<128x128xf32> to vector<128x128xbf16>
    %c0_10 = arith.constant 0 : index
    %c0_11 = arith.constant 0 : index
    %15 = vector.load %arg6[%c0_10, %c0_11] : memref<128x128xbf16, #tpu.memory_space<vmem>>, vector<128x128xbf16>
    %cst_12 = arith.constant dense<0.000000e+00> : vector<128x128xf32>
    %16 = tpu.matmul %14, %15, %cst_12 {dimension_numbers = #tpu.dot_dimension_numbers<[1], [0], [0], [1], [0, 0, 1, 1], [], []>} : vector<128x128xbf16>, vector<128x128xbf16>, vector<128x128xf32> -> vector<128x128xf32>
    %c0_13 = arith.constant 0 : index
    %c0_14 = arith.constant 0 : index
    %17 = vector.load %arg7[%c0_13, %c0_14] : memref<1x128xf32, #tpu.memory_space<vmem>>, vector<1x128xf32>
    %18 = vector.broadcast %17 : vector<1x128xf32> to vector<128x128xf32>
    %19 = arith.addf %16, %18 : vector<128x128xf32>
    %c0_15 = arith.constant 0 : index
    %c0_16 = arith.constant 0 : index
    %20 = vector.load %arg8[%c0_15, %c0_16] : memref<128x128xf32, #tpu.memory_space<vmem>>, vector<128x128xf32>
    tpu.vector_store %arg8[%c0_15, %c0_16], %19 {strides = array<i32>} : memref<128x128xf32, #tpu.memory_space<vmem>>, vector<128x128xf32>,
    return
  }
  func.func @transform_0(%arg0: i32) -> (i32, i32) {
    %c0_i32 = arith.constant 0 : i32
    %c0_i32_0 = arith.constant 0 : i32
    return %arg0, %c0_i32 : i32, i32
  }
  func.func @transform_1(%arg0: i32) -> (i32, i32) {
    %c0_i32 = arith.constant 0 : i32
    %c0_i32_0 = arith.constant 0 : i32
    %c0_i32_1 = arith.constant 0 : i32
    return %c0_i32, %c0_i32_0 : i32, i32
  }
  func.func @transform_2(%arg0: i32) -> (i32, i32) {
    %c0_i32 = arith.constant 0 : i32
    %c0_i32_0 = arith.constant 0 : i32
    %c0_i32_1 = arith.constant 0 : i32
    return %c0_i32, %c0_i32_0 : i32, i32
  }
  func.func @transform_3(%arg0: i32) -> (i32, i32) {
    %c0_i32 = arith.constant 0 : i32
    %c0_i32_0 = arith.constant 0 : i32
    %c0_i32_1 = arith.constant 0 : i32
    return %c0_i32, %c0_i32_0 : i32, i32
  }
  func.func @transform_4(%arg0: i32) -> (i32, i32) {
    %c0_i32 = arith.constant 0 : i32
    %c0_i32_0 = arith.constant 0 : i32
    %c0_i32_1 = arith.constant 0 : i32
    return %c0_i32, %c0_i32_0 : i32, i32
  }
  func.func @transform_5(%arg0: i32) -> (i32, i32) {
    %c0_i32 = arith.constant 0 : i32
    %c0_i32_0 = arith.constant 0 : i32
    %c0_i32_1 = arith.constant 0 : i32
    return %c0_i32, %c0_i32_0 : i32, i32
  }
  func.func @transform_6(%arg0: i32) -> (i32, i32) {
    %c0_i32 = arith.constant 0 : i32
    %c0_i32_0 = arith.constant 0 : i32
    %c0_i32_1 = arith.constant 0 : i32
    return %c0_i32, %c0_i32_0 : i32, i32
  }
  func.func @transform_7(%arg0: i32) -> (i32, i32) {
    %c0_i32 = arith.constant 0 : i32
    %c0_i32_0 = arith.constant 0 : i32
    return %arg0, %c0_i32 : i32, i32
  }
}

</mosaic_0001>

<bundles_post_ra>
// kernel: custom-call.1
= control target key start
LH: loop header
LB: loop body
LE: loop exit
PB: predicated region body
PF: predicated region fallthrough
CT: control target
= control target key end

     0   :  { %s6_s0 = inlined_call_operand.vmem [shape: u32[96], index: 0, kind: output, shape index: {}]  }

// kernel: net_forward.8
= control target key start
LH: loop header
LB: loop body
LE: loop exit
PB: predicated region body
PF: predicated region fallthrough
CT: control target
= control target key end

     0   :  { %vm90_vm0 = vcmask 1042432   ;;  %vm65_vm1 = vcmask 48128   ;;  %s1570_s1 = inlined_call_operand.vmem [shape: bf16[6,128], index: 1, kind: input, shape index: {}]   ;;  %s1571_s0 = inlined_call_operand.vmem [shape: f32[128,6], index: 0, kind: input, shape index: {}]   ;;  %s1572_s3 = inlined_call_operand.vmem [shape: bf16[128,128], index: 3, kind: input, shape index: {}]   ;;  %s1573_s5 = inlined_call_operand.vmem [shape: bf16[128,128], index: 5, kind: input, shape index: {}]   ;;  %s1574_s2 = inlined_call_operand.vmem [shape: f32[1,128], index: 2, kind: input, shape index: {}]   ;;  %s1575_s4 = inlined_call_operand.vmem [shape: f32[1,128], index: 4, kind: input, shape index: {}]   ;;  %s1576_s6 = inlined_call_operand.vmem [shape: f32[1,128], index: 6, kind: input, shape index: {}]   ;;  %s1577_s7 = inlined_call_operand.vmem [shape: f32[1,128], index: 7, kind: input, shape index: {}]   ;;  %s1578_s8 = inlined_call_operand.vmem [shape: f32[1,128], index: 8, kind: input, shape index: {}]   ;;  %s1579_s9 = inlined_call_operand.vmem [shape: bf16[128,128], index: 9, kind: output, shape index: {}]  }
   0x1   :  { %v57_v0 = vld [vmem:[%s1570_s1] sm:$0x7]  ;;  %v34_v2 = vld [vmem:[%s1571_s0 + $0x8] sm:$0xff]  ;;  %v35_v5 = vld [vmem:[%s1571_s0 + $0x10] sm:$0xff] }
   0x2   :  { %v33_v1 = vld [vmem:[%s1571_s0] sm:$0xff]  ;;  %1113 = vmatprep.subr.msk.bf16.mxu0 %vm90_vm0, %v57_v0  ;;  %v92_v3 = vsel %vm90_vm0, %v57_v0, 0  ;;  %v36_v6 = vld [vmem:[%s1571_s0 + $0x18] sm:$0xff]  ;;  %v38_v9 = vld [vmem:[%s1571_s0 + $0x28] sm:$0xff] }
   0x3   :  { %v49_v4 = vpack.c.bf16 %v34_v2, %v33_v1  ;;  %v37_v7 = vld [vmem:[%s1571_s0 + $0x20] sm:$0xff]  ;;  %1032 = vmatpush3.bf16.msra.mxu0 %v92_v3  ;;  %v50_v8 = vpack.c.bf16 %v36_v6, %v35_v5  ;;  %v39_v11 = vld [vmem:[%s1571_s0 + $0x30] sm:$0xff]  ;;  %v40_v12 = vld [vmem:[%s1571_s0 + $0x38] sm:$0xff] }
   0x4   :  { %v51_v10 = vpack.c.bf16 %v38_v9, %v37_v7  ;;  %v41_v13 = vld [vmem:[%s1571_s0 + $0x40] sm:$0xff]  ;;  %v42_v14 = vld [vmem:[%s1571_s0 + $0x48] sm:$0xff]  ;;  %v1116_v17 = vld [vmem:[%s1572_s3 + $0x10] sm:$0xff]   ;;  %v52_v18 = vpack.c.bf16 %v40_v12, %v39_v11 }
   0x5   :  { %1033 = vmatprep.mubr.msk.bf16.mxu0 %vm65_vm1, %v49_v4  ;;  %v1114_v15 = vld [vmem:[%s1572_s3] sm:$0xff]   ;;  %v1115_v16 = vld [vmem:[%s1572_s3 + $0x8] sm:$0xff]   ;;  %v53_v19 = vpack.c.bf16 %v42_v14, %v41_v13  ;;  %v43_v20 = vld [vmem:[%s1571_s0 + $0x50] sm:$0xff] }
   0x6   :  { %1034 = vmatmul.mubr.msk.bf16.vlgmr.msra.gmra.mrb[0].mxu0 %vm65_vm1, %v50_v8  ;;  %1049 = vmatprep.subr.bf16.mxu1 %v1114_v15  ;;  %v44_v21 = vld [vmem:[%s1571_s0 + $0x58] sm:$0xff]  ;;  %v45_v22 = vld [vmem:[%s1571_s0 + $0x60] sm:$0xff]  ;;  %v46_v23 = vld [vmem:[%s1571_s0 + $0x68] sm:$0xff] }
   0x7   :  { %1037 = vmatprep.mubr.msk.bf16.mxu0 %vm65_vm1, %v51_v10  ;;  %1050 = vmatpush3.bf16.msra.mxu1 %v1114_v15  ;;  %v54_v24 = vpack.c.bf16 %v44_v21, %v43_v20  ;;  %v55_v25 = vpack.c.bf16 %v46_v23, %v45_v22  ;;  %v47_v26 = vld [vmem:[%s1571_s0 + $0x70] sm:$0xff]  ;;  %v48_v27 = vld [vmem:[%s1571_s0 + $0x78] sm:$0xff]  ;;  %v1118_v30 = vld [vmem:[%s1572_s3 + $0x20] sm:$0xff]  }
   0x8   :  { %1051 = vmatprep.subr.bf16.mxu1 %v1115_v16  ;;  %v56_v28 = vpack.c.bf16 %v48_v27, %v47_v26  ;;  %v1117_v29 = vld [vmem:[%s1572_s3 + $0x18] sm:$0xff]   ;;  %v1119_v31 = vld [vmem:[%s1572_s3 + $0x28] sm:$0xff]   ;;  %v1120_v32 = vld [vmem:[%s1572_s3 + $0x30] sm:$0xff]  }
   0x9   :  { %v1121_v33 = vld [vmem:[%s1572_s3 + $0x38] sm:$0xff]   ;;  %v1122_v34 = vld [vmem:[%s1573_s5] sm:$0xff]   ;;  %v1123_v35 = vld [vmem:[%s1573_s5 + $0x8] sm:$0xff]  }
   0xa   :  { %1081 = vmatprep.subr.bf16.mxu0 %v1122_v34  ;;  %v1124_v36 = vld [vmem:[%s1573_s5 + $0x10] sm:$0xff]   ;;  %v1125_v37 = vld [vmem:[%s1573_s5 + $0x18] sm:$0xff]   ;;  %v882_v38 = vld [vmem:[%s1574_s2] ss:$0 sm:$0xff] }
   0xb   :  { %1052 = vmatpush3.bf16.msra.mxu1 %v1115_v16  ;;  %1082 = vmatpush3.bf16.msra.mxu0 %v1122_v34  ;;  %v1129_v34 = vld [vmem:[%s1573_s5 + $0x38] sm:$0xff]  }
   0xc   :  { %1053 = vmatprep.subr.bf16.mxu1 %v1116_v17  ;;  %1083 = vmatprep.subr.bf16.mxu0 %v1123_v35 }
   0xe   :  { %1038 = vmatmul.mubr.msk.bf16.gmra.mrb[4].mxu0 %vm65_vm1, %v52_v18 }
   0xf   :  { %1041 = vmatprep.mubr.msk.bf16.mxu0 %vm65_vm1, %v53_v19  ;;  %1054 = vmatpush3.bf16.msra.mxu1 %v1116_v17 }
  0x10   :  { %1055 = vmatprep.subr.bf16.mxu1 %v1117_v29  ;;  %1084 = vmatpush3.bf16.msra.mxu0 %v1123_v35  ;;  %v891_v35 = vld [vmem:[%s1575_s4] ss:$0 sm:$0xff] }
  0x11   :  { %1085 = vmatprep.subr.bf16.mxu0 %v1124_v36 }
  0x13   :  { %1056 = vmatpush3.bf16.msra.mxu1 %v1117_v29 }
  0x14   :  { %1057 = vmatprep.subr.bf16.mxu1 %v1118_v30  ;;  %1086 = vmatpush3.bf16.msra.mxu0 %v1124_v36 }
  0x15   :  { %1087 = vmatprep.subr.bf16.mxu0 %v1125_v37 }
  0x16   :  { %1042 = vmatmul.mubr.msk.bf16.gmra.mrb[8].mxu0 %vm65_vm1, %v54_v24 }
  0x17   :  { %1045 = vmatprep.mubr.msk.bf16.mxu0 %vm65_vm1, %v55_v25  ;;  %1058 = vmatpush3.bf16.msra.mxu1 %v1118_v30 }
  0x18   :  { %1059 = vmatprep.subr.bf16.mxu1 %v1119_v31  ;;  %1088 = vmatpush3.bf16.msra.mxu0 %v1125_v37 }
  0x1b   :  { %1060 = vmatpush3.bf16.msra.mxu1 %v1119_v31  ;;  %v1126_v31 = vld [vmem:[%s1573_s5 + $0x20] sm:$0xff]  }
  0x1c   :  { %1061 = vmatprep.subr.bf16.mxu1 %v1120_v32  ;;  %1089 = vmatprep.subr.bf16.mxu0 %v1126_v31 }
  0x1d   :  { %1090 = vmatpush3.bf16.msra.mxu0 %v1126_v31 }
  0x1e   :  { %1046 = vmatmul.mubr.msk.bf16.gmra.mrb[12].mxu0 %vm65_vm1, %v56_v28 }
  0x1f   :  { %1062 = vmatpush3.bf16.msra.mxu1 %v1120_v32  ;;  %v1127_v32 = vld [vmem:[%s1573_s5 + $0x28] sm:$0xff]  }
  0x20   :  { %1063 = vmatprep.subr.bf16.mxu1 %v1121_v33  ;;  %1091 = vmatprep.subr.bf16.mxu0 %v1127_v32 }
  0x21   :  { %1092 = vmatpush3.bf16.msra.mxu0 %v1127_v32 }
  0x23   :  { %1064 = vmatpush3.bf16.msra.mxu1 %v1121_v33  ;;  %v1128_v33 = vld [vmem:[%s1573_s5 + $0x30] sm:$0xff]  }
  0x24   :  { %1093 = vmatprep.subr.bf16.mxu0 %v1128_v33 }
  0x25   :  { %1094 = vmatpush3.bf16.msra.mxu0 %v1128_v33 }
  0x26   :  { %1095 = vmatprep.subr.bf16.mxu0 %v1129_v34 }
  0x29   :  { %1096 = vmatpush3.bf16.msra.mxu0 %v1129_v34 }
  0xd9   :  { %v1035_v39 = vpop.f32.mrb[0].mxu0 }
  0xda   :  { %v137_v40 = vadd.f32 %v1035_v39, %v882_v38  ;;  %v128_v41 = vpop.f32.mrb[1].mxu0 }
  0xdb   :  { %v129_v42 = vadd.f32 %v882_v38, %v128_v41  ;;  %v1036_v43 = vpop.f32.mrb[2].mxu0 }
  0xdc   :  { %1130 = vtanh.f32 %v137_v40  ;;  %v140_v44 = vadd.f32 %v1036_v43, %v882_v38  ;;  %v131_v45 = vpop.f32.mrb[3].mxu0 }
  0xdd   :  { %1132 = vtanh.f32 %v129_v42  ;;  %v132_v46 = vadd.f32 %v882_v38, %v131_v45 }
  0xde   :  { %1134 = vtanh.f32 %v140_v44 }
  0xdf   :  { %1136 = vtanh.f32 %v132_v46 }
  0xe1   :  { %v1039_v47 = vpop.f32.mrb[4].mxu0 }
  0xe2   :  { %v153_v48 = vadd.f32 %v1039_v47, %v882_v38  ;;  %v144_v49 = vpop.f32.mrb[5].mxu0 }
  0xe3   :  { %v145_v50 = vadd.f32 %v882_v38, %v144_v49  ;;  %v1040_v51 = vpop.f32.mrb[6].mxu0 }
  0xe4   :  { %1138 = vtanh.f32 %v153_v48  ;;  %v156_v52 = vadd.f32 %v1040_v51, %v882_v38  ;;  %v147_v53 = vpop.f32.mrb[7].mxu0 }
  0xe5   :  { %1140 = vtanh.f32 %v145_v50  ;;  %v148_v54 = vadd.f32 %v882_v38, %v147_v53 }
  0xe6   :  { %v1131_v55 = vpop.eup %1130  ;;  %1142 = vtanh.f32 %v156_v52 }
  0xe7   :  { %v1133_v56 = vpop.eup %1132  ;;  %1144 = vtanh.f32 %v148_v54 }
  0xe8   :  { %v1135_v57 = vpop.eup %1134 }
  0xe9   :  { %v1137_v58 = vpop.eup %1136  ;;  %v1043_v59 = vpop.f32.mrb[8].mxu0  ;;  %v208_v60 = vpack.c.bf16 %v1135_v57, %v1131_v55 }
  0xea   :  { %v169_v61 = vadd.f32 %v1043_v59, %v882_v38  ;;  %v160_v62 = vpop.f32.mrb[9].mxu0  ;;  %v207_v63 = vpack.c.bf16 %v1137_v58, %v1133_v56 }
  0xeb   :  { %v161_v0 = vadd.f32 %v882_v38, %v160_v62  ;;  %v1044_v1 = vpop.f32.mrb[10].mxu0 }
  0xec   :  { %1146 = vtanh.f32 %v169_v61  ;;  %v172_v2 = vadd.f32 %v1044_v1, %v882_v38  ;;  %v163_v3 = vpop.f32.mrb[11].mxu0  ;;  %1065 = vmatprep.mubr.bf16.mxu1 %v207_v63 }
  0xed   :  { %1148 = vtanh.f32 %v161_v0  ;;  %v164_v4 = vadd.f32 %v882_v38, %v163_v3  ;;  %1066 = vmatmul.mubr.bf16.vlgmr.msra.gmra.mrb[0].mxu1 %v208_v60 }
  0xee   :  { %v1139_v5 = vpop.eup %1138  ;;  %1150 = vtanh.f32 %v172_v2 }
  0xef   :  { %v1141_v6 = vpop.eup %1140  ;;  %1152 = vtanh.f32 %v164_v4 }
  0xf0   :  { %v1143_v7 = vpop.eup %1142 }
  0xf1   :  { %v1145_v8 = vpop.eup %1144  ;;  %v1047_v9 = vpop.f32.mrb[12].mxu0  ;;  %v210_v10 = vpack.c.bf16 %v1143_v7, %v1139_v5 }
  0xf2   :  { %v185_v11 = vadd.f32 %v1047_v9, %v882_v38  ;;  %v176_v12 = vpop.f32.mrb[13].mxu0  ;;  %v209_v13 = vpack.c.bf16 %v1145_v8, %v1141_v6 }
  0xf3   :  { %v177_v14 = vadd.f32 %v882_v38, %v176_v12  ;;  %v1048_v15 = vpop.f32.mrb[14].mxu0 }
  0xf4   :  { %1154 = vtanh.f32 %v185_v11  ;;  %v188_v16 = vadd.f32 %v1048_v15, %v882_v38  ;;  %v179_v17 = vpop.f32.mrb[15].mxu0  ;;  %1069 = vmatprep.mubr.bf16.mxu1 %v209_v13 }
  0xf5   :  { %1156 = vtanh.f32 %v177_v14  ;;  %v180_v18 = vadd.f32 %v882_v38, %v179_v17  ;;  %1070 = vmatmul.mubr.bf16.gmra.mrb[4].mxu1 %v210_v10 }
  0xf6   :  { %v1147_v19 = vpop.eup %1146  ;;  %1158 = vtanh.f32 %v188_v16 }
  0xf7   :  { %v1149_v20 = vpop.eup %1148  ;;  %1160 = vtanh.f32 %v180_v18 }
  0xf8   :  { %v1151_v21 = vpop.eup %1150 }
  0xf9   :  { %v1153_v22 = vpop.eup %1152  ;;  %v212_v23 = vpack.c.bf16 %v1151_v21, %v1147_v19 }
  0xfa   :  { %v211_v24 = vpack.c.bf16 %v1153_v22, %v1149_v20 }
  0xfc   :  { %1073 = vmatprep.mubr.bf16.mxu1 %v211_v24 }
  0xfd   :  { %1074 = vmatmul.mubr.bf16.gmra.mrb[8].mxu1 %v212_v23 }
  0xfe   :  { %v1155_v25 = vpop.eup %1154 }
  0xff   :  { %v1157_v26 = vpop.eup %1156 }
 0x100   :  { %v1159_v27 = vpop.eup %1158 }
 0x101   :  { %v1161_v28 = vpop.eup %1160  ;;  %v214_v29 = vpack.c.bf16 %v1159_v27, %v1155_v25 }
 0x102   :  { %v213_v30 = vpack.c.bf16 %v1161_v28, %v1157_v26  ;;  %v900_v28 = vld [vmem:[%s1576_s6] ss:$0 sm:$0xff] }
 0x104   :  { %1077 = vmatprep.mubr.bf16.mxu1 %v213_v30 }
 0x105   :  { %1078 = vmatmul.mubr.bf16.gmra.mrb[12].mxu1 %v214_v29 }
 0x1c0   :  { %v1067_v36 = vpop.f32.mrb[0].mxu1 }
 0x1c1   :  { %v329_v37 = vadd.f32 %v1067_v36, %v891_v35  ;;  %v320_v38 = vpop.f32.mrb[1].mxu1 }
 0x1c2   :  { %v321_v39 = vadd.f32 %v891_v35, %v320_v38  ;;  %v1068_v40 = vpop.f32.mrb[2].mxu1 }
 0x1c3   :  { %1162 = vtanh.f32 %v329_v37  ;;  %v332_v41 = vadd.f32 %v1068_v40, %v891_v35  ;;  %v323_v42 = vpop.f32.mrb[3].mxu1 }
 0x1c4   :  { %1164 = vtanh.f32 %v321_v39  ;;  %v324_v43 = vadd.f32 %v891_v35, %v323_v42 }
 0x1c5   :  { %1166 = vtanh.f32 %v332_v41 }
 0x1c6   :  { %1168 = vtanh.f32 %v324_v43 }
 0x1c8   :  { %v1071_v44 = vpop.f32.mrb[4].mxu1 }
 0x1c9   :  { %v345_v45 = vadd.f32 %v1071_v44, %v891_v35  ;;  %v336_v46 = vpop.f32.mrb[5].mxu1 }
 0x1ca   :  { %v337_v47 = vadd.f32 %v891_v35, %v336_v46  ;;  %v1072_v48 = vpop.f32.mrb[6].mxu1 }
 0x1cb   :  { %1170 = vtanh.f32 %v345_v45  ;;  %v348_v49 = vadd.f32 %v1072_v48, %v891_v35  ;;  %v339_v50 = vpop.f32.mrb[7].mxu1 }
 0x1cc   :  { %1172 = vtanh.f32 %v337_v47  ;;  %v340_v51 = vadd.f32 %v891_v35, %v339_v50 }
 0x1cd   :  { %v1163_v52 = vpop.eup %1162  ;;  %1174 = vtanh.f32 %v348_v49 }
 0x1ce   :  { %v1165_v53 = vpop.eup %1164  ;;  %1176 = vtanh.f32 %v340_v51 }
 0x1cf   :  { %v1167_v54 = vpop.eup %1166 }
 0x1d0   :  { %v1169_v55 = vpop.eup %1168  ;;  %v1075_v56 = vpop.f32.mrb[8].mxu1  ;;  %v400_v57 = vpack.c.bf16 %v1167_v54, %v1163_v52 }
 0x1d1   :  { %v361_v58 = vadd.f32 %v1075_v56, %v891_v35  ;;  %v352_v59 = vpop.f32.mrb[9].mxu1  ;;  %v399_v60 = vpack.c.bf16 %v1169_v55, %v1165_v53 }
 0x1d2   :  { %v353_v61 = vadd.f32 %v891_v35, %v352_v59  ;;  %v1076_v62 = vpop.f32.mrb[10].mxu1 }
 0x1d3   :  { %1178 = vtanh.f32 %v361_v58  ;;  %v364_v63 = vadd.f32 %v1076_v62, %v891_v35  ;;  %v355_v0 = vpop.f32.mrb[11].mxu1  ;;  %1097 = vmatprep.mubr.bf16.mxu0 %v399_v60 }
 0x1d4   :  { %1180 = vtanh.f32 %v353_v61  ;;  %v356_v1 = vadd.f32 %v891_v35, %v355_v0  ;;  %1098 = vmatmul.mubr.bf16.vlgmr.msra.gmra.mrb[16].mxu0 %v400_v57 }
 0x1d5   :  { %v1171_v2 = vpop.eup %1170  ;;  %1182 = vtanh.f32 %v364_v63 }
 0x1d6   :  { %v1173_v3 = vpop.eup %1172  ;;  %1184 = vtanh.f32 %v356_v1 }
 0x1d7   :  { %v1175_v4 = vpop.eup %1174 }
 0x1d8   :  { %v1177_v5 = vpop.eup %1176  ;;  %v1079_v6 = vpop.f32.mrb[12].mxu1  ;;  %v402_v7 = vpack.c.bf16 %v1175_v4, %v1171_v2 }
 0x1d9   :  { %v377_v8 = vadd.f32 %v1079_v6, %v891_v35  ;;  %v368_v9 = vpop.f32.mrb[13].mxu1  ;;  %v401_v10 = vpack.c.bf16 %v1177_v5, %v1173_v3 }
 0x1da   :  { %v369_v11 = vadd.f32 %v891_v35, %v368_v9  ;;  %v1080_v12 = vpop.f32.mrb[14].mxu1 }
 0x1db   :  { %1186 = vtanh.f32 %v377_v8  ;;  %v380_v13 = vadd.f32 %v1080_v12, %v891_v35  ;;  %v371_v14 = vpop.f32.mrb[15].mxu1  ;;  %1101 = vmatprep.mubr.bf16.mxu0 %v401_v10 }
 0x1dc   :  { %1188 = vtanh.f32 %v369_v11  ;;  %v372_v15 = vadd.f32 %v891_v35, %v371_v14  ;;  %1102 = vmatmul.mubr.bf16.gmra.mrb[20].mxu0 %v402_v7 }
 0x1dd   :  { %v1179_v16 = vpop.eup %1178  ;;  %1190 = vtanh.f32 %v380_v13 }
 0x1de   :  { %v1181_v17 = vpop.eup %1180  ;;  %1192 = vtanh.f32 %v372_v15 }
 0x1df   :  { %v1183_v18 = vpop.eup %1182 }
 0x1e0   :  { %v1185_v19 = vpop.eup %1184  ;;  %v404_v20 = vpack.c.bf16 %v1183_v18, %v1179_v16 }
 0x1e1   :  { %v403_v21 = vpack.c.bf16 %v1185_v19, %v1181_v17 }
 0x1e3   :  { %1105 = vmatprep.mubr.bf16.mxu0 %v403_v21 }
 0x1e4   :  { %1106 = vmatmul.mubr.bf16.gmra.mrb[24].mxu0 %v404_v20 }
 0x1e5   :  { %v1187_v22 = vpop.eup %1186 }
 0x1e6   :  { %v1189_v23 = vpop.eup %1188 }
 0x1e7   :  { %v1191_v24 = vpop.eup %1190 }
 0x1e8   :  { %v1193_v25 = vpop.eup %1192  ;;  %v406_v26 = vpack.c.bf16 %v1191_v24, %v1187_v22 }
 0x1e9   :  { %v405_v27 = vpack.c.bf16 %v1193_v25, %v1189_v23 }
 0x1eb   :  { %1109 = vmatprep.mubr.bf16.mxu0 %v405_v27 }
 0x1ec   :  { %1110 = vmatmul.mubr.bf16.gmra.mrb[28].mxu0 %v406_v26 }
 0x2a7   :  { %v1099_v29 = vpop.f32.mrb[16].mxu0 }
 0x2a8   :  { %v521_v30 = vadd.f32 %v1099_v29, %v900_v28  ;;  %v512_v31 = vpop.f32.mrb[17].mxu0 }
 0x2a9   :  { %v513_v32 = vadd.f32 %v900_v28, %v512_v31  ;;  %v1100_v33 = vpop.f32.mrb[18].mxu0 }
 0x2aa   :  { %579 = vadd.xlane.f32.xlu1 %v521_v30  ;;  %v515_v34 = vpop.f32.mrb[19].mxu0  ;;  %v524_v35 = vadd.f32 %v1100_v33, %v900_v28 }
 0x2ab   :  { %575 = vadd.xlane.f32.xlu0 %v513_v32  ;;  %v516_v36 = vadd.f32 %v900_v28, %v515_v34 }
 0x2ae   :  { %581 = vadd.xlane.f32.xlu1 %v524_v35 }
 0x2af   :  { %v1103_v37 = vpop.f32.mrb[20].mxu0  ;;  %577 = vadd.xlane.f32.xlu0 %v516_v36 }
 0x2b0   :  { %v537_v38 = vadd.f32 %v1103_v37, %v900_v28  ;;  %v528_v39 = vpop.f32.mrb[21].mxu0 }
 0x2b1   :  { %v1104_v40 = vpop.f32.mrb[22].mxu0  ;;  %v529_v43 = vadd.f32 %v900_v28, %v528_v39 }
 0x2b2   :  { %v540_v41 = vadd.f32 %v1104_v40, %v900_v28  ;;  %v531_v42 = vpop.f32.mrb[23].mxu0 }
 0x2b3   :  { %587 = vadd.xlane.f32.xlu0 %v537_v38  ;;  %v532_v44 = vadd.f32 %v900_v28, %v531_v42 }
 0x2b4   :  { %589 = vadd.xlane.f32.xlu1 %v540_v41 }
 0x2b7   :  { %v1107_v45 = vpop.f32.mrb[24].mxu0  ;;  %583 = vadd.xlane.f32.xlu0 %v529_v43 }
 0x2b8   :  { %v1392_v46 = vadd.f32 %v1107_v45, %v900_v28  ;;  %v544_v47 = vpop.f32.mrb[25].mxu0  ;;  %585 = vadd.xlane.f32.xlu1 %v532_v44 }
 0x2b9   :  { %v1108_v48 = vpop.f32.mrb[26].mxu0  ;;  %v1398_v51 = vadd.f32 %v900_v28, %v544_v47 }
 0x2ba   :  { %v1394_v49 = vadd.f32 %v1108_v48, %v900_v28  ;;  %v547_v50 = vpop.f32.mrb[27].mxu0 }
 0x2bb   :  { %595 = vadd.xlane.f32.xlu0 %v1392_v46  ;;  %v1400_v52 = vadd.f32 %v900_v28, %v547_v50 }
 0x2bc   :  { %597 = vadd.xlane.f32.xlu1 %v1394_v49 }
 0x2bf   :  { %v1111_v53 = vpop.f32.mrb[28].mxu0  ;;  %591 = vadd.xlane.f32.xlu0 %v1398_v51 }
 0x2c0   :  { %v560_v54 = vpop.f32.mrb[29].mxu0  ;;  %593 = vadd.xlane.f32.xlu1 %v1400_v52  ;;  %v1409_v59 = vadd.f32 %v1111_v53, %v900_v28 }
 0x2c1   :  { %v1404_v55 = vadd.f32 %v900_v28, %v560_v54  ;;  %v1112_v56 = vpop.f32.mrb[30].mxu0 }
 0x2c2   :  { %v563_v57 = vpop.f32.mrb[31].mxu0  ;;  %v1412_v60 = vadd.f32 %v1112_v56, %v900_v28 }
 0x2c3   :  { %v1406_v58 = vadd.f32 %v900_v28, %v563_v57  ;;  %599 = vadd.xlane.f32.xlu0 %v1404_v55 }
 0x2c5   :  { %601 = vadd.xlane.f32.xlu1 %v1406_v58 }
 0x2c7   :  { %603 = vadd.xlane.f32.xlu0 %v1409_v59 }
 0x2c9   :  { %605 = vadd.xlane.f32.xlu1 %v1412_v60 }
 0x337   :  { %v580_v61 = vpop.xlane.xlu1 %579 }
 0x338   :  { %v610_v62 = vmul.f32 0.0078125, %v580_v61  ;;  %v576_v63 = vpop.xlane.xlu0 %575 }
 0x339   :  { %v608_v0 = vmul.f32 0.0078125, %v576_v63 }
 0x33a   :  { %v1416_v1 = vsub.f32 %v521_v30, %v610_v62 }
 0x33b   :  { %v582_v2 = vpop.xlane.xlu1 %581  ;;  %v1418_v3 = vsub.f32 %v513_v32, %v608_v0 }
 0x33c   :  { %v611_v4 = vmul.f32 0.0078125, %v582_v2  ;;  %v578_v5 = vpop.xlane.xlu0 %577  ;;  %v642_v6 = vmul.f32 %v1416_v1, %v1416_v1 }
 0x33d   :  { %v609_v7 = vmul.f32 0.0078125, %v578_v5  ;;  %v640_v12 = vmul.f32 %v1418_v3, %v1418_v3 }
 0x33e   :  { %v1422_v8 = vsub.f32 %v524_v35, %v611_v4  ;;  %660 = vadd.xlane.f32.xlu0 %v642_v6 }
 0x33f   :  { %v1424_v9 = vsub.f32 %v516_v36, %v609_v7 }
 0x340   :  { %v588_v10 = vpop.xlane.xlu0 %587  ;;  %v643_v11 = vmul.f32 %v1422_v8, %v1422_v8 }
 0x341   :  { %v614_v13 = vmul.f32 0.0078125, %v588_v10  ;;  %v590_v14 = vpop.xlane.xlu1 %589  ;;  %v641_v19 = vmul.f32 %v1424_v9, %v1424_v9 }
 0x342   :  { %v615_v15 = vmul.f32 0.0078125, %v590_v14  ;;  %662 = vadd.xlane.f32.xlu1 %v643_v11  ;;  %656 = vadd.xlane.f32.xlu0 %v640_v12 }
 0x343   :  { %v1430_v16 = vsub.f32 %v537_v38, %v614_v13 }
 0x344   :  { %v1432_v17 = vsub.f32 %v540_v41, %v615_v15  ;;  %v584_v18 = vpop.xlane.xlu0 %583 }
 0x345   :  { %v612_v20 = vmul.f32 0.0078125, %v584_v18  ;;  %v586_v21 = vpop.xlane.xlu1 %585  ;;  %v646_v22 = vmul.f32 %v1430_v16, %v1430_v16 }
 0x346   :  { %v613_v23 = vmul.f32 0.0078125, %v586_v21  ;;  %658 = vadd.xlane.f32.xlu1 %v641_v19  ;;  %v647_v27 = vmul.f32 %v1432_v17, %v1432_v17 }
 0x347   :  { %v1438_v24 = vsub.f32 %v529_v43, %v612_v20  ;;  %668 = vadd.xlane.f32.xlu0 %v646_v22 }
 0x348   :  { %v1440_v25 = vsub.f32 %v532_v44, %v613_v23  ;;  %v596_v26 = vpop.xlane.xlu0 %595 }
 0x349   :  { %v618_v28 = vmul.f32 0.0078125, %v596_v26  ;;  %v598_v29 = vpop.xlane.xlu1 %597  ;;  %v644_v30 = vmul.f32 %v1438_v24, %v1438_v24  ;;  %v1491_v26 = vld [vmem:[%s1577_s7] ss:$0 sm:$0xff] }
 0x34a   :  { %v619_v31 = vmul.f32 0.0078125, %v598_v29  ;;  %670 = vadd.xlane.f32.xlu1 %v647_v27  ;;  %v645_v35 = vmul.f32 %v1440_v25, %v1440_v25 }
 0x34b   :  { %v1447_v32 = vsub.f32 %v1392_v46, %v618_v28  ;;  %664 = vadd.xlane.f32.xlu0 %v644_v30 }
 0x34c   :  { %v1450_v33 = vsub.f32 %v1394_v49, %v619_v31  ;;  %v592_v34 = vpop.xlane.xlu0 %591 }
 0x34d   :  { %v616_v36 = vmul.f32 0.0078125, %v592_v34  ;;  %v594_v37 = vpop.xlane.xlu1 %593  ;;  %v650_v38 = vmul.f32 %v1447_v32, %v1447_v32 }
 0x34e   :  { %v617_v39 = vmul.f32 0.0078125, %v594_v37  ;;  %666 = vadd.xlane.f32.xlu1 %v645_v35  ;;  %v651_v43 = vmul.f32 %v1450_v33, %v1450_v33 }
 0x34f   :  { %v1457_v40 = vsub.f32 %v1398_v51, %v616_v36  ;;  %676 = vadd.xlane.f32.xlu0 %v650_v38 }
 0x350   :  { %v1460_v41 = vsub.f32 %v1400_v52, %v617_v39  ;;  %v600_v42 = vpop.xlane.xlu0 %599  ;;  %v1498_v39 = vld [vmem:[%s1578_s8] ss:$0 sm:$0xff] }
 0x351   :  { %v620_v44 = vmul.f32 0.0078125, %v600_v42  ;;  %v648_v45 = vmul.f32 %v1457_v40, %v1457_v40 }
 0x352   :  { %v602_v46 = vpop.xlane.xlu1 %601  ;;  %678 = vadd.xlane.f32.xlu1 %v651_v43  ;;  %v649_v50 = vmul.f32 %v1460_v41, %v1460_v41 }
 0x353   :  { %v1467_v47 = vsub.f32 %v1404_v55, %v620_v44  ;;  %v621_v48 = vmul.f32 0.0078125, %v602_v46  ;;  %672 = vadd.xlane.f32.xlu0 %v648_v45 }
 0x354   :  { %v604_v49 = vpop.xlane.xlu0 %603 }
 0x355   :  { %v1472_v51 = vsub.f32 %v1406_v58, %v621_v48  ;;  %v622_v52 = vmul.f32 0.0078125, %v604_v49  ;;  %v652_v53 = vmul.f32 %v1467_v47, %v1467_v47 }
 0x356   :  { %v606_v54 = vpop.xlane.xlu1 %605  ;;  %674 = vadd.xlane.f32.xlu1 %v649_v50 }
 0x357   :  { %v1477_v56 = vsub.f32 %v1409_v59, %v622_v52  ;;  %v623_v55 = vmul.f32 0.0078125, %v606_v54  ;;  %680 = vadd.xlane.f32.xlu0 %v652_v53  ;;  %v653_v57 = vmul.f32 %v1472_v51, %v1472_v51 }
 0x359   :  { %v1482_v61 = vsub.f32 %v1412_v60, %v623_v55  ;;  %v654_v58 = vmul.f32 %v1477_v56, %v1477_v56 }
 0x35a   :  { %682 = vadd.xlane.f32.xlu1 %v653_v57 }
 0x35b   :  { %684 = vadd.xlane.f32.xlu0 %v654_v58  ;;  %v655_v62 = vmul.f32 %v1482_v61, %v1482_v61 }
 0x35e   :  { %686 = vadd.xlane.f32.xlu1 %v655_v62 }
 0x3cb   :  { %v661_v63 = vpop.xlane.xlu0 %660 }
 0x3cc   :  { %v690_v59 = vmul.f32 0.0078125, %v661_v63 }
 0x3ce   :  { %v706_v0 = vadd.f32 1e-05, %v690_v59 }
 0x3cf   :  { %v663_v2 = vpop.xlane.xlu1 %662  ;;  %v657_v4 = vpop.xlane.xlu0 %656 }
 0x3d0   :  { %1194 = vrsqrt.f32 %v706_v0  ;;  %v691_v5 = vmul.f32 0.0078125, %v663_v2  ;;  %v688_v6 = vmul.f32 0.0078125, %v657_v4 }
 0x3d2   :  { %v707_v7 = vadd.f32 1e-05, %v691_v5  ;;  %v704_v60 = vadd.f32 1e-05, %v688_v6 }
 0x3d3   :  { %v659_v10 = vpop.xlane.xlu1 %658 }
 0x3d4   :  { %1196 = vrsqrt.f32 %v707_v7  ;;  %v689_v11 = vmul.f32 0.0078125, %v659_v10  ;;  %v669_v12 = vpop.xlane.xlu0 %668 }
 0x3d5   :  { %1198 = vrsqrt.f32 %v704_v60  ;;  %v694_v13 = vmul.f32 0.0078125, %v669_v12 }
 0x3d6   :  { %v705_v14 = vadd.f32 1e-05, %v689_v11 }
 0x3d7   :  { %v710_v15 = vadd.f32 1e-05, %v694_v13  ;;  %v671_v18 = vpop.xlane.xlu1 %670 }
 0x3d8   :  { %1200 = vrsqrt.f32 %v705_v14  ;;  %v695_v19 = vmul.f32 0.0078125, %v671_v18  ;;  %v665_v20 = vpop.xlane.xlu0 %664 }
 0x3d9   :  { %1202 = vrsqrt.f32 %v710_v15  ;;  %v692_v21 = vmul.f32 0.0078125, %v665_v20 }
 0x3da   :  { %v1195_v22 = vpop.eup %1194  ;;  %v711_v23 = vadd.f32 1e-05, %v695_v19 }
 0x3db   :  { %v738_v27 = vmul.f32 %v1195_v22, %v1416_v1  ;;  %v708_v28 = vadd.f32 1e-05, %v692_v21  ;;  %v667_v29 = vpop.xlane.xlu1 %666 }
 0x3dc   :  { %1204 = vrsqrt.f32 %v711_v23  ;;  %v693_v30 = vmul.f32 0.0078125, %v667_v29  ;;  %v677_v31 = vpop.xlane.xlu0 %676 }
 0x3dd   :  { %1206 = vrsqrt.f32 %v708_v28  ;;  %v698_v34 = vmul.f32 0.0078125, %v677_v31  ;;  %v761_v36 = vmul.f32 %v1491_v26, %v738_v27 }
 0x3de   :  { %v1197_v35 = vpop.eup %1196  ;;  %v709_v37 = vadd.f32 1e-05, %v693_v30 }
 0x3df   :  { %v1199_v38 = vpop.eup %1198  ;;  %v739_v42 = vmul.f32 %v1197_v35, %v1422_v8  ;;  %v714_v1 = vadd.f32 1e-05, %v698_v34  ;;  %v679_v43 = vpop.xlane.xlu1 %678  ;;  %v784_v52 = vadd.f32 %v1498_v39, %v761_v36 }
 0x3e0   :  { %v736_v44 = vmul.f32 %v1199_v38, %v1418_v3  ;;  %1208 = vrsqrt.f32 %v709_v37  ;;  %v699_v45 = vmul.f32 0.0078125, %v679_v43  ;;  %v673_v46 = vpop.xlane.xlu0 %672 }
 0x3e1   :  { %v762_v48 = vmul.f32 %v1491_v26, %v739_v42  ;;  %1210 = vrsqrt.f32 %v714_v1  ;;  %v696_v49 = vmul.f32 0.0078125, %v673_v46 }
 0x3e2   :  { %v1201_v50 = vpop.eup %1200  ;;  %v715_v53 = vadd.f32 1e-05, %v699_v45  ;;  %v759_v8 = vmul.f32 %v1491_v26, %v736_v44 }
 0x3e3   :  { %v1203_v54 = vpop.eup %1202  ;;  %v785_v55 = vadd.f32 %v1498_v39, %v762_v48  ;;  %v737_v57 = vmul.f32 %v1201_v50, %v1424_v9  ;;  %v712_v58 = vadd.f32 1e-05, %v696_v49  ;;  %v675_v3 = vpop.xlane.xlu1 %674 }
 0x3e4   :  { %v742_v62 = vmul.f32 %v1203_v54, %v1430_v16  ;;  %1212 = vrsqrt.f32 %v715_v53  ;;  %v697_v63 = vmul.f32 0.0078125, %v675_v3  ;;  %v681_v59 = vpop.xlane.xlu0 %680  ;;  %v782_v9 = vadd.f32 %v1498_v39, %v759_v8 }
 0x3e5   :  { %v951_v0 = vpack.c.bf16 %v785_v55, %v784_v52  ;;  %v760_v2 = vmul.f32 %v1491_v26, %v737_v57  ;;  %1214 = vrsqrt.f32 %v712_v58  ;;  %v700_v4 = vmul.f32 0.0078125, %v681_v59 }
 0x3e6   :  { %v1205_v5 = vpop.eup %1204  ;;  %v765_v6 = vmul.f32 %v1491_v26, %v742_v62  ;;  %v713_v7 = vadd.f32 1e-05, %v697_v63 }
 0x3e7   :  { %v1207_v60 = vpop.eup %1206  ;;  %983 = vst [vmem:[%s1579_s9 + $0x8] sm:$0xff] %v951_v0   ;;  %v783_v16 = vadd.f32 %v1498_v39, %v760_v2  ;;  %v743_v10 = vmul.f32 %v1205_v5, %v1432_v17  ;;  %v716_v11 = vadd.f32 1e-05, %v700_v4  ;;  %v683_v12 = vpop.xlane.xlu1 %682 }
 0x3e8   :  { %v740_v13 = vmul.f32 %v1207_v60, %v1438_v24  ;;  %1216 = vrsqrt.f32 %v713_v7  ;;  %v701_v14 = vmul.f32 0.0078125, %v683_v12  ;;  %v685_v15 = vpop.xlane.xlu0 %684  ;;  %v788_v22 = vadd.f32 %v1498_v39, %v765_v6 }
 0x3e9   :  { %v946_v18 = vpack.c.bf16 %v783_v16, %v782_v9  ;;  %v766_v19 = vmul.f32 %v1491_v26, %v743_v10  ;;  %1218 = vrsqrt.f32 %v716_v11  ;;  %v702_v20 = vmul.f32 0.0078125, %v685_v15 }
 0x3ea   :  { %v1209_v21 = vpop.eup %1208  ;;  %v717_v23 = vadd.f32 1e-05, %v701_v14  ;;  %v763_v24 = vmul.f32 %v1491_v26, %v740_v13 }
 0x3eb   :  { %v1211_v27 = vpop.eup %1210  ;;  %947 = vst [vmem:[%s1579_s9] sm:$0xff] %v946_v18   ;;  %v789_v17 = vadd.f32 %v1498_v39, %v766_v19  ;;  %v741_v28 = vmul.f32 %v1209_v21, %v1440_v25  ;;  %v718_v29 = vadd.f32 1e-05, %v702_v20  ;;  %v687_v30 = vpop.xlane.xlu1 %686 }
 0x3ec   :  { %v746_v31 = vmul.f32 %v1211_v27, %v1447_v32  ;;  %1220 = vrsqrt.f32 %v717_v23  ;;  %v703_v34 = vmul.f32 0.0078125, %v687_v30  ;;  %v786_v1 = vadd.f32 %v1498_v39, %v763_v24 }
 0x3ed   :  { %v961_v35 = vpack.c.bf16 %v789_v17, %v788_v22  ;;  %v764_v36 = vmul.f32 %v1491_v26, %v741_v28  ;;  %1222 = vrsqrt.f32 %v718_v29 }
 0x3ee   :  { %v1213_v37 = vpop.eup %1212  ;;  %v719_v38 = vadd.f32 1e-05, %v703_v34  ;;  %v769_v43 = vmul.f32 %v1491_v26, %v746_v31 }
 0x3ef   :  { %v1215_v42 = vpop.eup %1214  ;;  %985 = vst [vmem:[%s1579_s9 + $0x18] sm:$0xff] %v961_v35   ;;  %v787_v25 = vadd.f32 %v1498_v39, %v764_v36  ;;  %v747_v32 = vmul.f32 %v1213_v37, %v1450_v33 }
 0x3f0   :  { %v744_v44 = vmul.f32 %v1215_v42, %v1457_v40  ;;  %1224 = vrsqrt.f32 %v719_v38  ;;  %v792_v50 = vadd.f32 %v1498_v39, %v769_v43 }
 0x3f1   :  { %v956_v45 = vpack.c.bf16 %v787_v25, %v786_v1  ;;  %v770_v46 = vmul.f32 %v1491_v26, %v747_v32 }
 0x3f2   :  { %v1217_v48 = vpop.eup %1216  ;;  %v767_v53 = vmul.f32 %v1491_v26, %v744_v44 }
 0x3f3   :  { %v1219_v49 = vpop.eup %1218  ;;  %984 = vst [vmem:[%s1579_s9 + $0x10] sm:$0xff] %v956_v45   ;;  %v793_v52 = vadd.f32 %v1498_v39, %v770_v46  ;;  %v745_v33 = vmul.f32 %v1217_v48, %v1460_v41 }
 0x3f4   :  { %v748_v40 = vmul.f32 %v1219_v49, %v1467_v47  ;;  %v790_v58 = vadd.f32 %v1498_v39, %v767_v53 }
 0x3f5   :  { %v971_v54 = vpack.c.bf16 %v793_v52, %v792_v50  ;;  %v768_v55 = vmul.f32 %v1491_v26, %v745_v33 }
 0x3f6   :  { %v1221_v8 = vpop.eup %1220  ;;  %v771_v62 = vmul.f32 %v1491_v26, %v748_v40 }
 0x3f7   :  { %v1223_v57 = vpop.eup %1222  ;;  %987 = vst [vmem:[%s1579_s9 + $0x28] sm:$0xff] %v971_v54   ;;  %v791_v3 = vadd.f32 %v1498_v39, %v768_v55  ;;  %v749_v63 = vmul.f32 %v1221_v8, %v1472_v51 }
 0x3f8   :  { %v750_v41 = vmul.f32 %v1223_v57, %v1477_v56  ;;  %v794_v2 = vadd.f32 %v1498_v39, %v771_v62 }
 0x3f9   :  { %v966_v47 = vpack.c.bf16 %v791_v3, %v790_v58  ;;  %v772_v59 = vmul.f32 %v1491_v26, %v749_v63 }
 0x3fa   :  { %v1225_v0 = vpop.eup %1224  ;;  %v773_v5 = vmul.f32 %v1491_v26, %v750_v41 }
 0x3fb   :  { %986 = vst [vmem:[%s1579_s9 + $0x20] sm:$0xff] %v966_v47   ;;  %v795_v4 = vadd.f32 %v1498_v39, %v772_v59  ;;  %v751_v6 = vmul.f32 %v1225_v0, %v1482_v61 }
 0x3fc   :  { %v796_v56 = vadd.f32 %v1498_v39, %v773_v5 }
 0x3fd   :  { %v976_v7 = vpack.c.bf16 %v795_v4, %v794_v2  ;;  %v774_v51 = vmul.f32 %v1491_v26, %v751_v6 }
 0x3ff   :  { %988 = vst [vmem:[%s1579_s9 + $0x30] sm:$0xff] %v976_v7   ;;  %v797_v60 = vadd.f32 %v1498_v39, %v774_v51 }
 0x401   :  { %v981_v9 = vpack.c.bf16 %v797_v60, %v796_v56 }
 0x403   :  { %989 = vst [vmem:[%s1579_s9 + $0x38] sm:$0xff] %v981_v9  }

// kernel: net_forward.9
= control target key start
LH: loop header
LB: loop body
LE: loop exit
PB: predicated region body
PF: predicated region fallthrough
CT: control target
= control target key end

     0   :  { %vm90_vm0 = vcmask 1040384   ;;  %vm91_vm1 = vcmask 1041408   ;;  %v1229_v1 = vmov 65535   ;;  %vm65_vm2 = vcmask 23552   ;;  %s1574_s1 = inlined_call_operand.vmem [shape: bf16[3,128], index: 1, kind: input, shape index: {}]   ;;  %s1575_s0 = inlined_call_operand.vmem [shape: f32[128,3], index: 0, kind: input, shape index: {}]   ;;  %s1576_s3 = inlined_call_operand.vmem [shape: bf16[128,128], index: 3, kind: input, shape index: {}]   ;;  %s1577_s5 = inlined_call_operand.vmem [shape: bf16[128,128], index: 5, kind: input, shape index: {}]   ;;  %s1578_s2 = inlined_call_operand.vmem [shape: f32[1,128], index: 2, kind: input, shape index: {}]   ;;  %s1579_s4 = inlined_call_operand.vmem [shape: f32[1,128], index: 4, kind: input, shape index: {}]   ;;  %s1580_s6 = inlined_call_operand.vmem [shape: f32[1,128], index: 6, kind: input, shape index: {}]   ;;  %s1581_s7 = inlined_call_operand.vmem [shape: f32[1,128], index: 7, kind: input, shape index: {}]   ;;  %s1582_s8 = inlined_call_operand.vmem [shape: f32[1,128], index: 8, kind: input, shape index: {}]   ;;  %s1583_s9 = inlined_call_operand.vmem [shape: bf16[128,128], index: 9, kind: output, shape index: {}]  }
   0x1   :  { %v57_v0 = vld [vmem:[%s1574_s1] sm:$0x3]  ;;  %v92_v2 = vsel %vm90_vm0, 4294967295, %v1229_v1  ;;  %v34_v4 = vld [vmem:[%s1575_s0 + $0x8] sm:$0xff]  ;;  %v35_v7 = vld [vmem:[%s1575_s0 + $0x10] sm:$0xff] }
   0x2   :  { %v33_v3 = vld [vmem:[%s1575_s0] sm:$0xff]  ;;  %v93_v5 = vsel %vm91_vm1, %v92_v2, 0  ;;  %v36_v8 = vld [vmem:[%s1575_s0 + $0x18] sm:$0xff]  ;;  %v38_v11 = vld [vmem:[%s1575_s0 + $0x28] sm:$0xff] }
   0x3   :  { %v49_v6 = vpack.c.bf16 %v34_v4, %v33_v3  ;;  %v95_v9 = vand.u32 %v93_v5, %v57_v0  ;;  %v37_v10 = vld [vmem:[%s1575_s0 + $0x20] sm:$0xff]  ;;  %v50_v12 = vpack.c.bf16 %v36_v8, %v35_v7  ;;  %v39_v15 = vld [vmem:[%s1575_s0 + $0x30] sm:$0xff]  ;;  %v40_v16 = vld [vmem:[%s1575_s0 + $0x38] sm:$0xff] }
   0x4   :  { %v51_v13 = vpack.c.bf16 %v38_v11, %v37_v10  ;;  %v1117_v14 = vld [vmem:[%s1576_s3] sm:$0xff]   ;;  %v1118_v17 = vld [vmem:[%s1576_s3 + $0x8] sm:$0xff]   ;;  %v1119_v20 = vld [vmem:[%s1576_s3 + $0x10] sm:$0xff]   ;;  %v52_v21 = vpack.c.bf16 %v40_v16, %v39_v15 }
   0x5   :  { %1036 = vmatprep.mubr.msk.bf16.mxu0 %vm65_vm2, %v49_v6  ;;  %1034 = vmatprep.subr.bf16.mxu0 %v95_v9  ;;  %v41_v18 = vld [vmem:[%s1575_s0 + $0x40] sm:$0xff]  ;;  %v42_v19 = vld [vmem:[%s1575_s0 + $0x48] sm:$0xff]  ;;  %v43_v23 = vld [vmem:[%s1575_s0 + $0x50] sm:$0xff] }
   0x6   :  { %1035 = vmatpush3.bf16.msra.mxu0 %v95_v9  ;;  %1052 = vmatprep.subr.bf16.mxu1 %v1117_v14  ;;  %v53_v22 = vpack.c.bf16 %v42_v19, %v41_v18  ;;  %v44_v24 = vld [vmem:[%s1575_s0 + $0x58] sm:$0xff]  ;;  %v45_v25 = vld [vmem:[%s1575_s0 + $0x60] sm:$0xff]  ;;  %v46_v26 = vld [vmem:[%s1575_s0 + $0x68] sm:$0xff] }
   0x7   :  { %1053 = vmatpush3.bf16.msra.mxu1 %v1117_v14  ;;  %v54_v27 = vpack.c.bf16 %v44_v24, %v43_v23  ;;  %v55_v28 = vpack.c.bf16 %v46_v26, %v45_v25  ;;  %v47_v29 = vld [vmem:[%s1575_s0 + $0x70] sm:$0xff]  ;;  %v48_v30 = vld [vmem:[%s1575_s0 + $0x78] sm:$0xff]  ;;  %v1121_v33 = vld [vmem:[%s1576_s3 + $0x20] sm:$0xff]  }
   0x8   :  { %1054 = vmatprep.subr.bf16.mxu1 %v1118_v17  ;;  %v56_v31 = vpack.c.bf16 %v48_v30, %v47_v29  ;;  %v1120_v32 = vld [vmem:[%s1576_s3 + $0x18] sm:$0xff]   ;;  %v1122_v34 = vld [vmem:[%s1576_s3 + $0x28] sm:$0xff]   ;;  %v1123_v35 = vld [vmem:[%s1576_s3 + $0x30] sm:$0xff]  }
   0x9   :  { %1037 = vmatmul.mubr.msk.bf16.vlgmr.msra.gmra.mrb[0].mxu0 %vm65_vm2, %v50_v12  ;;  %v1124_v36 = vld [vmem:[%s1576_s3 + $0x38] sm:$0xff]   ;;  %v1125_v37 = vld [vmem:[%s1577_s5] sm:$0xff]   ;;  %v1126_v38 = vld [vmem:[%s1577_s5 + $0x8] sm:$0xff]  }
   0xa   :  { %1040 = vmatprep.mubr.msk.bf16.mxu0 %vm65_vm2, %v51_v13  ;;  %1084 = vmatprep.subr.bf16.mxu0 %v1125_v37  ;;  %v1127_v39 = vld [vmem:[%s1577_s5 + $0x10] sm:$0xff]   ;;  %v1128_v40 = vld [vmem:[%s1577_s5 + $0x18] sm:$0xff]   ;;  %v885_v41 = vld [vmem:[%s1578_s2] ss:$0 sm:$0xff] }
   0xb   :  { %1055 = vmatpush3.bf16.msra.mxu1 %v1118_v17  ;;  %1085 = vmatpush3.bf16.msra.mxu0 %v1125_v37  ;;  %v1132_v37 = vld [vmem:[%s1577_s5 + $0x38] sm:$0xff]  }
   0xc   :  { %1056 = vmatprep.subr.bf16.mxu1 %v1119_v20  ;;  %1086 = vmatprep.subr.bf16.mxu0 %v1126_v38 }
   0xf   :  { %1057 = vmatpush3.bf16.msra.mxu1 %v1119_v20  ;;  %1087 = vmatpush3.bf16.msra.mxu0 %v1126_v38  ;;  %v894_v38 = vld [vmem:[%s1579_s4] ss:$0 sm:$0xff] }
  0x10   :  { %1058 = vmatprep.subr.bf16.mxu1 %v1120_v32  ;;  %1088 = vmatprep.subr.bf16.mxu0 %v1127_v39 }
  0x11   :  { %1041 = vmatmul.mubr.msk.bf16.gmra.mrb[4].mxu0 %vm65_vm2, %v52_v21 }
  0x12   :  { %1044 = vmatprep.mubr.msk.bf16.mxu0 %vm65_vm2, %v53_v22 }
  0x13   :  { %1059 = vmatpush3.bf16.msra.mxu1 %v1120_v32  ;;  %1089 = vmatpush3.bf16.msra.mxu0 %v1127_v39 }
  0x14   :  { %1060 = vmatprep.subr.bf16.mxu1 %v1121_v33  ;;  %1090 = vmatprep.subr.bf16.mxu0 %v1128_v40 }
  0x17   :  { %1061 = vmatpush3.bf16.msra.mxu1 %v1121_v33  ;;  %1091 = vmatpush3.bf16.msra.mxu0 %v1128_v40 }
  0x18   :  { %1062 = vmatprep.subr.bf16.mxu1 %v1122_v34 }
  0x19   :  { %1045 = vmatmul.mubr.msk.bf16.gmra.mrb[8].mxu0 %vm65_vm2, %v54_v27 }
  0x1a   :  { %1048 = vmatprep.mubr.msk.bf16.mxu0 %vm65_vm2, %v55_v28 }
  0x1b   :  { %1063 = vmatpush3.bf16.msra.mxu1 %v1122_v34  ;;  %v1129_v34 = vld [vmem:[%s1577_s5 + $0x20] sm:$0xff]  }
  0x1c   :  { %1064 = vmatprep.subr.bf16.mxu1 %v1123_v35  ;;  %1092 = vmatprep.subr.bf16.mxu0 %v1129_v34 }
  0x1d   :  { %1093 = vmatpush3.bf16.msra.mxu0 %v1129_v34 }
  0x1f   :  { %1065 = vmatpush3.bf16.msra.mxu1 %v1123_v35  ;;  %v1130_v35 = vld [vmem:[%s1577_s5 + $0x28] sm:$0xff]  }
  0x20   :  { %1066 = vmatprep.subr.bf16.mxu1 %v1124_v36  ;;  %1094 = vmatprep.subr.bf16.mxu0 %v1130_v35 }
  0x21   :  { %1049 = vmatmul.mubr.msk.bf16.gmra.mrb[12].mxu0 %vm65_vm2, %v56_v31 }
  0x22   :  { %1095 = vmatpush3.bf16.msra.mxu0 %v1130_v35 }
  0x23   :  { %1067 = vmatpush3.bf16.msra.mxu1 %v1124_v36  ;;  %v1131_v36 = vld [vmem:[%s1577_s5 + $0x30] sm:$0xff]  }
  0x24   :  { %1096 = vmatprep.subr.bf16.mxu0 %v1131_v36 }
  0x26   :  { %1097 = vmatpush3.bf16.msra.mxu0 %v1131_v36 }
  0x27   :  { %1098 = vmatprep.subr.bf16.mxu0 %v1132_v37 }
  0x2a   :  { %1099 = vmatpush3.bf16.msra.mxu0 %v1132_v37 }
  0xdc   :  { %v1038_v42 = vpop.f32.mrb[0].mxu0 }
  0xdd   :  { %v140_v43 = vadd.f32 %v1038_v42, %v885_v41  ;;  %v131_v44 = vpop.f32.mrb[1].mxu0 }
  0xde   :  { %v132_v45 = vadd.f32 %v885_v41, %v131_v44  ;;  %v1039_v46 = vpop.f32.mrb[2].mxu0 }
  0xdf   :  { %1133 = vtanh.f32 %v140_v43  ;;  %v143_v47 = vadd.f32 %v1039_v46, %v885_v41  ;;  %v134_v48 = vpop.f32.mrb[3].mxu0 }
  0xe0   :  { %1135 = vtanh.f32 %v132_v45  ;;  %v135_v49 = vadd.f32 %v885_v41, %v134_v48 }
  0xe1   :  { %1137 = vtanh.f32 %v143_v47 }
  0xe2   :  { %1139 = vtanh.f32 %v135_v49 }
  0xe4   :  { %v1042_v50 = vpop.f32.mrb[4].mxu0 }
  0xe5   :  { %v156_v51 = vadd.f32 %v1042_v50, %v885_v41  ;;  %v147_v52 = vpop.f32.mrb[5].mxu0 }
  0xe6   :  { %v148_v53 = vadd.f32 %v885_v41, %v147_v52  ;;  %v1043_v54 = vpop.f32.mrb[6].mxu0 }
  0xe7   :  { %1141 = vtanh.f32 %v156_v51  ;;  %v159_v55 = vadd.f32 %v1043_v54, %v885_v41  ;;  %v150_v56 = vpop.f32.mrb[7].mxu0 }
  0xe8   :  { %1143 = vtanh.f32 %v148_v53  ;;  %v151_v57 = vadd.f32 %v885_v41, %v150_v56 }
  0xe9   :  { %v1134_v58 = vpop.eup %1133  ;;  %1145 = vtanh.f32 %v159_v55 }
  0xea   :  { %v1136_v59 = vpop.eup %1135  ;;  %1147 = vtanh.f32 %v151_v57 }
  0xeb   :  { %v1138_v60 = vpop.eup %1137 }
  0xec   :  { %v1140_v61 = vpop.eup %1139  ;;  %v1046_v62 = vpop.f32.mrb[8].mxu0  ;;  %v211_v63 = vpack.c.bf16 %v1138_v60, %v1134_v58 }
  0xed   :  { %v172_v0 = vadd.f32 %v1046_v62, %v885_v41  ;;  %v163_v1 = vpop.f32.mrb[9].mxu0  ;;  %v210_v2 = vpack.c.bf16 %v1140_v61, %v1136_v59 }
  0xee   :  { %v164_v3 = vadd.f32 %v885_v41, %v163_v1  ;;  %v1047_v4 = vpop.f32.mrb[10].mxu0 }
  0xef   :  { %1149 = vtanh.f32 %v172_v0  ;;  %v175_v5 = vadd.f32 %v1047_v4, %v885_v41  ;;  %v166_v6 = vpop.f32.mrb[11].mxu0  ;;  %1068 = vmatprep.mubr.bf16.mxu1 %v210_v2 }
  0xf0   :  { %1151 = vtanh.f32 %v164_v3  ;;  %v167_v7 = vadd.f32 %v885_v41, %v166_v6  ;;  %1069 = vmatmul.mubr.bf16.vlgmr.msra.gmra.mrb[0].mxu1 %v211_v63 }
  0xf1   :  { %v1142_v8 = vpop.eup %1141  ;;  %1153 = vtanh.f32 %v175_v5 }
  0xf2   :  { %v1144_v9 = vpop.eup %1143  ;;  %1155 = vtanh.f32 %v167_v7 }
  0xf3   :  { %v1146_v10 = vpop.eup %1145 }
  0xf4   :  { %v1148_v11 = vpop.eup %1147  ;;  %v1050_v12 = vpop.f32.mrb[12].mxu0  ;;  %v213_v13 = vpack.c.bf16 %v1146_v10, %v1142_v8 }
  0xf5   :  { %v188_v14 = vadd.f32 %v1050_v12, %v885_v41  ;;  %v179_v15 = vpop.f32.mrb[13].mxu0  ;;  %v212_v16 = vpack.c.bf16 %v1148_v11, %v1144_v9 }
  0xf6   :  { %v180_v17 = vadd.f32 %v885_v41, %v179_v15  ;;  %v1051_v18 = vpop.f32.mrb[14].mxu0 }
  0xf7   :  { %1157 = vtanh.f32 %v188_v14  ;;  %v191_v19 = vadd.f32 %v1051_v18, %v885_v41  ;;  %v182_v20 = vpop.f32.mrb[15].mxu0  ;;  %1072 = vmatprep.mubr.bf16.mxu1 %v212_v16 }
  0xf8   :  { %1159 = vtanh.f32 %v180_v17  ;;  %v183_v21 = vadd.f32 %v885_v41, %v182_v20  ;;  %1073 = vmatmul.mubr.bf16.gmra.mrb[4].mxu1 %v213_v13 }
  0xf9   :  { %v1150_v22 = vpop.eup %1149  ;;  %1161 = vtanh.f32 %v191_v19 }
  0xfa   :  { %v1152_v23 = vpop.eup %1151  ;;  %1163 = vtanh.f32 %v183_v21 }
  0xfb   :  { %v1154_v24 = vpop.eup %1153 }
  0xfc   :  { %v1156_v25 = vpop.eup %1155  ;;  %v215_v26 = vpack.c.bf16 %v1154_v24, %v1150_v22 }
  0xfd   :  { %v214_v27 = vpack.c.bf16 %v1156_v25, %v1152_v23 }
  0xff   :  { %1076 = vmatprep.mubr.bf16.mxu1 %v214_v27 }
 0x100   :  { %1077 = vmatmul.mubr.bf16.gmra.mrb[8].mxu1 %v215_v26 }
 0x101   :  { %v1158_v28 = vpop.eup %1157 }
 0x102   :  { %v1160_v29 = vpop.eup %1159 }
 0x103   :  { %v1162_v30 = vpop.eup %1161 }
 0x104   :  { %v1164_v31 = vpop.eup %1163  ;;  %v217_v32 = vpack.c.bf16 %v1162_v30, %v1158_v28 }
 0x105   :  { %v216_v33 = vpack.c.bf16 %v1164_v31, %v1160_v29  ;;  %v903_v31 = vld [vmem:[%s1580_s6] ss:$0 sm:$0xff] }
 0x107   :  { %1080 = vmatprep.mubr.bf16.mxu1 %v216_v33 }
 0x108   :  { %1081 = vmatmul.mubr.bf16.gmra.mrb[12].mxu1 %v217_v32 }
 0x1c3   :  { %v1070_v39 = vpop.f32.mrb[0].mxu1 }
 0x1c4   :  { %v332_v40 = vadd.f32 %v1070_v39, %v894_v38  ;;  %v323_v41 = vpop.f32.mrb[1].mxu1 }
 0x1c5   :  { %v324_v42 = vadd.f32 %v894_v38, %v323_v41  ;;  %v1071_v43 = vpop.f32.mrb[2].mxu1 }
 0x1c6   :  { %1165 = vtanh.f32 %v332_v40  ;;  %v335_v44 = vadd.f32 %v1071_v43, %v894_v38  ;;  %v326_v45 = vpop.f32.mrb[3].mxu1 }
 0x1c7   :  { %1167 = vtanh.f32 %v324_v42  ;;  %v327_v46 = vadd.f32 %v894_v38, %v326_v45 }
 0x1c8   :  { %1169 = vtanh.f32 %v335_v44 }
 0x1c9   :  { %1171 = vtanh.f32 %v327_v46 }
 0x1cb   :  { %v1074_v47 = vpop.f32.mrb[4].mxu1 }
 0x1cc   :  { %v348_v48 = vadd.f32 %v1074_v47, %v894_v38  ;;  %v339_v49 = vpop.f32.mrb[5].mxu1 }
 0x1cd   :  { %v340_v50 = vadd.f32 %v894_v38, %v339_v49  ;;  %v1075_v51 = vpop.f32.mrb[6].mxu1 }
 0x1ce   :  { %1173 = vtanh.f32 %v348_v48  ;;  %v351_v52 = vadd.f32 %v1075_v51, %v894_v38  ;;  %v342_v53 = vpop.f32.mrb[7].mxu1 }
 0x1cf   :  { %1175 = vtanh.f32 %v340_v50  ;;  %v343_v54 = vadd.f32 %v894_v38, %v342_v53 }
 0x1d0   :  { %v1166_v55 = vpop.eup %1165  ;;  %1177 = vtanh.f32 %v351_v52 }
 0x1d1   :  { %v1168_v56 = vpop.eup %1167  ;;  %1179 = vtanh.f32 %v343_v54 }
 0x1d2   :  { %v1170_v57 = vpop.eup %1169 }
 0x1d3   :  { %v1172_v58 = vpop.eup %1171  ;;  %v1078_v59 = vpop.f32.mrb[8].mxu1  ;;  %v403_v60 = vpack.c.bf16 %v1170_v57, %v1166_v55 }
 0x1d4   :  { %v364_v61 = vadd.f32 %v1078_v59, %v894_v38  ;;  %v355_v62 = vpop.f32.mrb[9].mxu1  ;;  %v402_v63 = vpack.c.bf16 %v1172_v58, %v1168_v56 }
 0x1d5   :  { %v356_v0 = vadd.f32 %v894_v38, %v355_v62  ;;  %v1079_v1 = vpop.f32.mrb[10].mxu1 }
 0x1d6   :  { %1181 = vtanh.f32 %v364_v61  ;;  %v367_v2 = vadd.f32 %v1079_v1, %v894_v38  ;;  %v358_v3 = vpop.f32.mrb[11].mxu1  ;;  %1100 = vmatprep.mubr.bf16.mxu0 %v402_v63 }
 0x1d7   :  { %1183 = vtanh.f32 %v356_v0  ;;  %v359_v4 = vadd.f32 %v894_v38, %v358_v3  ;;  %1101 = vmatmul.mubr.bf16.vlgmr.msra.gmra.mrb[16].mxu0 %v403_v60 }
 0x1d8   :  { %v1174_v5 = vpop.eup %1173  ;;  %1185 = vtanh.f32 %v367_v2 }
 0x1d9   :  { %v1176_v6 = vpop.eup %1175  ;;  %1187 = vtanh.f32 %v359_v4 }
 0x1da   :  { %v1178_v7 = vpop.eup %1177 }
 0x1db   :  { %v1180_v8 = vpop.eup %1179  ;;  %v1082_v9 = vpop.f32.mrb[12].mxu1  ;;  %v405_v10 = vpack.c.bf16 %v1178_v7, %v1174_v5 }
 0x1dc   :  { %v380_v11 = vadd.f32 %v1082_v9, %v894_v38  ;;  %v371_v12 = vpop.f32.mrb[13].mxu1  ;;  %v404_v13 = vpack.c.bf16 %v1180_v8, %v1176_v6 }
 0x1dd   :  { %v372_v14 = vadd.f32 %v894_v38, %v371_v12  ;;  %v1083_v15 = vpop.f32.mrb[14].mxu1 }
 0x1de   :  { %1189 = vtanh.f32 %v380_v11  ;;  %v383_v16 = vadd.f32 %v1083_v15, %v894_v38  ;;  %v374_v17 = vpop.f32.mrb[15].mxu1  ;;  %1104 = vmatprep.mubr.bf16.mxu0 %v404_v13 }
 0x1df   :  { %1191 = vtanh.f32 %v372_v14  ;;  %v375_v18 = vadd.f32 %v894_v38, %v374_v17  ;;  %1105 = vmatmul.mubr.bf16.gmra.mrb[20].mxu0 %v405_v10 }
 0x1e0   :  { %v1182_v19 = vpop.eup %1181  ;;  %1193 = vtanh.f32 %v383_v16 }
 0x1e1   :  { %v1184_v20 = vpop.eup %1183  ;;  %1195 = vtanh.f32 %v375_v18 }
 0x1e2   :  { %v1186_v21 = vpop.eup %1185 }
 0x1e3   :  { %v1188_v22 = vpop.eup %1187  ;;  %v407_v23 = vpack.c.bf16 %v1186_v21, %v1182_v19 }
 0x1e4   :  { %v406_v24 = vpack.c.bf16 %v1188_v22, %v1184_v20 }
 0x1e6   :  { %1108 = vmatprep.mubr.bf16.mxu0 %v406_v24 }
 0x1e7   :  { %1109 = vmatmul.mubr.bf16.gmra.mrb[24].mxu0 %v407_v23 }
 0x1e8   :  { %v1190_v25 = vpop.eup %1189 }
 0x1e9   :  { %v1192_v26 = vpop.eup %1191 }
 0x1ea   :  { %v1194_v27 = vpop.eup %1193 }
 0x1eb   :  { %v1196_v28 = vpop.eup %1195  ;;  %v409_v29 = vpack.c.bf16 %v1194_v27, %v1190_v25 }
 0x1ec   :  { %v408_v30 = vpack.c.bf16 %v1196_v28, %v1192_v26 }
 0x1ee   :  { %1112 = vmatprep.mubr.bf16.mxu0 %v408_v30 }
 0x1ef   :  { %1113 = vmatmul.mubr.bf16.gmra.mrb[28].mxu0 %v409_v29 }
 0x2aa   :  { %v1102_v32 = vpop.f32.mrb[16].mxu0 }
 0x2ab   :  { %v524_v33 = vadd.f32 %v1102_v32, %v903_v31  ;;  %v515_v34 = vpop.f32.mrb[17].mxu0 }
 0x2ac   :  { %v516_v35 = vadd.f32 %v903_v31, %v515_v34  ;;  %v1103_v36 = vpop.f32.mrb[18].mxu0 }
 0x2ad   :  { %582 = vadd.xlane.f32.xlu1 %v524_v33  ;;  %v518_v37 = vpop.f32.mrb[19].mxu0  ;;  %v527_v38 = vadd.f32 %v1103_v36, %v903_v31 }
 0x2ae   :  { %578 = vadd.xlane.f32.xlu0 %v516_v35  ;;  %v519_v39 = vadd.f32 %v903_v31, %v518_v37 }
 0x2b1   :  { %584 = vadd.xlane.f32.xlu1 %v527_v38 }
 0x2b2   :  { %v1106_v40 = vpop.f32.mrb[20].mxu0  ;;  %580 = vadd.xlane.f32.xlu0 %v519_v39 }
 0x2b3   :  { %v540_v41 = vadd.f32 %v1106_v40, %v903_v31  ;;  %v531_v42 = vpop.f32.mrb[21].mxu0 }
 0x2b4   :  { %v1107_v43 = vpop.f32.mrb[22].mxu0  ;;  %v532_v46 = vadd.f32 %v903_v31, %v531_v42 }
 0x2b5   :  { %v543_v44 = vadd.f32 %v1107_v43, %v903_v31  ;;  %v534_v45 = vpop.f32.mrb[23].mxu0 }
 0x2b6   :  { %590 = vadd.xlane.f32.xlu0 %v540_v41  ;;  %v535_v47 = vadd.f32 %v903_v31, %v534_v45 }
 0x2b7   :  { %592 = vadd.xlane.f32.xlu1 %v543_v44 }
 0x2ba   :  { %v1110_v48 = vpop.f32.mrb[24].mxu0  ;;  %586 = vadd.xlane.f32.xlu0 %v532_v46 }
 0x2bb   :  { %v1396_v49 = vadd.f32 %v1110_v48, %v903_v31  ;;  %v547_v50 = vpop.f32.mrb[25].mxu0  ;;  %588 = vadd.xlane.f32.xlu1 %v535_v47 }
 0x2bc   :  { %v1111_v51 = vpop.f32.mrb[26].mxu0  ;;  %v1402_v54 = vadd.f32 %v903_v31, %v547_v50 }
 0x2bd   :  { %v1398_v52 = vadd.f32 %v1111_v51, %v903_v31  ;;  %v550_v53 = vpop.f32.mrb[27].mxu0 }
 0x2be   :  { %598 = vadd.xlane.f32.xlu0 %v1396_v49  ;;  %v1404_v55 = vadd.f32 %v903_v31, %v550_v53 }
 0x2bf   :  { %600 = vadd.xlane.f32.xlu1 %v1398_v52 }
 0x2c2   :  { %v1114_v56 = vpop.f32.mrb[28].mxu0  ;;  %594 = vadd.xlane.f32.xlu0 %v1402_v54 }
 0x2c3   :  { %v563_v57 = vpop.f32.mrb[29].mxu0  ;;  %596 = vadd.xlane.f32.xlu1 %v1404_v55  ;;  %v1413_v62 = vadd.f32 %v1114_v56, %v903_v31 }
 0x2c4   :  { %v1408_v58 = vadd.f32 %v903_v31, %v563_v57  ;;  %v1115_v59 = vpop.f32.mrb[30].mxu0 }
 0x2c5   :  { %v566_v60 = vpop.f32.mrb[31].mxu0  ;;  %v1416_v63 = vadd.f32 %v1115_v59, %v903_v31 }
 0x2c6   :  { %v1410_v61 = vadd.f32 %v903_v31, %v566_v60  ;;  %602 = vadd.xlane.f32.xlu0 %v1408_v58 }
 0x2c8   :  { %604 = vadd.xlane.f32.xlu1 %v1410_v61 }
 0x2ca   :  { %606 = vadd.xlane.f32.xlu0 %v1413_v62 }
 0x2cc   :  { %608 = vadd.xlane.f32.xlu1 %v1416_v63 }
 0x33a   :  { %v583_v0 = vpop.xlane.xlu1 %582 }
 0x33b   :  { %v613_v1 = vmul.f32 0.0078125, %v583_v0  ;;  %v579_v2 = vpop.xlane.xlu0 %578 }
 0x33c   :  { %v611_v3 = vmul.f32 0.0078125, %v579_v2 }
 0x33d   :  { %v1420_v4 = vsub.f32 %v524_v33, %v613_v1 }
 0x33e   :  { %v585_v5 = vpop.xlane.xlu1 %584  ;;  %v1422_v6 = vsub.f32 %v516_v35, %v611_v3 }
 0x33f   :  { %v614_v7 = vmul.f32 0.0078125, %v585_v5  ;;  %v581_v8 = vpop.xlane.xlu0 %580  ;;  %v645_v9 = vmul.f32 %v1420_v4, %v1420_v4 }
 0x340   :  { %v612_v10 = vmul.f32 0.0078125, %v581_v8  ;;  %v643_v15 = vmul.f32 %v1422_v6, %v1422_v6 }
 0x341   :  { %v1426_v11 = vsub.f32 %v527_v38, %v614_v7  ;;  %663 = vadd.xlane.f32.xlu0 %v645_v9 }
 0x342   :  { %v1428_v12 = vsub.f32 %v519_v39, %v612_v10 }
 0x343   :  { %v591_v13 = vpop.xlane.xlu0 %590  ;;  %v646_v14 = vmul.f32 %v1426_v11, %v1426_v11 }
 0x344   :  { %v617_v16 = vmul.f32 0.0078125, %v591_v13  ;;  %v593_v17 = vpop.xlane.xlu1 %592  ;;  %v644_v22 = vmul.f32 %v1428_v12, %v1428_v12 }
 0x345   :  { %v618_v18 = vmul.f32 0.0078125, %v593_v17  ;;  %665 = vadd.xlane.f32.xlu1 %v646_v14  ;;  %659 = vadd.xlane.f32.xlu0 %v643_v15 }
 0x346   :  { %v1434_v19 = vsub.f32 %v540_v41, %v617_v16 }
 0x347   :  { %v1436_v20 = vsub.f32 %v543_v44, %v618_v18  ;;  %v587_v21 = vpop.xlane.xlu0 %586 }
 0x348   :  { %v615_v23 = vmul.f32 0.0078125, %v587_v21  ;;  %v589_v24 = vpop.xlane.xlu1 %588  ;;  %v649_v25 = vmul.f32 %v1434_v19, %v1434_v19 }
 0x349   :  { %v616_v26 = vmul.f32 0.0078125, %v589_v24  ;;  %661 = vadd.xlane.f32.xlu1 %v644_v22  ;;  %v650_v30 = vmul.f32 %v1436_v20, %v1436_v20 }
 0x34a   :  { %v1442_v27 = vsub.f32 %v532_v46, %v615_v23  ;;  %671 = vadd.xlane.f32.xlu0 %v649_v25 }
 0x34b   :  { %v1444_v28 = vsub.f32 %v535_v47, %v616_v26  ;;  %v599_v29 = vpop.xlane.xlu0 %598 }
 0x34c   :  { %v621_v31 = vmul.f32 0.0078125, %v599_v29  ;;  %v601_v32 = vpop.xlane.xlu1 %600  ;;  %v647_v33 = vmul.f32 %v1442_v27, %v1442_v27  ;;  %v1495_v29 = vld [vmem:[%s1581_s7] ss:$0 sm:$0xff] }
 0x34d   :  { %v622_v34 = vmul.f32 0.0078125, %v601_v32  ;;  %673 = vadd.xlane.f32.xlu1 %v650_v30  ;;  %v648_v38 = vmul.f32 %v1444_v28, %v1444_v28 }
 0x34e   :  { %v1451_v35 = vsub.f32 %v1396_v49, %v621_v31  ;;  %667 = vadd.xlane.f32.xlu0 %v647_v33 }
 0x34f   :  { %v1454_v36 = vsub.f32 %v1398_v52, %v622_v34  ;;  %v595_v37 = vpop.xlane.xlu0 %594 }
 0x350   :  { %v619_v39 = vmul.f32 0.0078125, %v595_v37  ;;  %v597_v40 = vpop.xlane.xlu1 %596  ;;  %v653_v41 = vmul.f32 %v1451_v35, %v1451_v35 }
 0x351   :  { %v620_v42 = vmul.f32 0.0078125, %v597_v40  ;;  %669 = vadd.xlane.f32.xlu1 %v648_v38  ;;  %v654_v46 = vmul.f32 %v1454_v36, %v1454_v36 }
 0x352   :  { %v1461_v43 = vsub.f32 %v1402_v54, %v619_v39  ;;  %679 = vadd.xlane.f32.xlu0 %v653_v41 }
 0x353   :  { %v1464_v44 = vsub.f32 %v1404_v55, %v620_v42  ;;  %v603_v45 = vpop.xlane.xlu0 %602  ;;  %v1502_v42 = vld [vmem:[%s1582_s8] ss:$0 sm:$0xff] }
 0x354   :  { %v623_v47 = vmul.f32 0.0078125, %v603_v45  ;;  %v651_v48 = vmul.f32 %v1461_v43, %v1461_v43 }
 0x355   :  { %v605_v49 = vpop.xlane.xlu1 %604  ;;  %681 = vadd.xlane.f32.xlu1 %v654_v46  ;;  %v652_v53 = vmul.f32 %v1464_v44, %v1464_v44 }
 0x356   :  { %v1471_v50 = vsub.f32 %v1408_v58, %v623_v47  ;;  %v624_v51 = vmul.f32 0.0078125, %v605_v49  ;;  %675 = vadd.xlane.f32.xlu0 %v651_v48 }
 0x357   :  { %v607_v52 = vpop.xlane.xlu0 %606 }
 0x358   :  { %v1476_v54 = vsub.f32 %v1410_v61, %v624_v51  ;;  %v625_v55 = vmul.f32 0.0078125, %v607_v52  ;;  %v655_v56 = vmul.f32 %v1471_v50, %v1471_v50 }
 0x359   :  { %v609_v57 = vpop.xlane.xlu1 %608  ;;  %677 = vadd.xlane.f32.xlu1 %v652_v53 }
 0x35a   :  { %v1481_v59 = vsub.f32 %v1413_v62, %v625_v55  ;;  %v626_v58 = vmul.f32 0.0078125, %v609_v57  ;;  %683 = vadd.xlane.f32.xlu0 %v655_v56  ;;  %v656_v60 = vmul.f32 %v1476_v54, %v1476_v54 }
 0x35c   :  { %v1486_v0 = vsub.f32 %v1416_v63, %v626_v58  ;;  %v657_v61 = vmul.f32 %v1481_v59, %v1481_v59 }
 0x35d   :  { %685 = vadd.xlane.f32.xlu1 %v656_v60 }
 0x35e   :  { %687 = vadd.xlane.f32.xlu0 %v657_v61  ;;  %v658_v1 = vmul.f32 %v1486_v0, %v1486_v0 }
 0x361   :  { %689 = vadd.xlane.f32.xlu1 %v658_v1 }
 0x3ce   :  { %v664_v2 = vpop.xlane.xlu0 %663 }
 0x3cf   :  { %v693_v62 = vmul.f32 0.0078125, %v664_v2 }
 0x3d1   :  { %v709_v3 = vadd.f32 1e-05, %v693_v62 }
 0x3d2   :  { %v666_v5 = vpop.xlane.xlu1 %665  ;;  %v660_v7 = vpop.xlane.xlu0 %659 }
 0x3d3   :  { %1197 = vrsqrt.f32 %v709_v3  ;;  %v694_v8 = vmul.f32 0.0078125, %v666_v5  ;;  %v691_v9 = vmul.f32 0.0078125, %v660_v7 }
 0x3d5   :  { %v710_v10 = vadd.f32 1e-05, %v694_v8  ;;  %v707_v63 = vadd.f32 1e-05, %v691_v9 }
 0x3d6   :  { %v662_v13 = vpop.xlane.xlu1 %661 }
 0x3d7   :  { %1199 = vrsqrt.f32 %v710_v10  ;;  %v692_v14 = vmul.f32 0.0078125, %v662_v13  ;;  %v672_v15 = vpop.xlane.xlu0 %671 }
 0x3d8   :  { %1201 = vrsqrt.f32 %v707_v63  ;;  %v697_v16 = vmul.f32 0.0078125, %v672_v15 }
 0x3d9   :  { %v708_v17 = vadd.f32 1e-05, %v692_v14 }
 0x3da   :  { %v713_v18 = vadd.f32 1e-05, %v697_v16  ;;  %v674_v21 = vpop.xlane.xlu1 %673 }
 0x3db   :  { %1203 = vrsqrt.f32 %v708_v17  ;;  %v698_v22 = vmul.f32 0.0078125, %v674_v21  ;;  %v668_v23 = vpop.xlane.xlu0 %667 }
 0x3dc   :  { %1205 = vrsqrt.f32 %v713_v18  ;;  %v695_v24 = vmul.f32 0.0078125, %v668_v23 }
 0x3dd   :  { %v1198_v25 = vpop.eup %1197  ;;  %v714_v26 = vadd.f32 1e-05, %v698_v22 }
 0x3de   :  { %v741_v30 = vmul.f32 %v1198_v25, %v1420_v4  ;;  %v711_v31 = vadd.f32 1e-05, %v695_v24  ;;  %v670_v32 = vpop.xlane.xlu1 %669 }
 0x3df   :  { %1207 = vrsqrt.f32 %v714_v26  ;;  %v696_v33 = vmul.f32 0.0078125, %v670_v32  ;;  %v680_v34 = vpop.xlane.xlu0 %679 }
 0x3e0   :  { %1209 = vrsqrt.f32 %v711_v31  ;;  %v701_v37 = vmul.f32 0.0078125, %v680_v34  ;;  %v764_v39 = vmul.f32 %v1495_v29, %v741_v30 }
 0x3e1   :  { %v1200_v38 = vpop.eup %1199  ;;  %v712_v40 = vadd.f32 1e-05, %v696_v33 }
 0x3e2   :  { %v1202_v41 = vpop.eup %1201  ;;  %v742_v45 = vmul.f32 %v1200_v38, %v1426_v11  ;;  %v717_v4 = vadd.f32 1e-05, %v701_v37  ;;  %v682_v46 = vpop.xlane.xlu1 %681  ;;  %v787_v55 = vadd.f32 %v1502_v42, %v764_v39 }
 0x3e3   :  { %v739_v47 = vmul.f32 %v1202_v41, %v1422_v6  ;;  %1211 = vrsqrt.f32 %v712_v40  ;;  %v702_v48 = vmul.f32 0.0078125, %v682_v46  ;;  %v676_v49 = vpop.xlane.xlu0 %675 }
 0x3e4   :  { %v765_v51 = vmul.f32 %v1495_v29, %v742_v45  ;;  %1213 = vrsqrt.f32 %v717_v4  ;;  %v699_v52 = vmul.f32 0.0078125, %v676_v49 }
 0x3e5   :  { %v1204_v53 = vpop.eup %1203  ;;  %v718_v56 = vadd.f32 1e-05, %v702_v48  ;;  %v762_v11 = vmul.f32 %v1495_v29, %v739_v47 }
 0x3e6   :  { %v1206_v57 = vpop.eup %1205  ;;  %v788_v58 = vadd.f32 %v1502_v42, %v765_v51  ;;  %v740_v60 = vmul.f32 %v1204_v53, %v1428_v12  ;;  %v715_v61 = vadd.f32 1e-05, %v699_v52  ;;  %v678_v6 = vpop.xlane.xlu1 %677 }
 0x3e7   :  { %v745_v1 = vmul.f32 %v1206_v57, %v1434_v19  ;;  %1215 = vrsqrt.f32 %v718_v56  ;;  %v700_v2 = vmul.f32 0.0078125, %v678_v6  ;;  %v684_v62 = vpop.xlane.xlu0 %683  ;;  %v785_v12 = vadd.f32 %v1502_v42, %v762_v11 }
 0x3e8   :  { %v954_v3 = vpack.c.bf16 %v788_v58, %v787_v55  ;;  %v763_v5 = vmul.f32 %v1495_v29, %v740_v60  ;;  %1217 = vrsqrt.f32 %v715_v61  ;;  %v703_v7 = vmul.f32 0.0078125, %v684_v62 }
 0x3e9   :  { %v1208_v8 = vpop.eup %1207  ;;  %v768_v9 = vmul.f32 %v1495_v29, %v745_v1  ;;  %v716_v10 = vadd.f32 1e-05, %v700_v2 }
 0x3ea   :  { %v1210_v63 = vpop.eup %1209  ;;  %986 = vst [vmem:[%s1583_s9 + $0x8] sm:$0xff] %v954_v3   ;;  %v786_v19 = vadd.f32 %v1502_v42, %v763_v5  ;;  %v746_v13 = vmul.f32 %v1208_v8, %v1436_v20  ;;  %v719_v14 = vadd.f32 1e-05, %v703_v7  ;;  %v686_v15 = vpop.xlane.xlu1 %685 }
 0x3eb   :  { %v743_v16 = vmul.f32 %v1210_v63, %v1442_v27  ;;  %1219 = vrsqrt.f32 %v716_v10  ;;  %v704_v17 = vmul.f32 0.0078125, %v686_v15  ;;  %v688_v18 = vpop.xlane.xlu0 %687  ;;  %v791_v25 = vadd.f32 %v1502_v42, %v768_v9 }
 0x3ec   :  { %v949_v21 = vpack.c.bf16 %v786_v19, %v785_v12  ;;  %v769_v22 = vmul.f32 %v1495_v29, %v746_v13  ;;  %1221 = vrsqrt.f32 %v719_v14  ;;  %v705_v23 = vmul.f32 0.0078125, %v688_v18 }
 0x3ed   :  { %v1212_v24 = vpop.eup %1211  ;;  %v720_v26 = vadd.f32 1e-05, %v704_v17  ;;  %v766_v27 = vmul.f32 %v1495_v29, %v743_v16 }
 0x3ee   :  { %v1214_v30 = vpop.eup %1213  ;;  %950 = vst [vmem:[%s1583_s9] sm:$0xff] %v949_v21   ;;  %v792_v20 = vadd.f32 %v1502_v42, %v769_v22  ;;  %v744_v31 = vmul.f32 %v1212_v24, %v1444_v28  ;;  %v721_v32 = vadd.f32 1e-05, %v705_v23  ;;  %v690_v33 = vpop.xlane.xlu1 %689 }
 0x3ef   :  { %v749_v34 = vmul.f32 %v1214_v30, %v1451_v35  ;;  %1223 = vrsqrt.f32 %v720_v26  ;;  %v706_v37 = vmul.f32 0.0078125, %v690_v33  ;;  %v789_v4 = vadd.f32 %v1502_v42, %v766_v27 }
 0x3f0   :  { %v964_v38 = vpack.c.bf16 %v792_v20, %v791_v25  ;;  %v767_v39 = vmul.f32 %v1495_v29, %v744_v31  ;;  %1225 = vrsqrt.f32 %v721_v32 }
 0x3f1   :  { %v1216_v40 = vpop.eup %1215  ;;  %v722_v41 = vadd.f32 1e-05, %v706_v37  ;;  %v772_v46 = vmul.f32 %v1495_v29, %v749_v34 }
 0x3f2   :  { %v1218_v45 = vpop.eup %1217  ;;  %988 = vst [vmem:[%s1583_s9 + $0x18] sm:$0xff] %v964_v38   ;;  %v790_v28 = vadd.f32 %v1502_v42, %v767_v39  ;;  %v750_v35 = vmul.f32 %v1216_v40, %v1454_v36 }
 0x3f3   :  { %v747_v47 = vmul.f32 %v1218_v45, %v1461_v43  ;;  %1227 = vrsqrt.f32 %v722_v41  ;;  %v795_v53 = vadd.f32 %v1502_v42, %v772_v46 }
 0x3f4   :  { %v959_v48 = vpack.c.bf16 %v790_v28, %v789_v4  ;;  %v773_v49 = vmul.f32 %v1495_v29, %v750_v35 }
 0x3f5   :  { %v1220_v51 = vpop.eup %1219  ;;  %v770_v56 = vmul.f32 %v1495_v29, %v747_v47 }
 0x3f6   :  { %v1222_v52 = vpop.eup %1221  ;;  %987 = vst [vmem:[%s1583_s9 + $0x10] sm:$0xff] %v959_v48   ;;  %v796_v55 = vadd.f32 %v1502_v42, %v773_v49  ;;  %v748_v36 = vmul.f32 %v1220_v51, %v1464_v44 }
 0x3f7   :  { %v751_v43 = vmul.f32 %v1222_v52, %v1471_v50  ;;  %v793_v61 = vadd.f32 %v1502_v42, %v770_v56 }
 0x3f8   :  { %v974_v57 = vpack.c.bf16 %v796_v55, %v795_v53  ;;  %v771_v58 = vmul.f32 %v1495_v29, %v748_v36 }
 0x3f9   :  { %v1224_v11 = vpop.eup %1223  ;;  %v774_v1 = vmul.f32 %v1495_v29, %v751_v43 }
 0x3fa   :  { %v1226_v60 = vpop.eup %1225  ;;  %990 = vst [vmem:[%s1583_s9 + $0x28] sm:$0xff] %v974_v57   ;;  %v794_v6 = vadd.f32 %v1502_v42, %v771_v58  ;;  %v752_v2 = vmul.f32 %v1224_v11, %v1476_v54 }
 0x3fb   :  { %v753_v44 = vmul.f32 %v1226_v60, %v1481_v59  ;;  %v797_v5 = vadd.f32 %v1502_v42, %v774_v1 }
 0x3fc   :  { %v969_v50 = vpack.c.bf16 %v794_v6, %v793_v61  ;;  %v775_v62 = vmul.f32 %v1495_v29, %v752_v2 }
 0x3fd   :  { %v1228_v3 = vpop.eup %1227  ;;  %v776_v8 = vmul.f32 %v1495_v29, %v753_v44 }
 0x3fe   :  { %989 = vst [vmem:[%s1583_s9 + $0x20] sm:$0xff] %v969_v50   ;;  %v798_v7 = vadd.f32 %v1502_v42, %v775_v62  ;;  %v754_v9 = vmul.f32 %v1228_v3, %v1486_v0 }
 0x3ff   :  { %v799_v59 = vadd.f32 %v1502_v42, %v776_v8 }
 0x400   :  { %v979_v10 = vpack.c.bf16 %v798_v7, %v797_v5  ;;  %v777_v54 = vmul.f32 %v1495_v29, %v754_v9 }
 0x402   :  { %991 = vst [vmem:[%s1583_s9 + $0x30] sm:$0xff] %v979_v10   ;;  %v800_v63 = vadd.f32 %v1502_v42, %v777_v54 }
 0x404   :  { %v984_v12 = vpack.c.bf16 %v800_v63, %v799_v59 }
 0x406   :  { %992 = vst [vmem:[%s1583_s9 + $0x38] sm:$0xff] %v984_v12  }

// kernel: net_forward.11
= control target key start
LH: loop header
LB: loop body
LE: loop exit
PB: predicated region body
PF: predicated region fallthrough
CT: control target
= control target key end

     0   :  { %s2064_s2 = inlined_call_operand.vmem [shape: bf16[256,128], index: 2, kind: input, shape index: {}]   ;;  %s2065_s1 = inlined_call_operand.vmem [shape: bf16[128,128], index: 1, kind: input, shape index: {}]   ;;  %s2066_s0 = inlined_call_operand.vmem [shape: bf16[128,128], index: 0, kind: input, shape index: {}, may-alias: {0,10}]   ;;  %s2067_s4 = inlined_call_operand.vmem [shape: bf16[128,128], index: 4, kind: input, shape index: {}]   ;;  %s2068_s6 = inlined_call_operand.vmem [shape: bf16[128,128], index: 6, kind: input, shape index: {}]   ;;  %s2069_s3 = inlined_call_operand.vmem [shape: f32[1,128], index: 3, kind: input, shape index: {}]   ;;  %s2070_s5 = inlined_call_operand.vmem [shape: f32[1,128], index: 5, kind: input, shape index: {}]   ;;  %s2071_s7 = inlined_call_operand.vmem [shape: f32[1,128], index: 7, kind: input, shape index: {}]   ;;  %s2072_s8 = inlined_call_operand.vmem [shape: f32[1,128], index: 8, kind: input, shape index: {}]   ;;  %s2073_s9 = inlined_call_operand.vmem [shape: f32[1,128], index: 9, kind: input, shape index: {}]   ;;  %s2074_s10 = inlined_call_operand.vmem [shape: bf16[128,128], index: 10, kind: input, shape index: {}, may-alias: {0,10}]   ;;  %s2075_s11 = inlined_call_operand.vmem [shape: bf16[128,128], index: 11, kind: output, shape index: {}]  }
   0x1   :  { %v1469_v0 = vld [vmem:[%s2064_s2 + $0x40] sm:$0xff]   ;;  %v1471_v2 = vld [vmem:[%s2064_s2 + $0x48] sm:$0xff]   ;;  %v1473_v4 = vld [vmem:[%s2064_s2 + $0x50] sm:$0xff]  }
   0x2   :  { %v1470_v1 = vld [vmem:[%s2064_s2] sm:$0xff]   ;;  %1309 = vmatprep.subr.bf16.mxu0 %v1469_v0  ;;  %v1472_v3 = vld [vmem:[%s2064_s2 + $0x8] sm:$0xff]   ;;  %v1474_v5 = vld [vmem:[%s2064_s2 + $0x10] sm:$0xff]  }
   0x3   :  { %1310 = vmatpush3.bf16.msra.mxu0 %v1470_v1  ;;  %v1475_v6 = vld [vmem:[%s2064_s2 + $0x58] sm:$0xff]   ;;  %v1477_v8 = vld [vmem:[%s2064_s2 + $0x60] sm:$0xff]   ;;  %v1479_v10 = vld [vmem:[%s2064_s2 + $0x68] sm:$0xff]  }
   0x4   :  { %1311 = vmatprep.subr.bf16.mxu0 %v1471_v2  ;;  %v1476_v7 = vld [vmem:[%s2064_s2 + $0x18] sm:$0xff]   ;;  %v1478_v9 = vld [vmem:[%s2064_s2 + $0x20] sm:$0xff]   ;;  %v1480_v12 = vld [vmem:[%s2064_s2 + $0x28] sm:$0xff]  }
   0x5   :  { %v1485_v11 = vld [vmem:[%s2065_s1] sm:$0xff]   ;;  %v1481_v13 = vld [vmem:[%s2064_s2 + $0x70] sm:$0xff]   ;;  %v1483_v15 = vld [vmem:[%s2064_s2 + $0x78] sm:$0xff]  }
   0x6   :  { %334 = vmatprep.mubr.bf16.mxu0 %v1485_v11  ;;  %v1482_v14 = vld [vmem:[%s2064_s2 + $0x30] sm:$0xff]   ;;  %v1484_v16 = vld [vmem:[%s2064_s2 + $0x38] sm:$0xff]   ;;  %v1486_v17 = vld [vmem:[%s2066_s0] sm:$0xff]  }
   0x7   :  { %1312 = vmatpush3.bf16.msra.mxu0 %v1472_v3  ;;  %v1487_v18 = vld [vmem:[%s2065_s1 + $0x8] sm:$0xff]   ;;  %v1501_v19 = vld [vmem:[%s2067_s4] sm:$0xff]   ;;  %v1489_v21 = vld [vmem:[%s2065_s1 + $0x10] sm:$0xff]  }
   0x8   :  { %1313 = vmatprep.subr.bf16.mxu0 %v1473_v4  ;;  %1405 = vmatprep.subr.bf16.mxu1 %v1501_v19  ;;  %v1488_v20 = vld [vmem:[%s2066_s0 + $0x8] sm:$0xff]   ;;  %v1490_v22 = vld [vmem:[%s2066_s0 + $0x10] sm:$0xff]   ;;  %v1491_v23 = vld [vmem:[%s2065_s1 + $0x18] sm:$0xff]  }
   0x9   :  { %1406 = vmatpush3.bf16.msra.mxu1 %v1501_v19  ;;  %v1492_v24 = vld [vmem:[%s2066_s0 + $0x18] sm:$0xff]   ;;  %v1493_v25 = vld [vmem:[%s2065_s1 + $0x20] sm:$0xff]   ;;  %v1495_v27 = vld [vmem:[%s2065_s1 + $0x28] sm:$0xff]  }
   0xa   :  { %v1494_v26 = vld [vmem:[%s2066_s0 + $0x20] sm:$0xff]   ;;  %v1496_v28 = vld [vmem:[%s2066_s0 + $0x28] sm:$0xff]   ;;  %v1497_v29 = vld [vmem:[%s2065_s1 + $0x30] sm:$0xff]  }
   0xb   :  { %1314 = vmatpush3.bf16.msra.mxu0 %v1474_v5  ;;  %v1498_v30 = vld [vmem:[%s2066_s0 + $0x30] sm:$0xff]   ;;  %v1499_v31 = vld [vmem:[%s2065_s1 + $0x38] sm:$0xff]   ;;  %v1502_v33 = vld [vmem:[%s2067_s4 + $0x8] sm:$0xff]  }
   0xc   :  { %1315 = vmatprep.subr.bf16.mxu0 %v1475_v6  ;;  %v1500_v32 = vld [vmem:[%s2066_s0 + $0x38] sm:$0xff]   ;;  %1407 = vmatprep.subr.bf16.mxu1 %v1502_v33  ;;  %v1503_v34 = vld [vmem:[%s2067_s4 + $0x10] sm:$0xff]   ;;  %v1505_v36 = vld [vmem:[%s2067_s4 + $0x20] sm:$0xff]  }
   0xd   :  { %1408 = vmatpush3.bf16.msra.mxu1 %v1502_v33  ;;  %v1504_v35 = vld [vmem:[%s2067_s4 + $0x18] sm:$0xff]   ;;  %v1506_v37 = vld [vmem:[%s2067_s4 + $0x28] sm:$0xff]   ;;  %v1507_v38 = vld [vmem:[%s2067_s4 + $0x30] sm:$0xff]  }
   0xe   :  { %1409 = vmatprep.subr.bf16.mxu1 %v1503_v34  ;;  %v1508_v39 = vld [vmem:[%s2067_s4 + $0x38] sm:$0xff]   ;;  %v1509_v40 = vld [vmem:[%s2068_s6] sm:$0xff]  }
   0xf   :  { %1316 = vmatpush3.bf16.msra.mxu0 %v1476_v7  ;;  %v1799_v42 = vld [vmem:[%s2069_s3] ss:$0 sm:$0xff] }
  0x10   :  { %1317 = vmatprep.subr.bf16.mxu0 %v1477_v8 }
  0x11   :  { %1410 = vmatpush3.bf16.msra.mxu1 %v1503_v34 }
  0x12   :  { %1411 = vmatprep.subr.bf16.mxu1 %v1504_v35 }
  0x13   :  { %1318 = vmatpush3.bf16.msra.mxu0 %v1478_v9 }
  0x14   :  { %1319 = vmatprep.subr.bf16.mxu0 %v1479_v10 }
  0x15   :  { %1412 = vmatpush3.bf16.msra.mxu1 %v1504_v35 }
  0x16   :  { %1413 = vmatprep.subr.bf16.mxu1 %v1505_v36 }
  0x17   :  { %1320 = vmatpush3.bf16.msra.mxu0 %v1480_v12 }
  0x18   :  { %1321 = vmatprep.subr.bf16.mxu0 %v1481_v13  ;;  %v1510_v13 = vld [vmem:[%s2068_s6 + $0x8] sm:$0xff]  }
  0x19   :  { %1414 = vmatpush3.bf16.msra.mxu1 %v1505_v36 }
  0x1a   :  { %1415 = vmatprep.subr.bf16.mxu1 %v1506_v37 }
  0x1b   :  { %1322 = vmatpush3.bf16.msra.mxu0 %v1482_v14 }
  0x1c   :  { %1323 = vmatprep.subr.bf16.mxu0 %v1483_v15 }
  0x1d   :  { %1416 = vmatpush3.bf16.msra.mxu1 %v1506_v37 }
  0x1e   :  { %1417 = vmatprep.subr.bf16.mxu1 %v1507_v38 }
  0x1f   :  { %1324 = vmatpush3.bf16.msra.mxu0 %v1484_v16 }
  0x21   :  { %1418 = vmatpush3.bf16.msra.mxu1 %v1507_v38 }
  0x22   :  { %335 = vmatmul.mubr.bf16.vlgmr.msra.gmra.mrb[0].mxu0 %v1486_v17  ;;  %1419 = vmatprep.subr.bf16.mxu1 %v1508_v39  ;;  %v1511_v17 = vld [vmem:[%s2068_s6 + $0x10] sm:$0xff]  }
  0x23   :  { %342 = vmatprep.mubr.bf16.mxu0 %v1487_v18 }
  0x25   :  { %1420 = vmatpush3.bf16.msra.mxu1 %v1508_v39 }
  0x26   :  { %1437 = vmatprep.subr.bf16.mxu1 %v1509_v40 }
  0x2a   :  { %343 = vmatmul.mubr.bf16.gmra.mrb[4].mxu0 %v1488_v20 }
  0x2b   :  { %350 = vmatprep.mubr.bf16.mxu0 %v1489_v21 }
  0x32   :  { %351 = vmatmul.mubr.bf16.gmra.mrb[8].mxu0 %v1490_v22 }
  0x33   :  { %358 = vmatprep.mubr.bf16.mxu0 %v1491_v23 }
  0x3a   :  { %359 = vmatmul.mubr.bf16.gmra.mrb[12].mxu0 %v1492_v24 }
  0x3b   :  { %366 = vmatprep.mubr.bf16.mxu0 %v1493_v25 }
  0x42   :  { %367 = vmatmul.mubr.bf16.gmra.mrb[16].mxu0 %v1494_v26 }
  0x43   :  { %374 = vmatprep.mubr.bf16.mxu0 %v1495_v27 }
  0x4a   :  { %375 = vmatmul.mubr.bf16.gmra.mrb[20].mxu0 %v1496_v28 }
  0x4b   :  { %382 = vmatprep.mubr.bf16.mxu0 %v1497_v29 }
  0x52   :  { %383 = vmatmul.mubr.bf16.gmra.mrb[24].mxu0 %v1498_v30 }
  0x53   :  { %390 = vmatprep.mubr.bf16.mxu0 %v1499_v31 }
  0x5a   :  { %391 = vmatmul.mubr.bf16.gmra.mrb[28].mxu0 %v1500_v32 }
  0xf5   :  { %v1325_v41 = vpop.f32.mrb[0].mxu0 }
  0xf6   :  { %v1326_v43 = vpop.f32.mrb[1].mxu0 }
  0xf7   :  { %v1327_v44 = vadd.f32 %v1326_v43, %v1325_v41  ;;  %v1328_v45 = vpop.f32.mrb[2].mxu0 }
  0xf8   :  { %v1329_v46 = vpop.f32.mrb[3].mxu0 }
  0xf9   :  { %v337_v47 = vadd.f32 %v1327_v44, %v1799_v42  ;;  %v1330_v48 = vadd.f32 %v1329_v46, %v1328_v45 }
  0xfb   :  { %v340_v49 = vadd.f32 %v1330_v48, %v1799_v42  ;;  %1517 = vtanh.f32 %v337_v47 }
  0xfd   :  { %1519 = vtanh.f32 %v340_v49  ;;  %v1331_v50 = vpop.f32.mrb[4].mxu0 }
  0xfe   :  { %v1332_v51 = vpop.f32.mrb[5].mxu0 }
  0xff   :  { %v1333_v52 = vadd.f32 %v1332_v51, %v1331_v50  ;;  %v1334_v53 = vpop.f32.mrb[6].mxu0 }
 0x100   :  { %v1335_v54 = vpop.f32.mrb[7].mxu0 }
 0x101   :  { %v345_v55 = vadd.f32 %v1333_v52, %v1799_v42  ;;  %v1336_v56 = vadd.f32 %v1335_v54, %v1334_v53 }
 0x103   :  { %v348_v57 = vadd.f32 %v1336_v56, %v1799_v42  ;;  %1521 = vtanh.f32 %v345_v55 }
 0x105   :  { %1523 = vtanh.f32 %v348_v57  ;;  %v1337_v58 = vpop.f32.mrb[8].mxu0  ;;  %v1518_v59 = vpop.eup %1517 }
 0x106   :  { %v1338_v60 = vpop.f32.mrb[9].mxu0 }
 0x107   :  { %v1520_v61 = vpop.eup %1519  ;;  %v1339_v62 = vadd.f32 %v1338_v60, %v1337_v58  ;;  %v1340_v63 = vpop.f32.mrb[10].mxu0 }
 0x108   :  { %v1341_v0 = vpop.f32.mrb[11].mxu0  ;;  %v415_v1 = vpack.c.bf16 %v1520_v61, %v1518_v59 }
 0x109   :  { %v353_v2 = vadd.f32 %v1339_v62, %v1799_v42  ;;  %v1342_v3 = vadd.f32 %v1341_v0, %v1340_v63 }
 0x10a   :  { %1421 = vmatprep.mubr.bf16.mxu1 %v415_v1 }
 0x10b   :  { %v356_v4 = vadd.f32 %v1342_v3, %v1799_v42  ;;  %1525 = vtanh.f32 %v353_v2 }
 0x10d   :  { %1527 = vtanh.f32 %v356_v4  ;;  %v1343_v5 = vpop.f32.mrb[12].mxu0  ;;  %v1522_v6 = vpop.eup %1521 }
 0x10e   :  { %v1344_v7 = vpop.f32.mrb[13].mxu0 }
 0x10f   :  { %v1524_v8 = vpop.eup %1523  ;;  %v1345_v9 = vadd.f32 %v1344_v7, %v1343_v5  ;;  %v1346_v10 = vpop.f32.mrb[14].mxu0  ;;  %v1512_v5 = vld [vmem:[%s2068_s6 + $0x18] sm:$0xff]   ;;  %v1515_v7 = vld [vmem:[%s2068_s6 + $0x30] sm:$0xff]  }
 0x110   :  { %v1347_v11 = vpop.f32.mrb[15].mxu0  ;;  %v416_v12 = vpack.c.bf16 %v1524_v8, %v1522_v6  ;;  %v1514_v6 = vld [vmem:[%s2068_s6 + $0x28] sm:$0xff]   ;;  %v1516_v8 = vld [vmem:[%s2068_s6 + $0x38] sm:$0xff]  }
 0x111   :  { %v361_v14 = vadd.f32 %v1345_v9, %v1799_v42  ;;  %v1348_v15 = vadd.f32 %v1347_v11, %v1346_v10  ;;  %v1841_v9 = vld [vmem:[%s2070_s5] ss:$0 sm:$0xff] }
 0x112   :  { %1422 = vmatmul.mubr.bf16.vlgmr.msra.gmra.mrb[0].mxu1 %v416_v12 }
 0x113   :  { %v364_v16 = vadd.f32 %v1348_v15, %v1799_v42  ;;  %1438 = vmatpush3.bf16.msra.mxu1 %v1509_v40  ;;  %1529 = vtanh.f32 %v361_v14 }
 0x114   :  { %1439 = vmatprep.subr.bf16.mxu1 %v1510_v13 }
 0x115   :  { %1531 = vtanh.f32 %v364_v16  ;;  %v1349_v18 = vpop.f32.mrb[16].mxu0  ;;  %v1526_v19 = vpop.eup %1525 }
 0x116   :  { %v1350_v20 = vpop.f32.mrb[17].mxu0 }
 0x117   :  { %v1528_v21 = vpop.eup %1527  ;;  %v1351_v22 = vadd.f32 %v1350_v20, %v1349_v18  ;;  %v1352_v23 = vpop.f32.mrb[18].mxu0  ;;  %1440 = vmatpush3.bf16.msra.mxu1 %v1510_v13 }
 0x118   :  { %v1353_v24 = vpop.f32.mrb[19].mxu0  ;;  %v417_v25 = vpack.c.bf16 %v1528_v21, %v1526_v19  ;;  %1441 = vmatprep.subr.bf16.mxu1 %v1511_v17 }
 0x119   :  { %v369_v26 = vadd.f32 %v1351_v22, %v1799_v42  ;;  %v1354_v27 = vadd.f32 %v1353_v24, %v1352_v23 }
 0x11a   :  { %1425 = vmatprep.mubr.bf16.mxu1 %v417_v25 }
 0x11b   :  { %v372_v28 = vadd.f32 %v1354_v27, %v1799_v42  ;;  %1442 = vmatpush3.bf16.msra.mxu1 %v1511_v17  ;;  %1533 = vtanh.f32 %v369_v26 }
 0x11c   :  { %1443 = vmatprep.subr.bf16.mxu1 %v1512_v5 }
 0x11d   :  { %1535 = vtanh.f32 %v372_v28  ;;  %v1355_v29 = vpop.f32.mrb[20].mxu0  ;;  %v1530_v30 = vpop.eup %1529 }
 0x11e   :  { %v1356_v31 = vpop.f32.mrb[21].mxu0 }
 0x11f   :  { %v1532_v32 = vpop.eup %1531  ;;  %v1357_v33 = vadd.f32 %v1356_v31, %v1355_v29  ;;  %v1358_v34 = vpop.f32.mrb[22].mxu0  ;;  %1444 = vmatpush3.bf16.msra.mxu1 %v1512_v5 }
 0x120   :  { %v1359_v35 = vpop.f32.mrb[23].mxu0  ;;  %v418_v36 = vpack.c.bf16 %v1532_v32, %v1530_v30 }
 0x121   :  { %v377_v37 = vadd.f32 %v1357_v33, %v1799_v42  ;;  %v1360_v38 = vadd.f32 %v1359_v35, %v1358_v34 }
 0x122   :  { %1426 = vmatmul.mubr.bf16.gmra.mrb[4].mxu1 %v418_v36 }
 0x123   :  { %v380_v39 = vadd.f32 %v1360_v38, %v1799_v42  ;;  %1537 = vtanh.f32 %v377_v37 }
 0x125   :  { %1539 = vtanh.f32 %v380_v39  ;;  %v1361_v40 = vpop.f32.mrb[24].mxu0  ;;  %v1534_v41 = vpop.eup %1533 }
 0x126   :  { %v1362_v43 = vpop.f32.mrb[25].mxu0 }
 0x127   :  { %v1536_v44 = vpop.eup %1535  ;;  %v1363_v45 = vadd.f32 %v1362_v43, %v1361_v40  ;;  %v1364_v46 = vpop.f32.mrb[26].mxu0 }
 0x128   :  { %v1365_v47 = vpop.f32.mrb[27].mxu0  ;;  %v419_v48 = vpack.c.bf16 %v1536_v44, %v1534_v41 }
 0x129   :  { %v385_v49 = vadd.f32 %v1363_v45, %v1799_v42  ;;  %v1366_v50 = vadd.f32 %v1365_v47, %v1364_v46 }
 0x12a   :  { %1429 = vmatprep.mubr.bf16.mxu1 %v419_v48 }
 0x12b   :  { %v388_v51 = vadd.f32 %v1366_v50, %v1799_v42  ;;  %1541 = vtanh.f32 %v385_v49 }
 0x12d   :  { %1543 = vtanh.f32 %v388_v51  ;;  %v1367_v52 = vpop.f32.mrb[28].mxu0  ;;  %v1538_v53 = vpop.eup %1537 }
 0x12e   :  { %v1368_v54 = vpop.f32.mrb[29].mxu0 }
 0x12f   :  { %v1540_v55 = vpop.eup %1539  ;;  %v1369_v56 = vadd.f32 %v1368_v54, %v1367_v52  ;;  %v1370_v57 = vpop.f32.mrb[30].mxu0 }
 0x130   :  { %v1371_v58 = vpop.f32.mrb[31].mxu0  ;;  %v420_v59 = vpack.c.bf16 %v1540_v55, %v1538_v53 }
 0x131   :  { %v393_v60 = vadd.f32 %v1369_v56, %v1799_v42  ;;  %v1372_v61 = vadd.f32 %v1371_v58, %v1370_v57 }
 0x132   :  { %1430 = vmatmul.mubr.bf16.gmra.mrb[8].mxu1 %v420_v59 }
 0x133   :  { %v396_v62 = vadd.f32 %v1372_v61, %v1799_v42  ;;  %1545 = vtanh.f32 %v393_v60  ;;  %v1513_v42 = vld [vmem:[%s2068_s6 + $0x20] sm:$0xff]  }
 0x134   :  { %1445 = vmatprep.subr.bf16.mxu1 %v1513_v42 }
 0x135   :  { %1547 = vtanh.f32 %v396_v62  ;;  %v1542_v63 = vpop.eup %1541  ;;  %1446 = vmatpush3.bf16.msra.mxu1 %v1513_v42 }
 0x136   :  { %1447 = vmatprep.subr.bf16.mxu1 %v1514_v6 }
 0x137   :  { %v1544_v0 = vpop.eup %1543 }
 0x138   :  { %v421_v1 = vpack.c.bf16 %v1544_v0, %v1542_v63 }
 0x139   :  { %1448 = vmatpush3.bf16.msra.mxu1 %v1514_v6 }
 0x13a   :  { %1433 = vmatprep.mubr.bf16.mxu1 %v421_v1  ;;  %1449 = vmatprep.subr.bf16.mxu1 %v1515_v7 }
 0x13d   :  { %v1546_v2 = vpop.eup %1545  ;;  %1450 = vmatpush3.bf16.msra.mxu1 %v1515_v7 }
 0x13e   :  { %1451 = vmatprep.subr.bf16.mxu1 %v1516_v8 }
 0x13f   :  { %v1548_v3 = vpop.eup %1547 }
 0x140   :  { %v422_v4 = vpack.c.bf16 %v1548_v3, %v1546_v2  ;;  %v1180_v3 = vld [vmem:[%s2071_s7] ss:$0 sm:$0xff] }
 0x141   :  { %1452 = vmatpush3.bf16.msra.mxu1 %v1516_v8 }
 0x142   :  { %1434 = vmatmul.mubr.bf16.gmra.mrb[12].mxu1 %v422_v4 }
 0x1e5   :  { %v1423_v10 = vpop.f32.mrb[0].mxu1 }
 0x1e6   :  { %v537_v11 = vadd.f32 %v1423_v10, %v1841_v9  ;;  %v528_v12 = vpop.f32.mrb[1].mxu1 }
 0x1e7   :  { %v529_v13 = vadd.f32 %v1841_v9, %v528_v12  ;;  %v1424_v14 = vpop.f32.mrb[2].mxu1 }
 0x1e8   :  { %1549 = vtanh.f32 %v537_v11  ;;  %v540_v15 = vadd.f32 %v1424_v14, %v1841_v9  ;;  %v531_v16 = vpop.f32.mrb[3].mxu1 }
 0x1e9   :  { %1551 = vtanh.f32 %v529_v13  ;;  %v532_v17 = vadd.f32 %v1841_v9, %v531_v16 }
 0x1ea   :  { %1553 = vtanh.f32 %v540_v15 }
 0x1eb   :  { %1555 = vtanh.f32 %v532_v17 }
 0x1f2   :  { %v1550_v18 = vpop.eup %1549 }
 0x1f3   :  { %v1552_v19 = vpop.eup %1551 }
 0x1f4   :  { %v1554_v20 = vpop.eup %1553 }
 0x1f5   :  { %v1556_v21 = vpop.eup %1555  ;;  %v1427_v22 = vpop.f32.mrb[4].mxu1  ;;  %v608_v23 = vpack.c.bf16 %v1554_v20, %v1550_v18 }
 0x1f6   :  { %v553_v24 = vadd.f32 %v1427_v22, %v1841_v9  ;;  %v544_v25 = vpop.f32.mrb[5].mxu1  ;;  %v607_v26 = vpack.c.bf16 %v1556_v21, %v1552_v19 }
 0x1f7   :  { %v545_v27 = vadd.f32 %v1841_v9, %v544_v25  ;;  %v1428_v28 = vpop.f32.mrb[6].mxu1 }
 0x1f8   :  { %1557 = vtanh.f32 %v553_v24  ;;  %v556_v29 = vadd.f32 %v1428_v28, %v1841_v9  ;;  %v547_v30 = vpop.f32.mrb[7].mxu1  ;;  %1453 = vmatprep.mubr.bf16.mxu1 %v607_v26 }
 0x1f9   :  { %1559 = vtanh.f32 %v545_v27  ;;  %v548_v31 = vadd.f32 %v1841_v9, %v547_v30  ;;  %1454 = vmatmul.mubr.bf16.vlgmr.msra.gmra.mrb[16].mxu1 %v608_v23 }
 0x1fa   :  { %1561 = vtanh.f32 %v556_v29 }
 0x1fb   :  { %1563 = vtanh.f32 %v548_v31 }
 0x202   :  { %v1558_v32 = vpop.eup %1557 }
 0x203   :  { %v1560_v33 = vpop.eup %1559 }
 0x204   :  { %v1562_v34 = vpop.eup %1561 }
 0x205   :  { %v1564_v35 = vpop.eup %1563  ;;  %v1431_v36 = vpop.f32.mrb[8].mxu1  ;;  %v610_v37 = vpack.c.bf16 %v1562_v34, %v1558_v32 }
 0x206   :  { %v569_v38 = vadd.f32 %v1431_v36, %v1841_v9  ;;  %v560_v39 = vpop.f32.mrb[9].mxu1  ;;  %v609_v40 = vpack.c.bf16 %v1564_v35, %v1560_v33 }
 0x207   :  { %v561_v41 = vadd.f32 %v1841_v9, %v560_v39  ;;  %v1432_v43 = vpop.f32.mrb[10].mxu1 }
 0x208   :  { %1565 = vtanh.f32 %v569_v38  ;;  %v572_v44 = vadd.f32 %v1432_v43, %v1841_v9  ;;  %v563_v45 = vpop.f32.mrb[11].mxu1  ;;  %1457 = vmatprep.mubr.bf16.mxu1 %v609_v40 }
 0x209   :  { %1567 = vtanh.f32 %v561_v41  ;;  %v564_v46 = vadd.f32 %v1841_v9, %v563_v45  ;;  %1458 = vmatmul.mubr.bf16.gmra.mrb[20].mxu1 %v610_v37 }
 0x20a   :  { %1569 = vtanh.f32 %v572_v44 }
 0x20b   :  { %1571 = vtanh.f32 %v564_v46 }
 0x212   :  { %v1566_v47 = vpop.eup %1565 }
 0x213   :  { %v1568_v48 = vpop.eup %1567 }
 0x214   :  { %v1570_v49 = vpop.eup %1569 }
 0x215   :  { %v1572_v50 = vpop.eup %1571  ;;  %v1435_v51 = vpop.f32.mrb[12].mxu1  ;;  %v612_v52 = vpack.c.bf16 %v1570_v49, %v1566_v47 }
 0x216   :  { %v585_v53 = vadd.f32 %v1435_v51, %v1841_v9  ;;  %v576_v54 = vpop.f32.mrb[13].mxu1  ;;  %v611_v55 = vpack.c.bf16 %v1572_v50, %v1568_v48 }
 0x217   :  { %v577_v56 = vadd.f32 %v1841_v9, %v576_v54  ;;  %v1436_v57 = vpop.f32.mrb[14].mxu1 }
 0x218   :  { %1573 = vtanh.f32 %v585_v53  ;;  %v588_v58 = vadd.f32 %v1436_v57, %v1841_v9  ;;  %v579_v59 = vpop.f32.mrb[15].mxu1  ;;  %1461 = vmatprep.mubr.bf16.mxu1 %v611_v55 }
 0x219   :  { %1575 = vtanh.f32 %v577_v56  ;;  %v580_v60 = vadd.f32 %v1841_v9, %v579_v59  ;;  %1462 = vmatmul.mubr.bf16.gmra.mrb[24].mxu1 %v612_v52 }
 0x21a   :  { %1577 = vtanh.f32 %v588_v58 }
 0x21b   :  { %1579 = vtanh.f32 %v580_v60 }
 0x222   :  { %v1574_v61 = vpop.eup %1573 }
 0x223   :  { %v1576_v62 = vpop.eup %1575 }
 0x224   :  { %v1578_v63 = vpop.eup %1577 }
 0x225   :  { %v1580_v0 = vpop.eup %1579  ;;  %v614_v1 = vpack.c.bf16 %v1578_v63, %v1574_v61 }
 0x226   :  { %v613_v2 = vpack.c.bf16 %v1580_v0, %v1576_v62 }
 0x228   :  { %1465 = vmatprep.mubr.bf16.mxu1 %v613_v2 }
 0x229   :  { %1466 = vmatmul.mubr.bf16.gmra.mrb[28].mxu1 %v614_v1 }
 0x2cc   :  { %v1455_v4 = vpop.f32.mrb[16].mxu1 }
 0x2cd   :  { %v729_v5 = vadd.f32 %v1455_v4, %v1180_v3  ;;  %v720_v42 = vpop.f32.mrb[17].mxu1 }
 0x2ce   :  { %v721_v6 = vadd.f32 %v1180_v3, %v720_v42  ;;  %v1456_v7 = vpop.f32.mrb[18].mxu1 }
 0x2cf   :  { %787 = vadd.xlane.f32.xlu1 %v729_v5  ;;  %v723_v8 = vpop.f32.mrb[19].mxu1  ;;  %v732_v9 = vadd.f32 %v1456_v7, %v1180_v3 }
 0x2d0   :  { %783 = vadd.xlane.f32.xlu0 %v721_v6  ;;  %v724_v10 = vadd.f32 %v1180_v3, %v723_v8 }
 0x2d3   :  { %789 = vadd.xlane.f32.xlu1 %v732_v9 }
 0x2d4   :  { %785 = vadd.xlane.f32.xlu0 %v724_v10 }
 0x2dc   :  { %v1459_v11 = vpop.f32.mrb[20].mxu1 }
 0x2dd   :  { %v745_v12 = vadd.f32 %v1459_v11, %v1180_v3  ;;  %v736_v13 = vpop.f32.mrb[21].mxu1 }
 0x2de   :  { %v1460_v14 = vpop.f32.mrb[22].mxu1  ;;  %v737_v17 = vadd.f32 %v1180_v3, %v736_v13 }
 0x2df   :  { %v748_v15 = vadd.f32 %v1460_v14, %v1180_v3  ;;  %v739_v16 = vpop.f32.mrb[23].mxu1  ;;  %795 = vadd.xlane.f32.xlu0 %v745_v12 }
 0x2e0   :  { %v740_v18 = vadd.f32 %v1180_v3, %v739_v16 }
 0x2e1   :  { %797 = vadd.xlane.f32.xlu1 %v748_v15 }
 0x2e3   :  { %791 = vadd.xlane.f32.xlu0 %v737_v17 }
 0x2e5   :  { %793 = vadd.xlane.f32.xlu1 %v740_v18 }
 0x2ec   :  { %v1463_v19 = vpop.f32.mrb[24].mxu1 }
 0x2ed   :  { %v1862_v20 = vadd.f32 %v1463_v19, %v1180_v3  ;;  %v752_v21 = vpop.f32.mrb[25].mxu1 }
 0x2ee   :  { %v1464_v22 = vpop.f32.mrb[26].mxu1  ;;  %v1867_v25 = vadd.f32 %v1180_v3, %v752_v21 }
 0x2ef   :  { %v1864_v23 = vadd.f32 %v1464_v22, %v1180_v3  ;;  %v755_v24 = vpop.f32.mrb[27].mxu1  ;;  %803 = vadd.xlane.f32.xlu0 %v1862_v20 }
 0x2f0   :  { %v1870_v26 = vadd.f32 %v1180_v3, %v755_v24 }
 0x2f1   :  { %805 = vadd.xlane.f32.xlu1 %v1864_v23 }
 0x2f3   :  { %799 = vadd.xlane.f32.xlu0 %v1867_v25 }
 0x2f5   :  { %801 = vadd.xlane.f32.xlu1 %v1870_v26 }
 0x2fc   :  { %v1467_v27 = vpop.f32.mrb[28].mxu1 }
 0x2fd   :  { %v768_v28 = vpop.f32.mrb[29].mxu1  ;;  %v1879_v33 = vadd.f32 %v1467_v27, %v1180_v3 }
 0x2fe   :  { %v1874_v29 = vadd.f32 %v1180_v3, %v768_v28  ;;  %v1468_v30 = vpop.f32.mrb[30].mxu1 }
 0x2ff   :  { %v771_v31 = vpop.f32.mrb[31].mxu1  ;;  %v1882_v34 = vadd.f32 %v1468_v30, %v1180_v3 }
 0x300   :  { %v1876_v32 = vadd.f32 %v1180_v3, %v771_v31  ;;  %807 = vadd.xlane.f32.xlu0 %v1874_v29 }
 0x302   :  { %809 = vadd.xlane.f32.xlu1 %v1876_v32 }
 0x304   :  { %811 = vadd.xlane.f32.xlu0 %v1879_v33 }
 0x306   :  { %813 = vadd.xlane.f32.xlu1 %v1882_v34 }
 0x35c   :  { %v788_v35 = vpop.xlane.xlu1 %787 }
 0x35d   :  { %v818_v36 = vmul.f32 0.0078125, %v788_v35  ;;  %v784_v37 = vpop.xlane.xlu0 %783 }
 0x35e   :  { %v816_v38 = vmul.f32 0.0078125, %v784_v37 }
 0x35f   :  { %v1886_v39 = vsub.f32 %v729_v5, %v818_v36 }
 0x360   :  { %v790_v40 = vpop.xlane.xlu1 %789  ;;  %v1888_v41 = vsub.f32 %v721_v6, %v816_v38 }
 0x361   :  { %v819_v43 = vmul.f32 0.0078125, %v790_v40  ;;  %v786_v44 = vpop.xlane.xlu0 %785  ;;  %v850_v45 = vmul.f32 %v1886_v39, %v1886_v39 }
 0x362   :  { %v817_v46 = vmul.f32 0.0078125, %v786_v44  ;;  %v848_v50 = vmul.f32 %v1888_v41, %v1888_v41 }
 0x363   :  { %v1892_v47 = vsub.f32 %v732_v9, %v819_v43  ;;  %868 = vadd.xlane.f32.xlu0 %v850_v45 }
 0x364   :  { %v1894_v48 = vsub.f32 %v724_v10, %v817_v46 }
 0x365   :  { %v851_v49 = vmul.f32 %v1892_v47, %v1892_v47 }
 0x366   :  { %v849_v51 = vmul.f32 %v1894_v48, %v1894_v48 }
 0x367   :  { %870 = vadd.xlane.f32.xlu1 %v851_v49  ;;  %864 = vadd.xlane.f32.xlu0 %v848_v50 }
 0x36b   :  { %866 = vadd.xlane.f32.xlu1 %v849_v51 }
 0x36c   :  { %v796_v52 = vpop.xlane.xlu0 %795 }
 0x36d   :  { %v822_v53 = vmul.f32 0.0078125, %v796_v52 }
 0x36e   :  { %v798_v54 = vpop.xlane.xlu1 %797 }
 0x36f   :  { %v1902_v55 = vsub.f32 %v745_v12, %v822_v53  ;;  %v823_v56 = vmul.f32 0.0078125, %v798_v54  ;;  %v1961_v53 = vld [vmem:[%s2072_s8] ss:$0 sm:$0xff] }
 0x370   :  { %v792_v57 = vpop.xlane.xlu0 %791 }
 0x371   :  { %v1904_v58 = vsub.f32 %v748_v15, %v823_v56  ;;  %v820_v59 = vmul.f32 0.0078125, %v792_v57  ;;  %v854_v60 = vmul.f32 %v1902_v55, %v1902_v55 }
 0x372   :  { %v794_v61 = vpop.xlane.xlu1 %793 }
 0x373   :  { %v1908_v62 = vsub.f32 %v737_v17, %v820_v59  ;;  %v821_v63 = vmul.f32 0.0078125, %v794_v61  ;;  %876 = vadd.xlane.f32.xlu0 %v854_v60  ;;  %v855_v0 = vmul.f32 %v1904_v58, %v1904_v58 }
 0x375   :  { %v1912_v1 = vsub.f32 %v740_v18, %v821_v63  ;;  %878 = vadd.xlane.f32.xlu1 %v855_v0  ;;  %v852_v2 = vmul.f32 %v1908_v62, %v1908_v62  ;;  %v1968_v63 = vld [vmem:[%s2073_s9] ss:$0 sm:$0xff]  ;;  %v1295_v0 = vld [vmem:[%s2074_s10 + $0x8] sm:$0xff]  }
 0x377   :  { %872 = vadd.xlane.f32.xlu0 %v852_v2  ;;  %v853_v3 = vmul.f32 %v1912_v1, %v1912_v1 }
 0x379   :  { %874 = vadd.xlane.f32.xlu1 %v853_v3 }
 0x37c   :  { %v804_v4 = vpop.xlane.xlu0 %803 }
 0x37d   :  { %v826_v5 = vmul.f32 0.0078125, %v804_v4 }
 0x37e   :  { %v806_v42 = vpop.xlane.xlu1 %805 }
 0x37f   :  { %v1919_v6 = vsub.f32 %v1862_v20, %v826_v5  ;;  %v827_v7 = vmul.f32 0.0078125, %v806_v42 }
 0x380   :  { %v800_v8 = vpop.xlane.xlu0 %799 }
 0x381   :  { %v1922_v9 = vsub.f32 %v1864_v23, %v827_v7  ;;  %v824_v10 = vmul.f32 0.0078125, %v800_v8  ;;  %v858_v11 = vmul.f32 %v1919_v6, %v1919_v6 }
 0x382   :  { %v802_v12 = vpop.xlane.xlu1 %801 }
 0x383   :  { %v1927_v13 = vsub.f32 %v1867_v25, %v824_v10  ;;  %v825_v14 = vmul.f32 0.0078125, %v802_v12  ;;  %884 = vadd.xlane.f32.xlu0 %v858_v11  ;;  %v859_v15 = vmul.f32 %v1922_v9, %v1922_v9  ;;  %v1229_v10 = vunpack.c.l.bf16 %v1295_v0 }
 0x384   :  { %v1230_v12 = vunpack.c.h.bf16 %v1295_v0 }
 0x385   :  { %v1932_v16 = vsub.f32 %v1870_v26, %v825_v14  ;;  %886 = vadd.xlane.f32.xlu1 %v859_v15  ;;  %v856_v17 = vmul.f32 %v1927_v13, %v1927_v13  ;;  %v1224_v15 = vld [vmem:[%s2074_s10] sm:$0xff]  }
 0x387   :  { %880 = vadd.xlane.f32.xlu0 %v856_v17  ;;  %v857_v18 = vmul.f32 %v1932_v16, %v1932_v16 }
 0x389   :  { %882 = vadd.xlane.f32.xlu1 %v857_v18 }
 0x38d   :  { %v808_v19 = vpop.xlane.xlu0 %807 }
 0x38e   :  { %v828_v20 = vmul.f32 0.0078125, %v808_v19 }
 0x38f   :  { %v810_v21 = vpop.xlane.xlu1 %809 }
 0x390   :  { %v1939_v22 = vsub.f32 %v1874_v29, %v828_v20  ;;  %v829_v23 = vmul.f32 0.0078125, %v810_v21 }
 0x391   :  { %v812_v24 = vpop.xlane.xlu0 %811 }
 0x392   :  { %v1942_v25 = vsub.f32 %v1876_v32, %v829_v23  ;;  %v830_v26 = vmul.f32 0.0078125, %v812_v24  ;;  %v860_v27 = vmul.f32 %v1939_v22, %v1939_v22  ;;  %v1225_v23 = vunpack.c.l.bf16 %v1224_v15 }
 0x393   :  { %v814_v28 = vpop.xlane.xlu1 %813  ;;  %v1226_v24 = vunpack.c.h.bf16 %v1224_v15 }
 0x394   :  { %v1947_v30 = vsub.f32 %v1879_v33, %v830_v26  ;;  %v831_v31 = vmul.f32 0.0078125, %v814_v28  ;;  %888 = vadd.xlane.f32.xlu0 %v860_v27  ;;  %v861_v35 = vmul.f32 %v1942_v25, %v1942_v25 }
 0x396   :  { %v1952_v29 = vsub.f32 %v1882_v34, %v831_v31  ;;  %890 = vadd.xlane.f32.xlu1 %v861_v35  ;;  %v862_v32 = vmul.f32 %v1947_v30, %v1947_v30 }
 0x398   :  { %892 = vadd.xlane.f32.xlu0 %v862_v32  ;;  %v863_v36 = vmul.f32 %v1952_v29, %v1952_v29 }
 0x39a   :  { %894 = vadd.xlane.f32.xlu1 %v863_v36 }
 0x3f0   :  { %v869_v37 = vpop.xlane.xlu0 %868 }
 0x3f1   :  { %v898_v33 = vmul.f32 0.0078125, %v869_v37 }
 0x3f3   :  { %v914_v38 = vadd.f32 1e-05, %v898_v33 }
 0x3f4   :  { %v871_v40 = vpop.xlane.xlu1 %870  ;;  %v865_v43 = vpop.xlane.xlu0 %864 }
 0x3f5   :  { %1581 = vrsqrt.f32 %v914_v38  ;;  %v899_v44 = vmul.f32 0.0078125, %v871_v40  ;;  %v896_v45 = vmul.f32 0.0078125, %v865_v43  ;;  %v1297_v40 = vld [vmem:[%s2074_s10 + $0x18] sm:$0xff]  }
 0x3f7   :  { %v915_v46 = vadd.f32 1e-05, %v899_v44  ;;  %v912_v34 = vadd.f32 1e-05, %v896_v45 }
 0x3f8   :  { %v867_v49 = vpop.xlane.xlu1 %866 }
 0x3f9   :  { %1583 = vrsqrt.f32 %v915_v46  ;;  %v897_v50 = vmul.f32 0.0078125, %v867_v49 }
 0x3fa   :  { %1585 = vrsqrt.f32 %v912_v34 }
 0x3fb   :  { %v913_v51 = vadd.f32 1e-05, %v897_v50 }
 0x3fd   :  { %1587 = vrsqrt.f32 %v913_v51 }
 0x3ff   :  { %v1582_v52 = vpop.eup %1581 }
 0x400   :  { %v946_v54 = vmul.f32 %v1582_v52, %v1886_v39  ;;  %v877_v56 = vpop.xlane.xlu0 %876  ;;  %v1237_v52 = vunpack.c.l.bf16 %v1297_v40 }
 0x401   :  { %v902_v57 = vmul.f32 0.0078125, %v877_v56 }
 0x402   :  { %v969_v59 = vmul.f32 %v1961_v53, %v946_v54  ;;  %v879_v60 = vpop.xlane.xlu1 %878  ;;  %v1296_v54 = vld [vmem:[%s2074_s10 + $0x10] sm:$0xff]  }
 0x403   :  { %v1584_v61 = vpop.eup %1583  ;;  %v918_v2 = vadd.f32 1e-05, %v902_v57  ;;  %v903_v3 = vmul.f32 0.0078125, %v879_v60 }
 0x404   :  { %v1586_v4 = vpop.eup %1585  ;;  %v947_v39 = vmul.f32 %v1584_v61, %v1892_v47  ;;  %v873_v5 = vpop.xlane.xlu0 %872  ;;  %v992_v11 = vadd.f32 %v1968_v63, %v969_v59  ;;  %v1238_v59 = vunpack.c.h.bf16 %v1297_v40 }
 0x405   :  { %v944_v42 = vmul.f32 %v1586_v4, %v1888_v41  ;;  %1589 = vrsqrt.f32 %v918_v2  ;;  %v919_v7 = vadd.f32 1e-05, %v903_v3  ;;  %v900_v8 = vmul.f32 0.0078125, %v873_v5 }
 0x406   :  { %v970_v14 = vmul.f32 %v1961_v53, %v947_v39  ;;  %v875_v17 = vpop.xlane.xlu1 %874  ;;  %v1040_v27 = vadd.f32 %v1229_v10, %v992_v11  ;;  %v1233_v39 = vunpack.c.l.bf16 %v1296_v54 }
 0x407   :  { %v1588_v18 = vpop.eup %1587  ;;  %v967_v47 = vmul.f32 %v1961_v53, %v944_v42  ;;  %1591 = vrsqrt.f32 %v919_v7  ;;  %v916_v19 = vadd.f32 1e-05, %v900_v8  ;;  %v901_v41 = vmul.f32 0.0078125, %v875_v17 }
 0x408   :  { %v993_v20 = vadd.f32 %v1968_v63, %v970_v14  ;;  %v945_v21 = vmul.f32 %v1588_v18, %v1894_v48  ;;  %v1234_v8 = vunpack.c.h.bf16 %v1296_v54 }
 0x409   :  { %1593 = vrsqrt.f32 %v916_v19  ;;  %v917_v26 = vadd.f32 1e-05, %v901_v41  ;;  %v990_v31 = vadd.f32 %v1968_v63, %v967_v47 }
 0x40a   :  { %v1041_v28 = vadd.f32 %v1230_v12, %v993_v20  ;;  %v968_v35 = vmul.f32 %v1961_v53, %v945_v21  ;;  %v1299_v21 = vld [vmem:[%s2074_s10 + $0x28] sm:$0xff]  }
 0x40b   :  { %1595 = vrsqrt.f32 %v917_v26  ;;  %v1038_v37 = vadd.f32 %v1225_v23, %v990_v31  ;;  %v1298_v31 = vld [vmem:[%s2074_s10 + $0x20] sm:$0xff]  }
 0x40c   :  { %v1263_v32 = vpack.c.bf16 %v1041_v28, %v1040_v27  ;;  %v991_v36 = vadd.f32 %v1968_v63, %v968_v35 }
 0x40e   :  { %1302 = vst [vmem:[%s2075_s11 + $0x8] sm:$0xff] %v1263_v32   ;;  %v1039_v48 = vadd.f32 %v1226_v24, %v991_v36  ;;  %v1245_v36 = vunpack.c.l.bf16 %v1299_v21 }
 0x40f   :  { %v1590_v33 = vpop.eup %1589 }
 0x410   :  { %v1258_v38 = vpack.c.bf16 %v1039_v48, %v1038_v37  ;;  %v950_v43 = vmul.f32 %v1590_v33, %v1902_v55  ;;  %v885_v44 = vpop.xlane.xlu0 %884  ;;  %v1246_v37 = vunpack.c.h.bf16 %v1299_v21 }
 0x411   :  { %v1592_v45 = vpop.eup %1591  ;;  %v906_v46 = vmul.f32 0.0078125, %v885_v44  ;;  %v1241_v44 = vunpack.c.l.bf16 %v1298_v31 }
 0x412   :  { %1259 = vst [vmem:[%s2075_s11] sm:$0xff] %v1258_v38   ;;  %v973_v34 = vmul.f32 %v1961_v53, %v950_v43  ;;  %v951_v49 = vmul.f32 %v1592_v45, %v1904_v58  ;;  %v887_v50 = vpop.xlane.xlu1 %886 }
 0x413   :  { %v1594_v51 = vpop.eup %1593  ;;  %v922_v56 = vadd.f32 1e-05, %v906_v46  ;;  %v907_v55 = vmul.f32 0.0078125, %v887_v50 }
 0x414   :  { %v996_v57 = vadd.f32 %v1968_v63, %v973_v34  ;;  %v974_v60 = vmul.f32 %v1961_v53, %v951_v49  ;;  %v948_v61 = vmul.f32 %v1594_v51, %v1908_v62  ;;  %v881_v0 = vpop.xlane.xlu0 %880  ;;  %v1242_v49 = vunpack.c.h.bf16 %v1298_v31 }
 0x415   :  { %v1596_v2 = vpop.eup %1595  ;;  %1597 = vrsqrt.f32 %v922_v56  ;;  %v923_v58 = vadd.f32 1e-05, %v907_v55  ;;  %v904_v3 = vmul.f32 0.0078125, %v881_v0 }
 0x416   :  { %v997_v4 = vadd.f32 %v1968_v63, %v974_v60  ;;  %v971_v5 = vmul.f32 %v1961_v53, %v948_v61  ;;  %v949_v42 = vmul.f32 %v1596_v2, %v1912_v1  ;;  %v883_v7 = vpop.xlane.xlu1 %882  ;;  %v1044_v12 = vadd.f32 %v1237_v52, %v996_v57 }
 0x417   :  { %1599 = vrsqrt.f32 %v923_v58  ;;  %v920_v10 = vadd.f32 1e-05, %v904_v3  ;;  %v905_v11 = vmul.f32 0.0078125, %v883_v7 }
 0x418   :  { %v1045_v14 = vadd.f32 %v1238_v59, %v997_v4  ;;  %v994_v62 = vadd.f32 %v1968_v63, %v971_v5  ;;  %v972_v15 = vmul.f32 %v1961_v53, %v949_v42 }
 0x419   :  { %1601 = vrsqrt.f32 %v920_v10  ;;  %v921_v17 = vadd.f32 1e-05, %v905_v11 }
 0x41a   :  { %v1273_v18 = vpack.c.bf16 %v1045_v14, %v1044_v12  ;;  %v995_v47 = vadd.f32 %v1968_v63, %v972_v15  ;;  %v1042_v1 = vadd.f32 %v1233_v39, %v994_v62  ;;  %v1300_v39 = vld [vmem:[%s2074_s10 + $0x30] sm:$0xff]  }
 0x41b   :  { %1603 = vrsqrt.f32 %v921_v17  ;;  %v1249_v11 = vunpack.c.l.bf16 %v1300_v39  ;;  %v1250_v62 = vunpack.c.h.bf16 %v1300_v39  ;;  %v1301_v17 = vld [vmem:[%s2074_s10 + $0x38] sm:$0xff]  }
 0x41c   :  { %1304 = vst [vmem:[%s2075_s11 + $0x18] sm:$0xff] %v1273_v18   ;;  %v1043_v19 = vadd.f32 %v1234_v8, %v995_v47 }
 0x41e   :  { %v1268_v41 = vpack.c.bf16 %v1043_v19, %v1042_v1  ;;  %v1253_v1 = vunpack.c.l.bf16 %v1301_v17  ;;  %v1254_v19 = vunpack.c.h.bf16 %v1301_v17 }
 0x41f   :  { %v1598_v20 = vpop.eup %1597 }
 0x420   :  { %1303 = vst [vmem:[%s2075_s11 + $0x10] sm:$0xff] %v1268_v41   ;;  %v954_v23 = vmul.f32 %v1598_v20, %v1919_v6 }
 0x421   :  { %v1600_v24 = vpop.eup %1599  ;;  %v889_v26 = vpop.xlane.xlu0 %888 }
 0x422   :  { %v977_v27 = vmul.f32 %v1961_v53, %v954_v23  ;;  %v955_v28 = vmul.f32 %v1600_v24, %v1922_v9  ;;  %v908_v35 = vmul.f32 0.0078125, %v889_v26 }
 0x423   :  { %v1602_v32 = vpop.eup %1601  ;;  %v891_v48 = vpop.xlane.xlu1 %890 }
 0x424   :  { %v1000_v33 = vadd.f32 %v1968_v63, %v977_v27  ;;  %v978_v38 = vmul.f32 %v1961_v53, %v955_v28  ;;  %v952_v6 = vmul.f32 %v1602_v32, %v1927_v13  ;;  %v924_v40 = vadd.f32 1e-05, %v908_v35 }
 0x425   :  { %v1604_v43 = vpop.eup %1603  ;;  %v909_v45 = vmul.f32 0.0078125, %v891_v48  ;;  %v893_v9 = vpop.xlane.xlu0 %892 }
 0x426   :  { %v1001_v46 = vadd.f32 %v1968_v63, %v978_v38  ;;  %v975_v34 = vmul.f32 %v1961_v53, %v952_v6  ;;  %v953_v50 = vmul.f32 %v1604_v43, %v1932_v16  ;;  %v1048_v51 = vadd.f32 %v1245_v36, %v1000_v33 }
 0x427   :  { %1605 = vrsqrt.f32 %v924_v40  ;;  %v925_v52 = vadd.f32 1e-05, %v909_v45  ;;  %v910_v54 = vmul.f32 0.0078125, %v893_v9  ;;  %v895_v56 = vpop.xlane.xlu1 %894 }
 0x428   :  { %v1049_v55 = vadd.f32 %v1246_v37, %v1001_v46  ;;  %v998_v13 = vadd.f32 %v1968_v63, %v975_v34  ;;  %v976_v57 = vmul.f32 %v1961_v53, %v953_v50  ;;  %v911_v59 = vmul.f32 0.0078125, %v895_v56 }
 0x429   :  { %1607 = vrsqrt.f32 %v925_v52  ;;  %v926_v60 = vadd.f32 1e-05, %v910_v54 }
 0x42a   :  { %v1283_v61 = vpack.c.bf16 %v1049_v55, %v1048_v51  ;;  %v999_v0 = vadd.f32 %v1968_v63, %v976_v57  ;;  %v927_v2 = vadd.f32 1e-05, %v911_v59  ;;  %v1046_v16 = vadd.f32 %v1241_v44, %v998_v13 }
 0x42b   :  { %1609 = vrsqrt.f32 %v926_v60 }
 0x42c   :  { %1306 = vst [vmem:[%s2075_s11 + $0x28] sm:$0xff] %v1283_v61   ;;  %v1047_v58 = vadd.f32 %v1242_v49, %v999_v0  ;;  %1611 = vrsqrt.f32 %v927_v2 }
 0x42e   :  { %v1278_v3 = vpack.c.bf16 %v1047_v58, %v1046_v16 }
 0x430   :  { %1305 = vst [vmem:[%s2075_s11 + $0x20] sm:$0xff] %v1278_v3  }
 0x431   :  { %v1606_v4 = vpop.eup %1605 }
 0x432   :  { %v956_v5 = vmul.f32 %v1606_v4, %v1939_v22 }
 0x433   :  { %v1608_v42 = vpop.eup %1607 }
 0x434   :  { %v979_v7 = vmul.f32 %v1961_v53, %v956_v5  ;;  %v957_v8 = vmul.f32 %v1608_v42, %v1942_v25 }
 0x435   :  { %v1610_v10 = vpop.eup %1609 }
 0x436   :  { %v1612_v12 = vpop.eup %1611  ;;  %v1002_v14 = vadd.f32 %v1968_v63, %v979_v7  ;;  %v980_v15 = vmul.f32 %v1961_v53, %v957_v8  ;;  %v958_v18 = vmul.f32 %v1610_v10, %v1947_v30 }
 0x437   :  { %v959_v22 = vmul.f32 %v1612_v12, %v1952_v29 }
 0x438   :  { %v1003_v47 = vadd.f32 %v1968_v63, %v980_v15  ;;  %v981_v25 = vmul.f32 %v1961_v53, %v958_v18  ;;  %v1050_v20 = vadd.f32 %v1249_v11, %v1002_v14 }
 0x439   :  { %v982_v41 = vmul.f32 %v1961_v53, %v959_v22 }
 0x43a   :  { %v1051_v21 = vadd.f32 %v1250_v62, %v1003_v47  ;;  %v1004_v23 = vadd.f32 %v1968_v63, %v981_v25 }
 0x43b   :  { %v1005_v24 = vadd.f32 %v1968_v63, %v982_v41 }
 0x43c   :  { %v1288_v26 = vpack.c.bf16 %v1051_v21, %v1050_v20  ;;  %v1052_v27 = vadd.f32 %v1253_v1, %v1004_v23 }
 0x43d   :  { %v1053_v28 = vadd.f32 %v1254_v19, %v1005_v24 }
 0x43e   :  { %1307 = vst [vmem:[%s2075_s11 + $0x30] sm:$0xff] %v1288_v26  }
 0x43f   :  { %v1293_v30 = vpack.c.bf16 %v1053_v28, %v1052_v27 }
 0x441   :  { %1308 = vst [vmem:[%s2075_s11 + $0x38] sm:$0xff] %v1293_v30  }

// kernel: net_forward.10
= control target key start
LH: loop header
LB: loop body
LE: loop exit
PB: predicated region body
PF: predicated region fallthrough
CT: control target
= control target key end

     0   :  { %s2468_s3 = inlined_call_operand.vmem [shape: bf16[384,128], index: 3, kind: input, shape index: {}]   ;;  %s2469_s1 = inlined_call_operand.vmem [shape: bf16[128,128], index: 1, kind: input, shape index: {}]   ;;  %s2470_s0 = inlined_call_operand.vmem [shape: bf16[128,128], index: 0, kind: input, shape index: {}]   ;;  %s2471_s2 = inlined_call_operand.vmem [shape: bf16[128,128], index: 2, kind: input, shape index: {}, may-alias: {2,11}]   ;;  %s2472_s5 = inlined_call_operand.vmem [shape: bf16[128,128], index: 5, kind: input, shape index: {}]   ;;  %s2473_s7 = inlined_call_operand.vmem [shape: bf16[128,128], index: 7, kind: input, shape index: {}]   ;;  %s2474_s4 = inlined_call_operand.vmem [shape: f32[1,128], index: 4, kind: input, shape index: {}]   ;;  %s2475_s6 = inlined_call_operand.vmem [shape: f32[1,128], index: 6, kind: input, shape index: {}]   ;;  %s2476_s8 = inlined_call_operand.vmem [shape: f32[1,128], index: 8, kind: input, shape index: {}]   ;;  %s2477_s9 = inlined_call_operand.vmem [shape: f32[1,128], index: 9, kind: input, shape index: {}]   ;;  %s2478_s10 = inlined_call_operand.vmem [shape: f32[1,128], index: 10, kind: input, shape index: {}]   ;;  %s2479_s11 = inlined_call_operand.vmem [shape: bf16[128,128], index: 11, kind: input, shape index: {}, may-alias: {2,11}]   ;;  %s2480_s12 = inlined_call_operand.vmem [shape: bf16[128,128], index: 12, kind: output, shape index: {}]  }
   0x1   :  { %v1777_v0 = vld [vmem:[%s2468_s3 + $0x40] sm:$0xff]   ;;  %v1779_v2 = vld [vmem:[%s2468_s3 + $0x48] sm:$0xff]   ;;  %v1782_v5 = vld [vmem:[%s2468_s3 + $0x50] sm:$0xff]  }
   0x2   :  { %v1778_v1 = vld [vmem:[%s2468_s3] sm:$0xff]   ;;  %1553 = vmatprep.subr.bf16.mxu0 %v1777_v0  ;;  %v1781_v4 = vld [vmem:[%s2468_s3 + $0x8] sm:$0xff]   ;;  %v1784_v7 = vld [vmem:[%s2468_s3 + $0x10] sm:$0xff]  }
   0x3   :  { %1554 = vmatpush3.bf16.msra.mxu0 %v1778_v1  ;;  %v1780_v3 = vld [vmem:[%s2468_s3 + $0x80] sm:$0xff]   ;;  %v1783_v6 = vld [vmem:[%s2468_s3 + $0x88] sm:$0xff]   ;;  %v1785_v8 = vld [vmem:[%s2468_s3 + $0x58] sm:$0xff]  }
   0x4   :  { %1555 = vmatprep.subr.bf16.mxu0 %v1779_v2  ;;  %1665 = vmatprep.subr.bf16.mxu1 %v1780_v3  ;;  %v1786_v9 = vld [vmem:[%s2468_s3 + $0x90] sm:$0xff]   ;;  %v1787_v10 = vld [vmem:[%s2468_s3 + $0x18] sm:$0xff]   ;;  %v1788_v11 = vld [vmem:[%s2468_s3 + $0x60] sm:$0xff]  }
   0x5   :  { %1666 = vmatpush3.bf16.msra.mxu1 %v1780_v3  ;;  %v1789_v12 = vld [vmem:[%s2468_s3 + $0x98] sm:$0xff]   ;;  %v1790_v13 = vld [vmem:[%s2468_s3 + $0x20] sm:$0xff]   ;;  %v1791_v15 = vld [vmem:[%s2468_s3 + $0x68] sm:$0xff]  }
   0x6   :  { %1667 = vmatprep.subr.bf16.mxu1 %v1783_v6  ;;  %v1792_v14 = vld [vmem:[%s2468_s3 + $0xa0] sm:$0xff]   ;;  %v1793_v16 = vld [vmem:[%s2468_s3 + $0x28] sm:$0xff]   ;;  %v1794_v18 = vld [vmem:[%s2468_s3 + $0x70] sm:$0xff]  }
   0x7   :  { %1556 = vmatpush3.bf16.msra.mxu0 %v1781_v4  ;;  %v1795_v17 = vld [vmem:[%s2468_s3 + $0xa8] sm:$0xff]   ;;  %v1796_v19 = vld [vmem:[%s2468_s3 + $0x30] sm:$0xff]   ;;  %v1800_v21 = vld [vmem:[%s2469_s1] sm:$0xff]  }
   0x8   :  { %1557 = vmatprep.subr.bf16.mxu0 %v1782_v5  ;;  %v1798_v20 = vld [vmem:[%s2468_s3 + $0xb0] sm:$0xff]   ;;  %v1797_v22 = vld [vmem:[%s2468_s3 + $0x78] sm:$0xff]   ;;  %465 = vmatprep.mubr.bf16.mxu0 %v1800_v21  ;;  %v1803_v24 = vld [vmem:[%s2471_s2] sm:$0xff]  }
   0x9   :  { %1668 = vmatpush3.bf16.msra.mxu1 %v1783_v6  ;;  %v1799_v23 = vld [vmem:[%s2468_s3 + $0x38] sm:$0xff]   ;;  %1681 = vmatprep.mubr.bf16.mxu1 %v1803_v24  ;;  %v1801_v26 = vld [vmem:[%s2470_s0] sm:$0xff]   ;;  %v1805_v27 = vld [vmem:[%s2469_s1 + $0x8] sm:$0xff]  }
   0xa   :  { %1669 = vmatprep.subr.bf16.mxu1 %v1786_v9  ;;  %v1802_v25 = vld [vmem:[%s2468_s3 + $0xb8] sm:$0xff]   ;;  %v1804_v28 = vld [vmem:[%s2471_s2 + $0x8] sm:$0xff]   ;;  %v1809_v29 = vld [vmem:[%s2471_s2 + $0x10] sm:$0xff]  }
   0xb   :  { %1558 = vmatpush3.bf16.msra.mxu0 %v1784_v7  ;;  %v1806_v30 = vld [vmem:[%s2470_s0 + $0x8] sm:$0xff]   ;;  %v1807_v31 = vld [vmem:[%s2469_s1 + $0x10] sm:$0xff]   ;;  %v1810_v32 = vld [vmem:[%s2471_s2 + $0x18] sm:$0xff]  }
   0xc   :  { %1559 = vmatprep.subr.bf16.mxu0 %v1785_v8  ;;  %v1815_v33 = vld [vmem:[%s2471_s2 + $0x20] sm:$0xff]   ;;  %v1808_v34 = vld [vmem:[%s2470_s0 + $0x10] sm:$0xff]   ;;  %v1811_v35 = vld [vmem:[%s2469_s1 + $0x18] sm:$0xff]  }
   0xd   :  { %1670 = vmatpush3.bf16.msra.mxu1 %v1786_v9  ;;  %v1816_v36 = vld [vmem:[%s2471_s2 + $0x28] sm:$0xff]   ;;  %v1821_v37 = vld [vmem:[%s2471_s2 + $0x30] sm:$0xff]   ;;  %v1825_v38 = vld [vmem:[%s2472_s5] sm:$0xff]  }
   0xe   :  { %1671 = vmatprep.subr.bf16.mxu1 %v1789_v12  ;;  %v1812_v39 = vld [vmem:[%s2470_s0 + $0x18] sm:$0xff]   ;;  %v1813_v40 = vld [vmem:[%s2469_s1 + $0x20] sm:$0xff]   ;;  %v1817_v43 = vld [vmem:[%s2469_s1 + $0x28] sm:$0xff]  }
   0xf   :  { %1560 = vmatpush3.bf16.msra.mxu0 %v1787_v10  ;;  %v1822_v41 = vld [vmem:[%s2471_s2 + $0x38] sm:$0xff]   ;;  %v1814_v42 = vld [vmem:[%s2470_s0 + $0x20] sm:$0xff]   ;;  %v1818_v44 = vld [vmem:[%s2470_s0 + $0x28] sm:$0xff]  }
  0x10   :  { %1561 = vmatprep.subr.bf16.mxu0 %v1788_v11  ;;  %v1819_v45 = vld [vmem:[%s2469_s1 + $0x30] sm:$0xff]   ;;  %v1823_v47 = vld [vmem:[%s2469_s1 + $0x38] sm:$0xff]   ;;  %v1826_v49 = vld [vmem:[%s2472_s5 + $0x8] sm:$0xff]  }
  0x11   :  { %1672 = vmatpush3.bf16.msra.mxu1 %v1789_v12  ;;  %v1820_v46 = vld [vmem:[%s2470_s0 + $0x30] sm:$0xff]   ;;  %v1824_v48 = vld [vmem:[%s2470_s0 + $0x38] sm:$0xff]   ;;  %v1829_v52 = vld [vmem:[%s2472_s5 + $0x20] sm:$0xff]  }
  0x12   :  { %1673 = vmatprep.subr.bf16.mxu1 %v1792_v14  ;;  %v1827_v50 = vld [vmem:[%s2472_s5 + $0x10] sm:$0xff]   ;;  %v1828_v51 = vld [vmem:[%s2472_s5 + $0x18] sm:$0xff]   ;;  %v1830_v53 = vld [vmem:[%s2472_s5 + $0x28] sm:$0xff]  }
  0x13   :  { %1562 = vmatpush3.bf16.msra.mxu0 %v1790_v13  ;;  %v1831_v54 = vld [vmem:[%s2472_s5 + $0x30] sm:$0xff]   ;;  %v1832_v55 = vld [vmem:[%s2472_s5 + $0x38] sm:$0xff]   ;;  %v2173_v56 = vld [vmem:[%s2473_s7] sm:$0xff]  }
  0x14   :  { %1563 = vmatprep.subr.bf16.mxu0 %v1791_v15  ;;  %v2178_v57 = vld [vmem:[%s2473_s7 + $0x8] sm:$0xff]   ;;  %v2184_v58 = vld [vmem:[%s2473_s7 + $0x10] sm:$0xff]   ;;  %v2195_v61 = vld [vmem:[%s2474_s4] ss:$0 sm:$0xff] }
  0x15   :  { %1674 = vmatpush3.bf16.msra.mxu1 %v1792_v14 }
  0x16   :  { %1675 = vmatprep.subr.bf16.mxu1 %v1795_v17 }
  0x17   :  { %1564 = vmatpush3.bf16.msra.mxu0 %v1793_v16 }
  0x18   :  { %1565 = vmatprep.subr.bf16.mxu0 %v1794_v18 }
  0x19   :  { %1676 = vmatpush3.bf16.msra.mxu1 %v1795_v17 }
  0x1a   :  { %1677 = vmatprep.subr.bf16.mxu1 %v1798_v20 }
  0x1b   :  { %1566 = vmatpush3.bf16.msra.mxu0 %v1796_v19 }
  0x1c   :  { %1567 = vmatprep.subr.bf16.mxu0 %v1797_v22 }
  0x1d   :  { %1678 = vmatpush3.bf16.msra.mxu1 %v1798_v20 }
  0x1e   :  { %1679 = vmatprep.subr.bf16.mxu1 %v1802_v25 }
  0x1f   :  { %1568 = vmatpush3.bf16.msra.mxu0 %v1799_v23 }
  0x20   :  { %1729 = vmatprep.subr.bf16.mxu0 %v2173_v56 }
  0x21   :  { %1680 = vmatpush3.bf16.msra.mxu1 %v1802_v25 }
  0x22   :  { %466 = vmatmul.mubr.bf16.vlgmr.msra.gmra.mrb[0].mxu0 %v1801_v26  ;;  %1697 = vmatprep.subr.bf16.mxu1 %v1825_v38 }
  0x23   :  { %473 = vmatprep.mubr.bf16.mxu0 %v1805_v27  ;;  %1730 = vmatpush3.bf16.msra.mxu0 %v2173_v56 }
  0x24   :  { %1682 = vmatmul.mubr.bf16.vlgmr.msra.gmra.mrb[0].mxu1 %v1804_v28  ;;  %1731 = vmatprep.subr.bf16.mxu0 %v2178_v57 }
  0x25   :  { %1685 = vmatprep.mubr.bf16.mxu1 %v1809_v29  ;;  %1698 = vmatpush3.bf16.msra.mxu1 %v1825_v38 }
  0x26   :  { %1699 = vmatprep.subr.bf16.mxu1 %v1826_v49 }
  0x27   :  { %1732 = vmatpush3.bf16.msra.mxu0 %v2178_v57 }
  0x28   :  { %1733 = vmatprep.subr.bf16.mxu0 %v2184_v58 }
  0x29   :  { %1700 = vmatpush3.bf16.msra.mxu1 %v1826_v49 }
  0x2a   :  { %474 = vmatmul.mubr.bf16.gmra.mrb[4].mxu0 %v1806_v30  ;;  %1701 = vmatprep.subr.bf16.mxu1 %v1827_v50 }
  0x2b   :  { %481 = vmatprep.mubr.bf16.mxu0 %v1807_v31  ;;  %1734 = vmatpush3.bf16.msra.mxu0 %v2184_v58 }
  0x2c   :  { %1686 = vmatmul.mubr.bf16.gmra.mrb[4].mxu1 %v1810_v32 }
  0x2d   :  { %1689 = vmatprep.mubr.bf16.mxu1 %v1815_v33  ;;  %1702 = vmatpush3.bf16.msra.mxu1 %v1827_v50 }
  0x2e   :  { %1703 = vmatprep.subr.bf16.mxu1 %v1828_v51 }
  0x31   :  { %1704 = vmatpush3.bf16.msra.mxu1 %v1828_v51 }
  0x32   :  { %482 = vmatmul.mubr.bf16.gmra.mrb[8].mxu0 %v1808_v34  ;;  %1705 = vmatprep.subr.bf16.mxu1 %v1829_v52 }
  0x33   :  { %489 = vmatprep.mubr.bf16.mxu0 %v1811_v35 }
  0x34   :  { %1690 = vmatmul.mubr.bf16.gmra.mrb[8].mxu1 %v1816_v36 }
  0x35   :  { %1693 = vmatprep.mubr.bf16.mxu1 %v1821_v37  ;;  %1706 = vmatpush3.bf16.msra.mxu1 %v1829_v52 }
  0x36   :  { %1707 = vmatprep.subr.bf16.mxu1 %v1830_v53 }
  0x39   :  { %1708 = vmatpush3.bf16.msra.mxu1 %v1830_v53 }
  0x3a   :  { %490 = vmatmul.mubr.bf16.gmra.mrb[12].mxu0 %v1812_v39  ;;  %1709 = vmatprep.subr.bf16.mxu1 %v1831_v54 }
  0x3b   :  { %497 = vmatprep.mubr.bf16.mxu0 %v1813_v40 }
  0x3c   :  { %1694 = vmatmul.mubr.bf16.gmra.mrb[12].mxu1 %v1822_v41 }
  0x3d   :  { %1710 = vmatpush3.bf16.msra.mxu1 %v1831_v54 }
  0x3e   :  { %1711 = vmatprep.subr.bf16.mxu1 %v1832_v55 }
  0x41   :  { %1712 = vmatpush3.bf16.msra.mxu1 %v1832_v55 }
  0x42   :  { %498 = vmatmul.mubr.bf16.gmra.mrb[16].mxu0 %v1814_v42  ;;  %1761 = vmatprep.subr.bf16.mxu1 %v2173_v56 }
  0x43   :  { %505 = vmatprep.mubr.bf16.mxu0 %v1817_v43 }
  0x4a   :  { %506 = vmatmul.mubr.bf16.gmra.mrb[20].mxu0 %v1818_v44 }
  0x4b   :  { %513 = vmatprep.mubr.bf16.mxu0 %v1819_v45 }
  0x52   :  { %514 = vmatmul.mubr.bf16.gmra.mrb[24].mxu0 %v1820_v46 }
  0x53   :  { %521 = vmatprep.mubr.bf16.mxu0 %v1823_v47 }
  0x5a   :  { %522 = vmatmul.mubr.bf16.gmra.mrb[28].mxu0 %v1824_v48 }
  0xf5   :  { %v1569_v59 = vpop.f32.mrb[0].mxu0 }
  0xf6   :  { %v1570_v60 = vpop.f32.mrb[1].mxu0 }
  0xf7   :  { %v1571_v62 = vadd.f32 %v1570_v60, %v1569_v59  ;;  %v1572_v63 = vpop.f32.mrb[2].mxu0  ;;  %v1683_v1 = vpop.f32.mrb[0].mxu1 }
  0xf8   :  { %v1573_v0 = vpop.f32.mrb[3].mxu0  ;;  %v564_v4 = vpop.f32.mrb[1].mxu1 }
  0xf9   :  { %v1574_v2 = vadd.f32 %v1573_v0, %v1572_v63  ;;  %v468_v3 = vadd.f32 %v1571_v62, %v2195_v61  ;;  %v1684_v5 = vpop.f32.mrb[2].mxu1 }
  0xfa   :  { %v567_v8 = vpop.f32.mrb[3].mxu1 }
  0xfb   :  { %v565_v6 = vadd.f32 %v564_v4, %v468_v3  ;;  %v471_v7 = vadd.f32 %v1574_v2, %v2195_v61 }
  0xfd   :  { %v568_v9 = vadd.f32 %v567_v8, %v471_v7  ;;  %v1575_v10 = vpop.f32.mrb[4].mxu0  ;;  %1841 = vtanh.f32 %v565_v6 }
  0xfe   :  { %v1576_v11 = vpop.f32.mrb[5].mxu0 }
  0xff   :  { %1843 = vtanh.f32 %v568_v9  ;;  %v1577_v12 = vadd.f32 %v1576_v11, %v1575_v10  ;;  %v1578_v13 = vpop.f32.mrb[6].mxu0  ;;  %v1687_v15 = vpop.f32.mrb[4].mxu1 }
 0x100   :  { %v1579_v14 = vpop.f32.mrb[7].mxu0  ;;  %v580_v18 = vpop.f32.mrb[5].mxu1 }
 0x101   :  { %v476_v16 = vadd.f32 %v1577_v12, %v2195_v61  ;;  %v1580_v17 = vadd.f32 %v1579_v14, %v1578_v13  ;;  %v1688_v19 = vpop.f32.mrb[6].mxu1 }
 0x102   :  { %v583_v22 = vpop.f32.mrb[7].mxu1 }
 0x103   :  { %v573_v20 = vadd.f32 %v1683_v1, %v476_v16  ;;  %v479_v21 = vadd.f32 %v1580_v17, %v2195_v61 }
 0x105   :  { %v576_v23 = vadd.f32 %v1684_v5, %v479_v21  ;;  %v1581_v24 = vpop.f32.mrb[8].mxu0  ;;  %1845 = vtanh.f32 %v573_v20 }
 0x106   :  { %v1582_v25 = vpop.f32.mrb[9].mxu0 }
 0x107   :  { %1847 = vtanh.f32 %v576_v23  ;;  %v1583_v26 = vadd.f32 %v1582_v25, %v1581_v24  ;;  %v1584_v27 = vpop.f32.mrb[10].mxu0  ;;  %v1842_v28 = vpop.eup %1841 }
 0x108   :  { %v1585_v29 = vpop.f32.mrb[11].mxu0  ;;  %v2201_v30 = vpop.f32.mrb[8].mxu1 }
 0x109   :  { %v1844_v31 = vpop.eup %1843  ;;  %v1586_v32 = vadd.f32 %v1585_v29, %v1584_v27  ;;  %v484_v33 = vadd.f32 %v1583_v26, %v2195_v61  ;;  %v596_v34 = vpop.f32.mrb[9].mxu1 }
 0x10a   :  { %v643_v35 = vpack.c.bf16 %v1844_v31, %v1842_v28  ;;  %v1692_v36 = vpop.f32.mrb[10].mxu1 }
 0x10b   :  { %v581_v37 = vadd.f32 %v580_v18, %v484_v33  ;;  %v487_v38 = vadd.f32 %v1586_v32, %v2195_v61  ;;  %v599_v39 = vpop.f32.mrb[11].mxu1 }
 0x10c   :  { %1713 = vmatprep.mubr.bf16.mxu1 %v643_v35 }
 0x10d   :  { %v584_v40 = vadd.f32 %v583_v22, %v487_v38  ;;  %v1587_v41 = vpop.f32.mrb[12].mxu0  ;;  %1849 = vtanh.f32 %v581_v37 }
 0x10e   :  { %v1588_v42 = vpop.f32.mrb[13].mxu0 }
 0x10f   :  { %1851 = vtanh.f32 %v584_v40  ;;  %v1589_v43 = vadd.f32 %v1588_v42, %v1587_v41  ;;  %v1590_v44 = vpop.f32.mrb[14].mxu0  ;;  %v1846_v45 = vpop.eup %1845 }
 0x110   :  { %v1591_v46 = vpop.f32.mrb[15].mxu0  ;;  %v2205_v47 = vpop.f32.mrb[12].mxu1 }
 0x111   :  { %v1848_v48 = vpop.eup %1847  ;;  %v492_v49 = vadd.f32 %v1589_v43, %v2195_v61  ;;  %v1592_v50 = vadd.f32 %v1591_v46, %v1590_v44  ;;  %v612_v51 = vpop.f32.mrb[13].mxu1 }
 0x112   :  { %v644_v52 = vpack.c.bf16 %v1848_v48, %v1846_v45  ;;  %v2208_v53 = vpop.f32.mrb[14].mxu1 }
 0x113   :  { %v589_v54 = vadd.f32 %v1687_v15, %v492_v49  ;;  %v495_v55 = vadd.f32 %v1592_v50, %v2195_v61  ;;  %v615_v59 = vpop.f32.mrb[15].mxu1 }
 0x114   :  { %1714 = vmatmul.mubr.bf16.vlgmr.msra.gmra.mrb[16].mxu1 %v644_v52 }
 0x115   :  { %v592_v60 = vadd.f32 %v1688_v19, %v495_v55  ;;  %v1593_v62 = vpop.f32.mrb[16].mxu0  ;;  %1769 = vmatpush3.bf16.msra.mxu1 %v2173_v56  ;;  %1853 = vtanh.f32 %v589_v54  ;;  %v1836_v55 = vld [vmem:[%s2473_s7 + $0x18] sm:$0xff]  }
 0x116   :  { %v1594_v63 = vpop.f32.mrb[17].mxu0  ;;  %1762 = vmatprep.subr.bf16.mxu1 %v2178_v57  ;;  %1735 = vmatprep.subr.bf16.mxu0 %v1836_v55 }
 0x117   :  { %1855 = vtanh.f32 %v592_v60  ;;  %v1595_v0 = vadd.f32 %v1594_v63, %v1593_v62  ;;  %v1596_v1 = vpop.f32.mrb[18].mxu0  ;;  %v1850_v2 = vpop.eup %1849  ;;  %1736 = vmatpush3.bf16.msra.mxu0 %v1836_v55  ;;  %v2245_v60 = vld [vmem:[%s2475_s6] ss:$0 sm:$0xff] }
 0x118   :  { %v1597_v3 = vpop.f32.mrb[19].mxu0 }
 0x119   :  { %v1852_v4 = vpop.eup %1851  ;;  %v1598_v5 = vadd.f32 %v1597_v3, %v1596_v1  ;;  %v500_v6 = vadd.f32 %v1595_v0, %v2195_v61  ;;  %1770 = vmatpush3.bf16.msra.mxu1 %v2178_v57 }
 0x11a   :  { %v645_v7 = vpack.c.bf16 %v1852_v4, %v1850_v2  ;;  %1763 = vmatprep.subr.bf16.mxu1 %v2184_v58 }
 0x11b   :  { %v597_v8 = vadd.f32 %v596_v34, %v500_v6  ;;  %v503_v56 = vadd.f32 %v1598_v5, %v2195_v61 }
 0x11c   :  { %1717 = vmatprep.mubr.bf16.mxu1 %v645_v7 }
 0x11d   :  { %v600_v9 = vadd.f32 %v599_v39, %v503_v56  ;;  %v1599_v10 = vpop.f32.mrb[20].mxu0  ;;  %1771 = vmatpush3.bf16.msra.mxu1 %v2184_v58  ;;  %1857 = vtanh.f32 %v597_v8 }
 0x11e   :  { %v1600_v11 = vpop.f32.mrb[21].mxu0  ;;  %1764 = vmatprep.subr.bf16.mxu1 %v1836_v55 }
 0x11f   :  { %1859 = vtanh.f32 %v600_v9  ;;  %v1601_v12 = vadd.f32 %v1600_v11, %v1599_v10  ;;  %v1602_v13 = vpop.f32.mrb[22].mxu0  ;;  %v1854_v14 = vpop.eup %1853 }
 0x120   :  { %v1603_v15 = vpop.f32.mrb[23].mxu0 }
 0x121   :  { %v1856_v16 = vpop.eup %1855  ;;  %v508_v57 = vadd.f32 %v1601_v12, %v2195_v61  ;;  %v1604_v17 = vadd.f32 %v1603_v15, %v1602_v13  ;;  %1772 = vmatpush3.bf16.msra.mxu1 %v1836_v55 }
 0x122   :  { %v646_v18 = vpack.c.bf16 %v1856_v16, %v1854_v14 }
 0x123   :  { %v605_v19 = vadd.f32 %v2201_v30, %v508_v57  ;;  %v511_v20 = vadd.f32 %v1604_v17, %v2195_v61 }
 0x124   :  { %1718 = vmatmul.mubr.bf16.gmra.mrb[20].mxu1 %v646_v18 }
 0x125   :  { %v608_v21 = vadd.f32 %v1692_v36, %v511_v20  ;;  %v1605_v22 = vpop.f32.mrb[24].mxu0  ;;  %1861 = vtanh.f32 %v605_v19 }
 0x126   :  { %v1606_v58 = vpop.f32.mrb[25].mxu0 }
 0x127   :  { %1863 = vtanh.f32 %v608_v21  ;;  %v1607_v23 = vadd.f32 %v1606_v58, %v1605_v22  ;;  %v1608_v24 = vpop.f32.mrb[26].mxu0  ;;  %v1858_v25 = vpop.eup %1857 }
 0x128   :  { %v1609_v26 = vpop.f32.mrb[27].mxu0 }
 0x129   :  { %v1860_v27 = vpop.eup %1859  ;;  %v1610_v28 = vadd.f32 %v1609_v26, %v1608_v24  ;;  %v516_v29 = vadd.f32 %v1607_v23, %v2195_v61 }
 0x12a   :  { %v647_v31 = vpack.c.bf16 %v1860_v27, %v1858_v25 }
 0x12b   :  { %v613_v32 = vadd.f32 %v612_v51, %v516_v29  ;;  %v519_v30 = vadd.f32 %v1610_v28, %v2195_v61 }
 0x12c   :  { %1721 = vmatprep.mubr.bf16.mxu1 %v647_v31 }
 0x12d   :  { %v616_v33 = vadd.f32 %v615_v59, %v519_v30  ;;  %v1611_v34 = vpop.f32.mrb[28].mxu0  ;;  %1865 = vtanh.f32 %v613_v32  ;;  %v1840_v59 = vld [vmem:[%s2473_s7 + $0x38] sm:$0xff]  }
 0x12e   :  { %v1612_v35 = vpop.f32.mrb[29].mxu0 }
 0x12f   :  { %1867 = vtanh.f32 %v616_v33  ;;  %v1613_v36 = vadd.f32 %v1612_v35, %v1611_v34  ;;  %v1614_v37 = vpop.f32.mrb[30].mxu0  ;;  %v1862_v38 = vpop.eup %1861 }
 0x130   :  { %v1615_v39 = vpop.f32.mrb[31].mxu0 }
 0x131   :  { %v1864_v40 = vpop.eup %1863  ;;  %v524_v41 = vadd.f32 %v1613_v36, %v2195_v61  ;;  %v1616_v42 = vadd.f32 %v1615_v39, %v1614_v37 }
 0x132   :  { %v648_v43 = vpack.c.bf16 %v1864_v40, %v1862_v38 }
 0x133   :  { %v621_v44 = vadd.f32 %v2205_v47, %v524_v41  ;;  %v527_v45 = vadd.f32 %v1616_v42, %v2195_v61  ;;  %v1837_v61 = vld [vmem:[%s2473_s7 + $0x20] sm:$0xff]   ;;  %v1838_v47 = vld [vmem:[%s2473_s7 + $0x28] sm:$0xff]  }
 0x134   :  { %1722 = vmatmul.mubr.bf16.gmra.mrb[24].mxu1 %v648_v43  ;;  %1737 = vmatprep.subr.bf16.mxu0 %v1837_v61 }
 0x135   :  { %v624_v46 = vadd.f32 %v2208_v53, %v527_v45  ;;  %1869 = vtanh.f32 %v621_v44  ;;  %1765 = vmatprep.subr.bf16.mxu1 %v1837_v61  ;;  %1738 = vmatpush3.bf16.msra.mxu0 %v1837_v61  ;;  %v1839_v53 = vld [vmem:[%s2473_s7 + $0x30] sm:$0xff]  }
 0x136   :  { %1773 = vmatpush3.bf16.msra.mxu1 %v1837_v61  ;;  %1739 = vmatprep.subr.bf16.mxu0 %v1838_v47 }
 0x137   :  { %1871 = vtanh.f32 %v624_v46  ;;  %v1866_v48 = vpop.eup %1865  ;;  %1766 = vmatprep.subr.bf16.mxu1 %v1838_v47 }
 0x139   :  { %v1868_v49 = vpop.eup %1867  ;;  %1740 = vmatpush3.bf16.msra.mxu0 %v1838_v47 }
 0x13a   :  { %v649_v50 = vpack.c.bf16 %v1868_v49, %v1866_v48  ;;  %1774 = vmatpush3.bf16.msra.mxu1 %v1838_v47  ;;  %1741 = vmatprep.subr.bf16.mxu0 %v1839_v53 }
 0x13b   :  { %1767 = vmatprep.subr.bf16.mxu1 %v1839_v53 }
 0x13c   :  { %1725 = vmatprep.mubr.bf16.mxu1 %v649_v50 }
 0x13d   :  { %1742 = vmatpush3.bf16.msra.mxu0 %v1839_v53 }
 0x13e   :  { %1775 = vmatpush3.bf16.msra.mxu1 %v1839_v53  ;;  %1743 = vmatprep.subr.bf16.mxu0 %v1840_v59 }
 0x13f   :  { %v1870_v51 = vpop.eup %1869  ;;  %1768 = vmatprep.subr.bf16.mxu1 %v1840_v59 }
 0x141   :  { %v1872_v52 = vpop.eup %1871  ;;  %1744 = vmatpush3.bf16.msra.mxu0 %v1840_v59 }
 0x142   :  { %v650_v54 = vpack.c.bf16 %v1872_v52, %v1870_v51  ;;  %1776 = vmatpush3.bf16.msra.mxu1 %v1840_v59  ;;  %v1424_v52 = vld [vmem:[%s2476_s8] ss:$0 sm:$0xff] }
 0x144   :  { %1726 = vmatmul.mubr.bf16.gmra.mrb[28].mxu1 %v650_v54 }
 0x1e7   :  { %v1715_v62 = vpop.f32.mrb[16].mxu1 }
 0x1e8   :  { %v765_v63 = vadd.f32 %v1715_v62, %v2245_v60  ;;  %v756_v0 = vpop.f32.mrb[17].mxu1 }
 0x1e9   :  { %v757_v1 = vadd.f32 %v2245_v60, %v756_v0  ;;  %v1716_v2 = vpop.f32.mrb[18].mxu1 }
 0x1ea   :  { %1873 = vtanh.f32 %v765_v63  ;;  %v768_v3 = vadd.f32 %v1716_v2, %v2245_v60  ;;  %v759_v4 = vpop.f32.mrb[19].mxu1 }
 0x1eb   :  { %1875 = vtanh.f32 %v757_v1  ;;  %v760_v5 = vadd.f32 %v2245_v60, %v759_v4 }
 0x1ec   :  { %1877 = vtanh.f32 %v768_v3 }
 0x1ed   :  { %1879 = vtanh.f32 %v760_v5 }
 0x1f4   :  { %v1874_v6 = vpop.eup %1873 }
 0x1f5   :  { %v1876_v7 = vpop.eup %1875 }
 0x1f6   :  { %v1878_v8 = vpop.eup %1877 }
 0x1f7   :  { %v1880_v56 = vpop.eup %1879  ;;  %v1719_v9 = vpop.f32.mrb[20].mxu1  ;;  %v836_v10 = vpack.c.bf16 %v1878_v8, %v1874_v6 }
 0x1f8   :  { %v781_v11 = vadd.f32 %v1719_v9, %v2245_v60  ;;  %v772_v12 = vpop.f32.mrb[21].mxu1  ;;  %v835_v13 = vpack.c.bf16 %v1880_v56, %v1876_v7 }
 0x1f9   :  { %v773_v14 = vadd.f32 %v2245_v60, %v772_v12  ;;  %v1720_v15 = vpop.f32.mrb[22].mxu1 }
 0x1fa   :  { %1881 = vtanh.f32 %v781_v11  ;;  %v784_v16 = vadd.f32 %v1720_v15, %v2245_v60  ;;  %v775_v57 = vpop.f32.mrb[23].mxu1  ;;  %1745 = vmatprep.mubr.bf16.mxu0 %v835_v13 }
 0x1fb   :  { %1883 = vtanh.f32 %v773_v14  ;;  %v776_v17 = vadd.f32 %v2245_v60, %v775_v57  ;;  %1746 = vmatmul.mubr.bf16.vlgmr.msra.gmra.mrb[32].mxu0 %v836_v10 }
 0x1fc   :  { %1885 = vtanh.f32 %v784_v16 }
 0x1fd   :  { %1887 = vtanh.f32 %v776_v17 }
 0x204   :  { %v1882_v18 = vpop.eup %1881 }
 0x205   :  { %v1884_v19 = vpop.eup %1883 }
 0x206   :  { %v1886_v20 = vpop.eup %1885 }
 0x207   :  { %v1888_v21 = vpop.eup %1887  ;;  %v1723_v22 = vpop.f32.mrb[24].mxu1  ;;  %v838_v58 = vpack.c.bf16 %v1886_v20, %v1882_v18 }
 0x208   :  { %v797_v23 = vadd.f32 %v1723_v22, %v2245_v60  ;;  %v788_v24 = vpop.f32.mrb[25].mxu1  ;;  %v837_v25 = vpack.c.bf16 %v1888_v21, %v1884_v19 }
 0x209   :  { %v789_v26 = vadd.f32 %v2245_v60, %v788_v24  ;;  %v1724_v27 = vpop.f32.mrb[26].mxu1 }
 0x20a   :  { %1889 = vtanh.f32 %v797_v23  ;;  %v800_v28 = vadd.f32 %v1724_v27, %v2245_v60  ;;  %v791_v29 = vpop.f32.mrb[27].mxu1  ;;  %1749 = vmatprep.mubr.bf16.mxu0 %v837_v25 }
 0x20b   :  { %1891 = vtanh.f32 %v789_v26  ;;  %v792_v31 = vadd.f32 %v2245_v60, %v791_v29  ;;  %1750 = vmatmul.mubr.bf16.gmra.mrb[36].mxu0 %v838_v58 }
 0x20c   :  { %1893 = vtanh.f32 %v800_v28 }
 0x20d   :  { %1895 = vtanh.f32 %v792_v31 }
 0x214   :  { %v1890_v32 = vpop.eup %1889 }
 0x215   :  { %v1892_v30 = vpop.eup %1891 }
 0x216   :  { %v1894_v33 = vpop.eup %1893 }
 0x217   :  { %v1896_v34 = vpop.eup %1895  ;;  %v1727_v35 = vpop.f32.mrb[28].mxu1  ;;  %v840_v36 = vpack.c.bf16 %v1894_v33, %v1890_v32 }
 0x218   :  { %v813_v37 = vadd.f32 %v1727_v35, %v2245_v60  ;;  %v804_v38 = vpop.f32.mrb[29].mxu1  ;;  %v839_v39 = vpack.c.bf16 %v1896_v34, %v1892_v30 }
 0x219   :  { %v805_v40 = vadd.f32 %v2245_v60, %v804_v38  ;;  %v1728_v41 = vpop.f32.mrb[30].mxu1 }
 0x21a   :  { %1897 = vtanh.f32 %v813_v37  ;;  %v816_v42 = vadd.f32 %v1728_v41, %v2245_v60  ;;  %v807_v43 = vpop.f32.mrb[31].mxu1  ;;  %1753 = vmatprep.mubr.bf16.mxu1 %v839_v39 }
 0x21b   :  { %1899 = vtanh.f32 %v805_v40  ;;  %v808_v44 = vadd.f32 %v2245_v60, %v807_v43  ;;  %1754 = vmatmul.mubr.bf16.vlgmr.msra.gmra.mrb[32].mxu1 %v840_v36 }
 0x21c   :  { %1901 = vtanh.f32 %v816_v42 }
 0x21d   :  { %1903 = vtanh.f32 %v808_v44 }
 0x224   :  { %v1898_v45 = vpop.eup %1897 }
 0x225   :  { %v1900_v46 = vpop.eup %1899 }
 0x226   :  { %v1902_v48 = vpop.eup %1901 }
 0x227   :  { %v1904_v49 = vpop.eup %1903  ;;  %v842_v50 = vpack.c.bf16 %v1902_v48, %v1898_v45 }
 0x228   :  { %v841_v51 = vpack.c.bf16 %v1904_v49, %v1900_v46 }
 0x22a   :  { %1757 = vmatprep.mubr.bf16.mxu1 %v841_v51 }
 0x22b   :  { %1758 = vmatmul.mubr.bf16.gmra.mrb[36].mxu1 %v842_v50 }
 0x2ce   :  { %v1747_v54 = vpop.f32.mrb[32].mxu0 }
 0x2cf   :  { %v957_v55 = vadd.f32 %v1747_v54, %v1424_v52  ;;  %v948_v61 = vpop.f32.mrb[33].mxu0 }
 0x2d0   :  { %v949_v47 = vadd.f32 %v1424_v52, %v948_v61  ;;  %v1748_v53 = vpop.f32.mrb[34].mxu0 }
 0x2d1   :  { %1015 = vadd.xlane.f32.xlu1 %v957_v55  ;;  %v951_v59 = vpop.f32.mrb[35].mxu0  ;;  %v960_v60 = vadd.f32 %v1748_v53, %v1424_v52 }
 0x2d2   :  { %1011 = vadd.xlane.f32.xlu0 %v949_v47  ;;  %v952_v62 = vadd.f32 %v1424_v52, %v951_v59 }
 0x2d5   :  { %1017 = vadd.xlane.f32.xlu1 %v960_v60 }
 0x2d6   :  { %1013 = vadd.xlane.f32.xlu0 %v952_v62 }
 0x2de   :  { %v1751_v63 = vpop.f32.mrb[36].mxu0 }
 0x2df   :  { %v973_v0 = vadd.f32 %v1751_v63, %v1424_v52  ;;  %v964_v1 = vpop.f32.mrb[37].mxu0 }
 0x2e0   :  { %v1752_v2 = vpop.f32.mrb[38].mxu0  ;;  %v965_v5 = vadd.f32 %v1424_v52, %v964_v1 }
 0x2e1   :  { %v976_v3 = vadd.f32 %v1752_v2, %v1424_v52  ;;  %v967_v4 = vpop.f32.mrb[39].mxu0  ;;  %1023 = vadd.xlane.f32.xlu0 %v973_v0 }
 0x2e2   :  { %v968_v6 = vadd.f32 %v1424_v52, %v967_v4 }
 0x2e3   :  { %1025 = vadd.xlane.f32.xlu1 %v976_v3 }
 0x2e5   :  { %1019 = vadd.xlane.f32.xlu0 %v965_v5 }
 0x2e7   :  { %1021 = vadd.xlane.f32.xlu1 %v968_v6 }
 0x2ee   :  { %v1755_v7 = vpop.f32.mrb[32].mxu1 }
 0x2ef   :  { %v2266_v8 = vadd.f32 %v1755_v7, %v1424_v52  ;;  %v980_v56 = vpop.f32.mrb[33].mxu1 }
 0x2f0   :  { %v1756_v9 = vpop.f32.mrb[34].mxu1  ;;  %v2271_v12 = vadd.f32 %v1424_v52, %v980_v56 }
 0x2f1   :  { %v2268_v10 = vadd.f32 %v1756_v9, %v1424_v52  ;;  %v983_v11 = vpop.f32.mrb[35].mxu1  ;;  %1031 = vadd.xlane.f32.xlu0 %v2266_v8 }
 0x2f2   :  { %v2274_v13 = vadd.f32 %v1424_v52, %v983_v11 }
 0x2f3   :  { %1033 = vadd.xlane.f32.xlu1 %v2268_v10 }
 0x2f5   :  { %1027 = vadd.xlane.f32.xlu0 %v2271_v12 }
 0x2f7   :  { %1029 = vadd.xlane.f32.xlu1 %v2274_v13 }
 0x2fe   :  { %v1759_v14 = vpop.f32.mrb[36].mxu1 }
 0x2ff   :  { %v996_v15 = vpop.f32.mrb[37].mxu1  ;;  %v2283_v19 = vadd.f32 %v1759_v14, %v1424_v52 }
 0x300   :  { %v2278_v16 = vadd.f32 %v1424_v52, %v996_v15  ;;  %v1760_v57 = vpop.f32.mrb[38].mxu1 }
 0x301   :  { %v999_v17 = vpop.f32.mrb[39].mxu1  ;;  %v2286_v20 = vadd.f32 %v1760_v57, %v1424_v52 }
 0x302   :  { %v2280_v18 = vadd.f32 %v1424_v52, %v999_v17  ;;  %1035 = vadd.xlane.f32.xlu0 %v2278_v16 }
 0x304   :  { %1037 = vadd.xlane.f32.xlu1 %v2280_v18 }
 0x306   :  { %1039 = vadd.xlane.f32.xlu0 %v2283_v19 }
 0x308   :  { %1041 = vadd.xlane.f32.xlu1 %v2286_v20 }
 0x35e   :  { %v1016_v21 = vpop.xlane.xlu1 %1015 }
 0x35f   :  { %v1046_v22 = vmul.f32 0.0078125, %v1016_v21  ;;  %v1012_v58 = vpop.xlane.xlu0 %1011 }
 0x360   :  { %v1044_v23 = vmul.f32 0.0078125, %v1012_v58 }
 0x361   :  { %v2290_v24 = vsub.f32 %v957_v55, %v1046_v22 }
 0x362   :  { %v1018_v25 = vpop.xlane.xlu1 %1017  ;;  %v2292_v26 = vsub.f32 %v949_v47, %v1044_v23 }
 0x363   :  { %v1047_v27 = vmul.f32 0.0078125, %v1018_v25  ;;  %v1014_v28 = vpop.xlane.xlu0 %1013  ;;  %v1078_v29 = vmul.f32 %v2290_v24, %v2290_v24 }
 0x364   :  { %v1045_v31 = vmul.f32 0.0078125, %v1014_v28  ;;  %v1076_v34 = vmul.f32 %v2292_v26, %v2292_v26 }
 0x365   :  { %v2296_v32 = vsub.f32 %v960_v60, %v1047_v27  ;;  %1096 = vadd.xlane.f32.xlu0 %v1078_v29 }
 0x366   :  { %v2298_v30 = vsub.f32 %v952_v62, %v1045_v31 }
 0x367   :  { %v1079_v33 = vmul.f32 %v2296_v32, %v2296_v32 }
 0x368   :  { %v1077_v35 = vmul.f32 %v2298_v30, %v2298_v30 }
 0x369   :  { %1098 = vadd.xlane.f32.xlu1 %v1079_v33  ;;  %1092 = vadd.xlane.f32.xlu0 %v1076_v34 }
 0x36d   :  { %1094 = vadd.xlane.f32.xlu1 %v1077_v35 }
 0x36e   :  { %v1024_v36 = vpop.xlane.xlu0 %1023 }
 0x36f   :  { %v1050_v37 = vmul.f32 0.0078125, %v1024_v36 }
 0x370   :  { %v1026_v38 = vpop.xlane.xlu1 %1025 }
 0x371   :  { %v2306_v39 = vsub.f32 %v973_v0, %v1050_v37  ;;  %v1051_v40 = vmul.f32 0.0078125, %v1026_v38  ;;  %v2365_v37 = vld [vmem:[%s2477_s9] ss:$0 sm:$0xff] }
 0x372   :  { %v1020_v41 = vpop.xlane.xlu0 %1019 }
 0x373   :  { %v2308_v42 = vsub.f32 %v976_v3, %v1051_v40  ;;  %v1048_v43 = vmul.f32 0.0078125, %v1020_v41  ;;  %v1082_v44 = vmul.f32 %v2306_v39, %v2306_v39 }
 0x374   :  { %v1022_v45 = vpop.xlane.xlu1 %1021 }
 0x375   :  { %v2312_v46 = vsub.f32 %v965_v5, %v1048_v43  ;;  %v1049_v48 = vmul.f32 0.0078125, %v1022_v45  ;;  %1104 = vadd.xlane.f32.xlu0 %v1082_v44  ;;  %v1083_v49 = vmul.f32 %v2308_v42, %v2308_v42 }
 0x377   :  { %v2316_v50 = vsub.f32 %v968_v6, %v1049_v48  ;;  %1106 = vadd.xlane.f32.xlu1 %v1083_v49  ;;  %v1080_v51 = vmul.f32 %v2312_v46, %v2312_v46  ;;  %v2372_v48 = vld [vmem:[%s2478_s10] ss:$0 sm:$0xff]  ;;  %v1539_v49 = vld [vmem:[%s2479_s11 + $0x8] sm:$0xff]  }
 0x379   :  { %1100 = vadd.xlane.f32.xlu0 %v1080_v51  ;;  %v1081_v52 = vmul.f32 %v2316_v50, %v2316_v50 }
 0x37b   :  { %1102 = vadd.xlane.f32.xlu1 %v1081_v52 }
 0x37e   :  { %v1032_v54 = vpop.xlane.xlu0 %1031 }
 0x37f   :  { %v1054_v55 = vmul.f32 0.0078125, %v1032_v54 }
 0x380   :  { %v1034_v61 = vpop.xlane.xlu1 %1033 }
 0x381   :  { %v2323_v47 = vsub.f32 %v2266_v8, %v1054_v55  ;;  %v1055_v53 = vmul.f32 0.0078125, %v1034_v61 }
 0x382   :  { %v1028_v59 = vpop.xlane.xlu0 %1027 }
 0x383   :  { %v2326_v60 = vsub.f32 %v2268_v10, %v1055_v53  ;;  %v1052_v62 = vmul.f32 0.0078125, %v1028_v59  ;;  %v1086_v63 = vmul.f32 %v2323_v47, %v2323_v47 }
 0x384   :  { %v1030_v0 = vpop.xlane.xlu1 %1029 }
 0x385   :  { %v2331_v1 = vsub.f32 %v2271_v12, %v1052_v62  ;;  %v1053_v2 = vmul.f32 0.0078125, %v1030_v0  ;;  %1112 = vadd.xlane.f32.xlu0 %v1086_v63  ;;  %v1087_v3 = vmul.f32 %v2326_v60, %v2326_v60  ;;  %v1473_v62 = vunpack.c.l.bf16 %v1539_v49 }
 0x386   :  { %v1474_v0 = vunpack.c.h.bf16 %v1539_v49 }
 0x387   :  { %v2336_v4 = vsub.f32 %v2274_v13, %v1053_v2  ;;  %1114 = vadd.xlane.f32.xlu1 %v1087_v3  ;;  %v1084_v5 = vmul.f32 %v2331_v1, %v2331_v1  ;;  %v1468_v3 = vld [vmem:[%s2479_s11] sm:$0xff]  }
 0x389   :  { %1108 = vadd.xlane.f32.xlu0 %v1084_v5  ;;  %v1085_v6 = vmul.f32 %v2336_v4, %v2336_v4 }
 0x38b   :  { %1110 = vadd.xlane.f32.xlu1 %v1085_v6 }
 0x38f   :  { %v1036_v7 = vpop.xlane.xlu0 %1035 }
 0x390   :  { %v1056_v8 = vmul.f32 0.0078125, %v1036_v7 }
 0x391   :  { %v1038_v56 = vpop.xlane.xlu1 %1037 }
 0x392   :  { %v2343_v9 = vsub.f32 %v2278_v16, %v1056_v8  ;;  %v1057_v10 = vmul.f32 0.0078125, %v1038_v56 }
 0x393   :  { %v1040_v11 = vpop.xlane.xlu0 %1039 }
 0x394   :  { %v2346_v12 = vsub.f32 %v2280_v18, %v1057_v10  ;;  %v1058_v13 = vmul.f32 0.0078125, %v1040_v11  ;;  %v1088_v14 = vmul.f32 %v2343_v9, %v2343_v9  ;;  %v1469_v10 = vunpack.c.l.bf16 %v1468_v3 }
 0x395   :  { %v1042_v15 = vpop.xlane.xlu1 %1041  ;;  %v1470_v11 = vunpack.c.h.bf16 %v1468_v3 }
 0x396   :  { %v2351_v57 = vsub.f32 %v2283_v19, %v1058_v13  ;;  %v1059_v17 = vmul.f32 0.0078125, %v1042_v15  ;;  %1116 = vadd.xlane.f32.xlu0 %v1088_v14  ;;  %v1089_v21 = vmul.f32 %v2346_v12, %v2346_v12 }
 0x398   :  { %v2356_v16 = vsub.f32 %v2286_v20, %v1059_v17  ;;  %1118 = vadd.xlane.f32.xlu1 %v1089_v21  ;;  %v1090_v18 = vmul.f32 %v2351_v57, %v2351_v57 }
 0x39a   :  { %1120 = vadd.xlane.f32.xlu0 %v1090_v18  ;;  %v1091_v22 = vmul.f32 %v2356_v16, %v2356_v16 }
 0x39c   :  { %1122 = vadd.xlane.f32.xlu1 %v1091_v22 }
 0x3f2   :  { %v1097_v58 = vpop.xlane.xlu0 %1096 }
 0x3f3   :  { %v1126_v19 = vmul.f32 0.0078125, %v1097_v58 }
 0x3f5   :  { %v1142_v23 = vadd.f32 1e-05, %v1126_v19 }
 0x3f6   :  { %v1099_v25 = vpop.xlane.xlu1 %1098  ;;  %v1093_v27 = vpop.xlane.xlu0 %1092 }
 0x3f7   :  { %1905 = vrsqrt.f32 %v1142_v23  ;;  %v1127_v28 = vmul.f32 0.0078125, %v1099_v25  ;;  %v1124_v29 = vmul.f32 0.0078125, %v1093_v27  ;;  %v1541_v25 = vld [vmem:[%s2479_s11 + $0x18] sm:$0xff]  }
 0x3f9   :  { %v1143_v31 = vadd.f32 1e-05, %v1127_v28  ;;  %v1140_v20 = vadd.f32 1e-05, %v1124_v29 }
 0x3fa   :  { %v1095_v33 = vpop.xlane.xlu1 %1094 }
 0x3fb   :  { %1907 = vrsqrt.f32 %v1143_v31  ;;  %v1125_v34 = vmul.f32 0.0078125, %v1095_v33 }
 0x3fc   :  { %1909 = vrsqrt.f32 %v1140_v20 }
 0x3fd   :  { %v1141_v35 = vadd.f32 1e-05, %v1125_v34 }
 0x3ff   :  { %1911 = vrsqrt.f32 %v1141_v35 }
 0x401   :  { %v1906_v36 = vpop.eup %1905 }
 0x402   :  { %v1174_v38 = vmul.f32 %v1906_v36, %v2290_v24  ;;  %v1105_v40 = vpop.xlane.xlu0 %1104  ;;  %v1481_v36 = vunpack.c.l.bf16 %v1541_v25 }
 0x403   :  { %v1130_v41 = vmul.f32 0.0078125, %v1105_v40 }
 0x404   :  { %v1197_v43 = vmul.f32 %v2365_v37, %v1174_v38  ;;  %v1107_v44 = vpop.xlane.xlu1 %1106  ;;  %v1540_v38 = vld [vmem:[%s2479_s11 + $0x10] sm:$0xff]  }
 0x405   :  { %v1908_v45 = vpop.eup %1907  ;;  %v1146_v51 = vadd.f32 1e-05, %v1130_v41  ;;  %v1131_v52 = vmul.f32 0.0078125, %v1107_v44 }
 0x406   :  { %v1910_v54 = vpop.eup %1909  ;;  %v1175_v24 = vmul.f32 %v1908_v45, %v2296_v32  ;;  %v1101_v55 = vpop.xlane.xlu0 %1100  ;;  %v1220_v63 = vadd.f32 %v2372_v48, %v1197_v43  ;;  %v1482_v43 = vunpack.c.h.bf16 %v1541_v25 }
 0x407   :  { %v1172_v61 = vmul.f32 %v1910_v54, %v2292_v26  ;;  %1913 = vrsqrt.f32 %v1146_v51  ;;  %v1147_v53 = vadd.f32 1e-05, %v1131_v52  ;;  %v1128_v59 = vmul.f32 0.0078125, %v1101_v55 }
 0x408   :  { %v1198_v2 = vmul.f32 %v2365_v37, %v1175_v24  ;;  %v1103_v5 = vpop.xlane.xlu1 %1102  ;;  %v1268_v14 = vadd.f32 %v1473_v62, %v1220_v63  ;;  %v1477_v24 = vunpack.c.l.bf16 %v1540_v38 }
 0x409   :  { %v1912_v6 = vpop.eup %1911  ;;  %v1195_v32 = vmul.f32 %v2365_v37, %v1172_v61  ;;  %1915 = vrsqrt.f32 %v1147_v53  ;;  %v1144_v7 = vadd.f32 1e-05, %v1128_v59  ;;  %v1129_v26 = vmul.f32 0.0078125, %v1103_v5 }
 0x40a   :  { %v1221_v8 = vadd.f32 %v2372_v48, %v1198_v2  ;;  %v1173_v56 = vmul.f32 %v1912_v6, %v2298_v30  ;;  %v1478_v59 = vunpack.c.h.bf16 %v1540_v38 }
 0x40b   :  { %1917 = vrsqrt.f32 %v1144_v7  ;;  %v1145_v13 = vadd.f32 1e-05, %v1129_v26  ;;  %v1218_v17 = vadd.f32 %v2372_v48, %v1195_v32 }
 0x40c   :  { %v1269_v15 = vadd.f32 %v1474_v0, %v1221_v8  ;;  %v1196_v21 = vmul.f32 %v2365_v37, %v1173_v56  ;;  %v1543_v56 = vld [vmem:[%s2479_s11 + $0x28] sm:$0xff]  }
 0x40d   :  { %1919 = vrsqrt.f32 %v1145_v13  ;;  %v1266_v58 = vadd.f32 %v1469_v10, %v1218_v17  ;;  %v1542_v17 = vld [vmem:[%s2479_s11 + $0x20] sm:$0xff]  }
 0x40e   :  { %v1507_v18 = vpack.c.bf16 %v1269_v15, %v1268_v14  ;;  %v1219_v22 = vadd.f32 %v2372_v48, %v1196_v21 }
 0x410   :  { %1546 = vst [vmem:[%s2480_s12 + $0x8] sm:$0xff] %v1507_v18   ;;  %v1267_v30 = vadd.f32 %v1470_v11, %v1219_v22  ;;  %v1489_v22 = vunpack.c.l.bf16 %v1543_v56 }
 0x411   :  { %v1914_v19 = vpop.eup %1913 }
 0x412   :  { %v1502_v23 = vpack.c.bf16 %v1267_v30, %v1266_v58  ;;  %v1178_v27 = vmul.f32 %v1914_v19, %v2306_v39  ;;  %v1113_v28 = vpop.xlane.xlu0 %1112  ;;  %v1490_v58 = vunpack.c.h.bf16 %v1543_v56 }
 0x413   :  { %v1916_v29 = vpop.eup %1915  ;;  %v1134_v31 = vmul.f32 0.0078125, %v1113_v28  ;;  %v1485_v28 = vunpack.c.l.bf16 %v1542_v17 }
 0x414   :  { %1503 = vst [vmem:[%s2480_s12] sm:$0xff] %v1502_v23   ;;  %v1201_v20 = vmul.f32 %v2365_v37, %v1178_v27  ;;  %v1179_v33 = vmul.f32 %v1916_v29, %v2308_v42  ;;  %v1115_v34 = vpop.xlane.xlu1 %1114 }
 0x415   :  { %v1918_v35 = vpop.eup %1917  ;;  %v1150_v40 = vadd.f32 1e-05, %v1134_v31  ;;  %v1135_v39 = vmul.f32 0.0078125, %v1115_v34 }
 0x416   :  { %v1224_v41 = vadd.f32 %v2372_v48, %v1201_v20  ;;  %v1202_v44 = vmul.f32 %v2365_v37, %v1179_v33  ;;  %v1176_v45 = vmul.f32 %v1918_v35, %v2312_v46  ;;  %v1109_v49 = vpop.xlane.xlu0 %1108  ;;  %v1486_v33 = vunpack.c.h.bf16 %v1542_v17 }
 0x417   :  { %v1920_v51 = vpop.eup %1919  ;;  %1921 = vrsqrt.f32 %v1150_v40  ;;  %v1151_v42 = vadd.f32 1e-05, %v1135_v39  ;;  %v1132_v52 = vmul.f32 0.0078125, %v1109_v49 }
 0x418   :  { %v1225_v54 = vadd.f32 %v2372_v48, %v1202_v44  ;;  %v1199_v55 = vmul.f32 %v2365_v37, %v1176_v45  ;;  %v1177_v61 = vmul.f32 %v1920_v51, %v2316_v50  ;;  %v1111_v53 = vpop.xlane.xlu1 %1110  ;;  %v1272_v0 = vadd.f32 %v1481_v36, %v1224_v41 }
 0x419   :  { %1923 = vrsqrt.f32 %v1151_v42  ;;  %v1148_v62 = vadd.f32 1e-05, %v1132_v52  ;;  %v1133_v63 = vmul.f32 0.0078125, %v1111_v53 }
 0x41a   :  { %v1273_v2 = vadd.f32 %v1482_v43, %v1225_v54  ;;  %v1222_v46 = vadd.f32 %v2372_v48, %v1199_v55  ;;  %v1200_v3 = vmul.f32 %v2365_v37, %v1177_v61 }
 0x41b   :  { %1925 = vrsqrt.f32 %v1148_v62  ;;  %v1149_v5 = vadd.f32 1e-05, %v1133_v63 }
 0x41c   :  { %v1517_v6 = vpack.c.bf16 %v1273_v2, %v1272_v0  ;;  %v1223_v32 = vadd.f32 %v2372_v48, %v1200_v3  ;;  %v1270_v50 = vadd.f32 %v1477_v24, %v1222_v46  ;;  %v1544_v24 = vld [vmem:[%s2479_s11 + $0x30] sm:$0xff]  }
 0x41d   :  { %1927 = vrsqrt.f32 %v1149_v5  ;;  %v1493_v63 = vunpack.c.l.bf16 %v1544_v24  ;;  %v1494_v46 = vunpack.c.h.bf16 %v1544_v24  ;;  %v1545_v5 = vld [vmem:[%s2479_s11 + $0x38] sm:$0xff]  }
 0x41e   :  { %1548 = vst [vmem:[%s2480_s12 + $0x18] sm:$0xff] %v1517_v6   ;;  %v1271_v7 = vadd.f32 %v1478_v59, %v1223_v32 }
 0x420   :  { %v1512_v26 = vpack.c.bf16 %v1271_v7, %v1270_v50  ;;  %v1497_v50 = vunpack.c.l.bf16 %v1545_v5  ;;  %v1498_v7 = vunpack.c.h.bf16 %v1545_v5 }
 0x421   :  { %v1922_v8 = vpop.eup %1921 }
 0x422   :  { %1547 = vst [vmem:[%s2480_s12 + $0x10] sm:$0xff] %v1512_v26   ;;  %v1182_v10 = vmul.f32 %v1922_v8, %v2323_v47 }
 0x423   :  { %v1924_v11 = vpop.eup %1923  ;;  %v1117_v13 = vpop.xlane.xlu0 %1116 }
 0x424   :  { %v1205_v14 = vmul.f32 %v2365_v37, %v1182_v10  ;;  %v1183_v15 = vmul.f32 %v1924_v11, %v2326_v60  ;;  %v1136_v21 = vmul.f32 0.0078125, %v1117_v13 }
 0x425   :  { %v1926_v18 = vpop.eup %1925  ;;  %v1119_v30 = vpop.xlane.xlu1 %1118 }
 0x426   :  { %v1228_v19 = vadd.f32 %v2372_v48, %v1205_v14  ;;  %v1206_v23 = vmul.f32 %v2365_v37, %v1183_v15  ;;  %v1180_v47 = vmul.f32 %v1926_v18, %v2331_v1  ;;  %v1152_v25 = vadd.f32 1e-05, %v1136_v21 }
 0x427   :  { %v1928_v27 = vpop.eup %1927  ;;  %v1137_v29 = vmul.f32 0.0078125, %v1119_v30  ;;  %v1121_v60 = vpop.xlane.xlu0 %1120 }
 0x428   :  { %v1229_v31 = vadd.f32 %v2372_v48, %v1206_v23  ;;  %v1203_v20 = vmul.f32 %v2365_v37, %v1180_v47  ;;  %v1181_v34 = vmul.f32 %v1928_v27, %v2336_v4  ;;  %v1276_v35 = vadd.f32 %v1489_v22, %v1228_v19 }
 0x429   :  { %1929 = vrsqrt.f32 %v1152_v25  ;;  %v1153_v36 = vadd.f32 1e-05, %v1137_v29  ;;  %v1138_v38 = vmul.f32 0.0078125, %v1121_v60  ;;  %v1123_v40 = vpop.xlane.xlu1 %1122 }
 0x42a   :  { %v1277_v39 = vadd.f32 %v1490_v58, %v1229_v31  ;;  %v1226_v1 = vadd.f32 %v2372_v48, %v1203_v20  ;;  %v1204_v41 = vmul.f32 %v2365_v37, %v1181_v34  ;;  %v1139_v43 = vmul.f32 0.0078125, %v1123_v40 }
 0x42b   :  { %1931 = vrsqrt.f32 %v1153_v36  ;;  %v1154_v44 = vadd.f32 1e-05, %v1138_v38 }
 0x42c   :  { %v1527_v45 = vpack.c.bf16 %v1277_v39, %v1276_v35  ;;  %v1227_v49 = vadd.f32 %v2372_v48, %v1204_v41  ;;  %v1155_v51 = vadd.f32 1e-05, %v1139_v43  ;;  %v1274_v4 = vadd.f32 %v1485_v28, %v1226_v1 }
 0x42d   :  { %1933 = vrsqrt.f32 %v1154_v44 }
 0x42e   :  { %1550 = vst [vmem:[%s2480_s12 + $0x28] sm:$0xff] %v1527_v45   ;;  %v1275_v42 = vadd.f32 %v1486_v33, %v1227_v49  ;;  %1935 = vrsqrt.f32 %v1155_v51 }
 0x430   :  { %v1522_v52 = vpack.c.bf16 %v1275_v42, %v1274_v4 }
 0x432   :  { %1549 = vst [vmem:[%s2480_s12 + $0x20] sm:$0xff] %v1522_v52  }
 0x433   :  { %v1930_v54 = vpop.eup %1929 }
 0x434   :  { %v1184_v55 = vmul.f32 %v1930_v54, %v2343_v9 }
 0x435   :  { %v1932_v61 = vpop.eup %1931 }
 0x436   :  { %v1207_v53 = vmul.f32 %v2365_v37, %v1184_v55  ;;  %v1185_v59 = vmul.f32 %v1932_v61, %v2346_v12 }
 0x437   :  { %v1934_v62 = vpop.eup %1933 }
 0x438   :  { %v1936_v0 = vpop.eup %1935  ;;  %v1230_v2 = vadd.f32 %v2372_v48, %v1207_v53  ;;  %v1208_v3 = vmul.f32 %v2365_v37, %v1185_v59  ;;  %v1186_v6 = vmul.f32 %v1934_v62, %v2351_v57 }
 0x439   :  { %v1187_v9 = vmul.f32 %v1936_v0, %v2356_v16 }
 0x43a   :  { %v1231_v32 = vadd.f32 %v2372_v48, %v1208_v3  ;;  %v1209_v12 = vmul.f32 %v2365_v37, %v1186_v6  ;;  %v1278_v8 = vadd.f32 %v1493_v63, %v1230_v2 }
 0x43b   :  { %v1210_v26 = vmul.f32 %v2365_v37, %v1187_v9 }
 0x43c   :  { %v1279_v56 = vadd.f32 %v1494_v46, %v1231_v32  ;;  %v1232_v10 = vadd.f32 %v2372_v48, %v1209_v12 }
 0x43d   :  { %v1233_v11 = vadd.f32 %v2372_v48, %v1210_v26 }
 0x43e   :  { %v1532_v13 = vpack.c.bf16 %v1279_v56, %v1278_v8  ;;  %v1280_v14 = vadd.f32 %v1497_v50, %v1232_v10 }
 0x43f   :  { %v1281_v15 = vadd.f32 %v1498_v7, %v1233_v11 }
 0x440   :  { %1551 = vst [vmem:[%s2480_s12 + $0x30] sm:$0xff] %v1532_v13  }
 0x441   :  { %v1537_v57 = vpack.c.bf16 %v1281_v15, %v1280_v14 }
 0x443   :  { %1552 = vst [vmem:[%s2480_s12 + $0x38] sm:$0xff] %v1537_v57  }

// kernel: net_forward.15
= control target key start
LH: loop header
LB: loop body
LE: loop exit
PB: predicated region body
PF: predicated region fallthrough
CT: control target
= control target key end

     0   :  { %s1177_s1 = inlined_call_operand.vmem [shape: bf16[128,128], index: 1, kind: input, shape index: {}]   ;;  %s1178_s0 = inlined_call_operand.vmem [shape: bf16[128,128], index: 0, kind: input, shape index: {}]   ;;  %s1179_s3 = inlined_call_operand.vmem [shape: bf16[128,128], index: 3, kind: input, shape index: {}]   ;;  %s1180_s5 = inlined_call_operand.vmem [shape: bf16[128,128], index: 5, kind: input, shape index: {}]   ;;  %s1181_s2 = inlined_call_operand.vmem [shape: f32[1,128], index: 2, kind: input, shape index: {}]   ;;  %s1182_s4 = inlined_call_operand.vmem [shape: f32[1,128], index: 4, kind: input, shape index: {}]   ;;  %s1183_s6 = inlined_call_operand.vmem [shape: f32[1,128], index: 6, kind: input, shape index: {}]   ;;  %s1184_s7 = inlined_call_operand.vmem [shape: f32[128,128], index: 7, kind: output, shape index: {}]  }
   0x1   :  { %v858_v0 = vld [vmem:[%s1177_s1] sm:$0xff]   ;;  %v859_v1 = vld [vmem:[%s1177_s1 + $0x8] sm:$0xff]   ;;  %v860_v2 = vld [vmem:[%s1177_s1 + $0x10] sm:$0xff]  }
   0x2   :  { %746 = vmatprep.subr.bf16.mxu0 %v858_v0  ;;  %v861_v3 = vld [vmem:[%s1177_s1 + $0x18] sm:$0xff]   ;;  %v866_v4 = vld [vmem:[%s1178_s0] sm:$0xff]   ;;  %v863_v6 = vld [vmem:[%s1177_s1 + $0x28] sm:$0xff]  }
   0x3   :  { %747 = vmatpush3.bf16.msra.mxu0 %v858_v0  ;;  %762 = vmatprep.mubr.bf16.mxu0 %v866_v4  ;;  %v862_v5 = vld [vmem:[%s1177_s1 + $0x20] sm:$0xff]   ;;  %v875_v8 = vld [vmem:[%s1179_s3 + $0x8] sm:$0xff]   ;;  %v864_v9 = vld [vmem:[%s1177_s1 + $0x30] sm:$0xff]  }
   0x4   :  { %748 = vmatprep.subr.bf16.mxu0 %v859_v1  ;;  %v874_v7 = vld [vmem:[%s1179_s3] sm:$0xff]   ;;  %v876_v10 = vld [vmem:[%s1179_s3 + $0x10] sm:$0xff]   ;;  %v865_v11 = vld [vmem:[%s1177_s1 + $0x38] sm:$0xff]  }
   0x5   :  { %778 = vmatprep.subr.bf16.mxu1 %v874_v7  ;;  %v867_v12 = vld [vmem:[%s1178_s0 + $0x8] sm:$0xff]   ;;  %v868_v13 = vld [vmem:[%s1178_s0 + $0x10] sm:$0xff]   ;;  %v869_v14 = vld [vmem:[%s1178_s0 + $0x18] sm:$0xff]  }
   0x6   :  { %779 = vmatpush3.bf16.msra.mxu1 %v874_v7  ;;  %v870_v15 = vld [vmem:[%s1178_s0 + $0x20] sm:$0xff]   ;;  %v871_v16 = vld [vmem:[%s1178_s0 + $0x28] sm:$0xff]   ;;  %v872_v17 = vld [vmem:[%s1178_s0 + $0x30] sm:$0xff]  }
   0x7   :  { %749 = vmatpush3.bf16.msra.mxu0 %v859_v1  ;;  %780 = vmatprep.subr.bf16.mxu1 %v875_v8  ;;  %v873_v18 = vld [vmem:[%s1178_s0 + $0x38] sm:$0xff]   ;;  %v878_v20 = vld [vmem:[%s1179_s3 + $0x20] sm:$0xff]   ;;  %v879_v21 = vld [vmem:[%s1179_s3 + $0x28] sm:$0xff]  }
   0x8   :  { %750 = vmatprep.subr.bf16.mxu0 %v860_v2  ;;  %v877_v19 = vld [vmem:[%s1179_s3 + $0x18] sm:$0xff]   ;;  %v880_v22 = vld [vmem:[%s1179_s3 + $0x30] sm:$0xff]   ;;  %v882_v24 = vld [vmem:[%s1180_s5] sm:$0xff]  }
   0x9   :  { %v881_v23 = vld [vmem:[%s1179_s3 + $0x38] sm:$0xff]   ;;  %v1072_v25 = vld [vmem:[%s1180_s5 + $0x8] sm:$0xff]   ;;  %v1077_v26 = vld [vmem:[%s1180_s5 + $0x10] sm:$0xff]  }
   0xa   :  { %781 = vmatpush3.bf16.msra.mxu1 %v875_v8  ;;  %v1086_v27 = vld [vmem:[%s1181_s2] ss:$0 sm:$0xff] }
   0xb   :  { %751 = vmatpush3.bf16.msra.mxu0 %v860_v2  ;;  %782 = vmatprep.subr.bf16.mxu1 %v876_v10 }
   0xc   :  { %752 = vmatprep.subr.bf16.mxu0 %v861_v3 }
   0xe   :  { %783 = vmatpush3.bf16.msra.mxu1 %v876_v10 }
   0xf   :  { %753 = vmatpush3.bf16.msra.mxu0 %v861_v3  ;;  %784 = vmatprep.subr.bf16.mxu1 %v877_v19 }
  0x10   :  { %754 = vmatprep.subr.bf16.mxu0 %v862_v5 }
  0x12   :  { %785 = vmatpush3.bf16.msra.mxu1 %v877_v19 }
  0x13   :  { %755 = vmatpush3.bf16.msra.mxu0 %v862_v5  ;;  %786 = vmatprep.subr.bf16.mxu1 %v878_v20 }
  0x14   :  { %756 = vmatprep.subr.bf16.mxu0 %v863_v6 }
  0x16   :  { %787 = vmatpush3.bf16.msra.mxu1 %v878_v20  ;;  %v885_v20 = vld [vmem:[%s1180_s5 + $0x18] sm:$0xff]  }
  0x17   :  { %757 = vmatpush3.bf16.msra.mxu0 %v863_v6  ;;  %788 = vmatprep.subr.bf16.mxu1 %v879_v21 }
  0x18   :  { %758 = vmatprep.subr.bf16.mxu0 %v864_v9 }
  0x1a   :  { %789 = vmatpush3.bf16.msra.mxu1 %v879_v21  ;;  %v886_v21 = vld [vmem:[%s1180_s5 + $0x20] sm:$0xff]  }
  0x1b   :  { %759 = vmatpush3.bf16.msra.mxu0 %v864_v9  ;;  %790 = vmatprep.subr.bf16.mxu1 %v880_v22 }
  0x1c   :  { %760 = vmatprep.subr.bf16.mxu0 %v865_v11 }
  0x1e   :  { %791 = vmatpush3.bf16.msra.mxu1 %v880_v22  ;;  %v887_v22 = vld [vmem:[%s1180_s5 + $0x28] sm:$0xff]  }
  0x1f   :  { %761 = vmatpush3.bf16.msra.mxu0 %v865_v11  ;;  %792 = vmatprep.subr.bf16.mxu1 %v881_v23 }
  0x20   :  { %810 = vmatprep.subr.bf16.mxu0 %v882_v24 }
  0x22   :  { %763 = vmatmul.mubr.bf16.vlgmr.msra.gmra.mrb[0].mxu0 %v867_v12  ;;  %793 = vmatpush3.bf16.msra.mxu1 %v881_v23  ;;  %v888_v23 = vld [vmem:[%s1180_s5 + $0x30] sm:$0xff]  }
  0x23   :  { %766 = vmatprep.mubr.bf16.mxu0 %v868_v13  ;;  %842 = vmatprep.subr.bf16.mxu1 %v882_v24 }
  0x24   :  { %811 = vmatpush3.bf16.msra.mxu0 %v882_v24 }
  0x25   :  { %812 = vmatprep.subr.bf16.mxu0 %v1072_v25 }
  0x28   :  { %813 = vmatpush3.bf16.msra.mxu0 %v1072_v25 }
  0x29   :  { %814 = vmatprep.subr.bf16.mxu0 %v1077_v26 }
  0x2a   :  { %767 = vmatmul.mubr.bf16.gmra.mrb[4].mxu0 %v869_v14 }
  0x2b   :  { %770 = vmatprep.mubr.bf16.mxu0 %v870_v15 }
  0x2c   :  { %815 = vmatpush3.bf16.msra.mxu0 %v1077_v26 }
  0x2d   :  { %816 = vmatprep.subr.bf16.mxu0 %v885_v20 }
  0x30   :  { %817 = vmatpush3.bf16.msra.mxu0 %v885_v20 }
  0x31   :  { %818 = vmatprep.subr.bf16.mxu0 %v886_v21 }
  0x32   :  { %771 = vmatmul.mubr.bf16.gmra.mrb[8].mxu0 %v871_v16 }
  0x33   :  { %774 = vmatprep.mubr.bf16.mxu0 %v872_v17 }
  0x34   :  { %819 = vmatpush3.bf16.msra.mxu0 %v886_v21 }
  0x35   :  { %820 = vmatprep.subr.bf16.mxu0 %v887_v22 }
  0x38   :  { %821 = vmatpush3.bf16.msra.mxu0 %v887_v22 }
  0x39   :  { %822 = vmatprep.subr.bf16.mxu0 %v888_v23 }
  0x3a   :  { %775 = vmatmul.mubr.bf16.gmra.mrb[12].mxu0 %v873_v18 }
  0x3c   :  { %823 = vmatpush3.bf16.msra.mxu0 %v888_v23 }
  0xf5   :  { %v764_v28 = vpop.f32.mrb[0].mxu0 }
  0xf6   :  { %v205_v29 = vadd.f32 %v764_v28, %v1086_v27  ;;  %v196_v30 = vpop.f32.mrb[1].mxu0 }
  0xf7   :  { %v197_v31 = vadd.f32 %v1086_v27, %v196_v30  ;;  %v765_v32 = vpop.f32.mrb[2].mxu0 }
  0xf8   :  { %890 = vtanh.f32 %v205_v29  ;;  %v208_v33 = vadd.f32 %v765_v32, %v1086_v27  ;;  %v199_v34 = vpop.f32.mrb[3].mxu0 }
  0xf9   :  { %892 = vtanh.f32 %v197_v31  ;;  %v200_v35 = vadd.f32 %v1086_v27, %v199_v34 }
  0xfa   :  { %894 = vtanh.f32 %v208_v33 }
  0xfb   :  { %896 = vtanh.f32 %v200_v35 }
  0xfd   :  { %v768_v36 = vpop.f32.mrb[4].mxu0 }
  0xfe   :  { %v221_v37 = vadd.f32 %v768_v36, %v1086_v27  ;;  %v212_v38 = vpop.f32.mrb[5].mxu0 }
  0xff   :  { %v213_v39 = vadd.f32 %v1086_v27, %v212_v38  ;;  %v769_v40 = vpop.f32.mrb[6].mxu0 }
 0x100   :  { %898 = vtanh.f32 %v221_v37  ;;  %v224_v41 = vadd.f32 %v769_v40, %v1086_v27  ;;  %v215_v42 = vpop.f32.mrb[7].mxu0 }
 0x101   :  { %900 = vtanh.f32 %v213_v39  ;;  %v216_v43 = vadd.f32 %v1086_v27, %v215_v42 }
 0x102   :  { %v891_v44 = vpop.eup %890  ;;  %902 = vtanh.f32 %v224_v41 }
 0x103   :  { %v893_v45 = vpop.eup %892  ;;  %904 = vtanh.f32 %v216_v43 }
 0x104   :  { %v895_v46 = vpop.eup %894 }
 0x105   :  { %v897_v47 = vpop.eup %896  ;;  %v772_v48 = vpop.f32.mrb[8].mxu0  ;;  %v276_v49 = vpack.c.bf16 %v895_v46, %v891_v44 }
 0x106   :  { %v237_v50 = vadd.f32 %v772_v48, %v1086_v27  ;;  %v228_v51 = vpop.f32.mrb[9].mxu0  ;;  %v275_v52 = vpack.c.bf16 %v897_v47, %v893_v45 }
 0x107   :  { %v229_v53 = vadd.f32 %v1086_v27, %v228_v51  ;;  %v773_v54 = vpop.f32.mrb[10].mxu0 }
 0x108   :  { %906 = vtanh.f32 %v237_v50  ;;  %v240_v55 = vadd.f32 %v773_v54, %v1086_v27  ;;  %v231_v56 = vpop.f32.mrb[11].mxu0  ;;  %794 = vmatprep.mubr.bf16.mxu1 %v275_v52 }
 0x109   :  { %908 = vtanh.f32 %v229_v53  ;;  %v232_v57 = vadd.f32 %v1086_v27, %v231_v56  ;;  %795 = vmatmul.mubr.bf16.vlgmr.msra.gmra.mrb[0].mxu1 %v276_v49 }
 0x10a   :  { %v899_v58 = vpop.eup %898  ;;  %910 = vtanh.f32 %v240_v55  ;;  %850 = vmatpush3.bf16.msra.mxu1 %v882_v24  ;;  %v889_v24 = vld [vmem:[%s1180_s5 + $0x38] sm:$0xff]  }
 0x10b   :  { %v901_v59 = vpop.eup %900  ;;  %912 = vtanh.f32 %v232_v57  ;;  %843 = vmatprep.subr.bf16.mxu1 %v1072_v25  ;;  %824 = vmatprep.subr.bf16.mxu0 %v889_v24 }
 0x10c   :  { %v903_v60 = vpop.eup %902  ;;  %825 = vmatpush3.bf16.msra.mxu0 %v889_v24 }
 0x10d   :  { %v905_v61 = vpop.eup %904  ;;  %v776_v62 = vpop.f32.mrb[12].mxu0  ;;  %v278_v63 = vpack.c.bf16 %v903_v60, %v899_v58 }
 0x10e   :  { %v253_v0 = vadd.f32 %v776_v62, %v1086_v27  ;;  %v244_v1 = vpop.f32.mrb[13].mxu0  ;;  %v277_v2 = vpack.c.bf16 %v905_v61, %v901_v59  ;;  %851 = vmatpush3.bf16.msra.mxu1 %v1072_v25  ;;  %v680_v25 = vld [vmem:[%s1182_s4] ss:$0 sm:$0xff] }
 0x10f   :  { %v245_v3 = vadd.f32 %v1086_v27, %v244_v1  ;;  %v777_v4 = vpop.f32.mrb[14].mxu0  ;;  %844 = vmatprep.subr.bf16.mxu1 %v1077_v26 }
 0x110   :  { %914 = vtanh.f32 %v253_v0  ;;  %v256_v5 = vadd.f32 %v777_v4, %v1086_v27  ;;  %v247_v6 = vpop.f32.mrb[15].mxu0  ;;  %798 = vmatprep.mubr.bf16.mxu1 %v277_v2 }
 0x111   :  { %916 = vtanh.f32 %v245_v3  ;;  %v248_v7 = vadd.f32 %v1086_v27, %v247_v6  ;;  %799 = vmatmul.mubr.bf16.gmra.mrb[4].mxu1 %v278_v63 }
 0x112   :  { %v907_v8 = vpop.eup %906  ;;  %918 = vtanh.f32 %v256_v5  ;;  %852 = vmatpush3.bf16.msra.mxu1 %v1077_v26 }
 0x113   :  { %v909_v9 = vpop.eup %908  ;;  %920 = vtanh.f32 %v248_v7  ;;  %845 = vmatprep.subr.bf16.mxu1 %v885_v20 }
 0x114   :  { %v911_v10 = vpop.eup %910 }
 0x115   :  { %v913_v11 = vpop.eup %912  ;;  %v280_v12 = vpack.c.bf16 %v911_v10, %v907_v8 }
 0x116   :  { %v279_v13 = vpack.c.bf16 %v913_v11, %v909_v9  ;;  %853 = vmatpush3.bf16.msra.mxu1 %v885_v20 }
 0x117   :  { %846 = vmatprep.subr.bf16.mxu1 %v886_v21 }
 0x118   :  { %802 = vmatprep.mubr.bf16.mxu1 %v279_v13 }
 0x119   :  { %803 = vmatmul.mubr.bf16.gmra.mrb[8].mxu1 %v280_v12 }
 0x11a   :  { %v915_v14 = vpop.eup %914  ;;  %854 = vmatpush3.bf16.msra.mxu1 %v886_v21 }
 0x11b   :  { %v917_v15 = vpop.eup %916  ;;  %847 = vmatprep.subr.bf16.mxu1 %v887_v22 }
 0x11c   :  { %v919_v16 = vpop.eup %918 }
 0x11d   :  { %v921_v17 = vpop.eup %920  ;;  %v282_v18 = vpack.c.bf16 %v919_v16, %v915_v14 }
 0x11e   :  { %v281_v19 = vpack.c.bf16 %v921_v17, %v917_v15  ;;  %855 = vmatpush3.bf16.msra.mxu1 %v887_v22 }
 0x11f   :  { %848 = vmatprep.subr.bf16.mxu1 %v888_v23 }
 0x120   :  { %806 = vmatprep.mubr.bf16.mxu1 %v281_v19 }
 0x121   :  { %807 = vmatmul.mubr.bf16.gmra.mrb[12].mxu1 %v282_v18  ;;  %v689_v18 = vld [vmem:[%s1183_s6] ss:$0 sm:$0xff] }
 0x122   :  { %856 = vmatpush3.bf16.msra.mxu1 %v888_v23 }
 0x123   :  { %849 = vmatprep.subr.bf16.mxu1 %v889_v24 }
 0x126   :  { %857 = vmatpush3.bf16.msra.mxu1 %v889_v24 }
 0x1dc   :  { %v796_v26 = vpop.f32.mrb[0].mxu1 }
 0x1dd   :  { %v397_v27 = vadd.f32 %v796_v26, %v680_v25  ;;  %v388_v28 = vpop.f32.mrb[1].mxu1 }
 0x1de   :  { %v389_v29 = vadd.f32 %v680_v25, %v388_v28  ;;  %v797_v30 = vpop.f32.mrb[2].mxu1 }
 0x1df   :  { %922 = vtanh.f32 %v397_v27  ;;  %v400_v31 = vadd.f32 %v797_v30, %v680_v25  ;;  %v391_v32 = vpop.f32.mrb[3].mxu1 }
 0x1e0   :  { %924 = vtanh.f32 %v389_v29  ;;  %v392_v33 = vadd.f32 %v680_v25, %v391_v32 }
 0x1e1   :  { %926 = vtanh.f32 %v400_v31 }
 0x1e2   :  { %928 = vtanh.f32 %v392_v33 }
 0x1e4   :  { %v800_v34 = vpop.f32.mrb[4].mxu1 }
 0x1e5   :  { %v413_v35 = vadd.f32 %v800_v34, %v680_v25  ;;  %v404_v36 = vpop.f32.mrb[5].mxu1 }
 0x1e6   :  { %v405_v37 = vadd.f32 %v680_v25, %v404_v36  ;;  %v801_v38 = vpop.f32.mrb[6].mxu1 }
 0x1e7   :  { %930 = vtanh.f32 %v413_v35  ;;  %v416_v39 = vadd.f32 %v801_v38, %v680_v25  ;;  %v407_v40 = vpop.f32.mrb[7].mxu1 }
 0x1e8   :  { %932 = vtanh.f32 %v405_v37  ;;  %v408_v41 = vadd.f32 %v680_v25, %v407_v40 }
 0x1e9   :  { %v923_v42 = vpop.eup %922  ;;  %934 = vtanh.f32 %v416_v39 }
 0x1ea   :  { %v925_v43 = vpop.eup %924  ;;  %936 = vtanh.f32 %v408_v41 }
 0x1eb   :  { %v927_v44 = vpop.eup %926 }
 0x1ec   :  { %v929_v45 = vpop.eup %928  ;;  %v804_v46 = vpop.f32.mrb[8].mxu1  ;;  %v468_v47 = vpack.c.bf16 %v927_v44, %v923_v42 }
 0x1ed   :  { %v429_v48 = vadd.f32 %v804_v46, %v680_v25  ;;  %v420_v49 = vpop.f32.mrb[9].mxu1  ;;  %v467_v50 = vpack.c.bf16 %v929_v45, %v925_v43 }
 0x1ee   :  { %v421_v51 = vadd.f32 %v680_v25, %v420_v49  ;;  %v805_v52 = vpop.f32.mrb[10].mxu1 }
 0x1ef   :  { %938 = vtanh.f32 %v429_v48  ;;  %v432_v53 = vadd.f32 %v805_v52, %v680_v25  ;;  %v423_v54 = vpop.f32.mrb[11].mxu1  ;;  %826 = vmatprep.mubr.bf16.mxu0 %v467_v50 }
 0x1f0   :  { %940 = vtanh.f32 %v421_v51  ;;  %v424_v55 = vadd.f32 %v680_v25, %v423_v54  ;;  %827 = vmatmul.mubr.bf16.vlgmr.msra.gmra.mrb[16].mxu0 %v468_v47 }
 0x1f1   :  { %v931_v56 = vpop.eup %930  ;;  %942 = vtanh.f32 %v432_v53 }
 0x1f2   :  { %v933_v57 = vpop.eup %932  ;;  %944 = vtanh.f32 %v424_v55 }
 0x1f3   :  { %v935_v58 = vpop.eup %934 }
 0x1f4   :  { %v937_v59 = vpop.eup %936  ;;  %v808_v60 = vpop.f32.mrb[12].mxu1  ;;  %v470_v61 = vpack.c.bf16 %v935_v58, %v931_v56 }
 0x1f5   :  { %v445_v62 = vadd.f32 %v808_v60, %v680_v25  ;;  %v436_v63 = vpop.f32.mrb[13].mxu1  ;;  %v469_v0 = vpack.c.bf16 %v937_v59, %v933_v57 }
 0x1f6   :  { %v437_v1 = vadd.f32 %v680_v25, %v436_v63  ;;  %v809_v2 = vpop.f32.mrb[14].mxu1 }
 0x1f7   :  { %946 = vtanh.f32 %v445_v62  ;;  %v448_v3 = vadd.f32 %v809_v2, %v680_v25  ;;  %v439_v4 = vpop.f32.mrb[15].mxu1  ;;  %830 = vmatprep.mubr.bf16.mxu0 %v469_v0 }
 0x1f8   :  { %948 = vtanh.f32 %v437_v1  ;;  %v440_v5 = vadd.f32 %v680_v25, %v439_v4  ;;  %831 = vmatmul.mubr.bf16.gmra.mrb[20].mxu0 %v470_v61 }
 0x1f9   :  { %v939_v6 = vpop.eup %938  ;;  %950 = vtanh.f32 %v448_v3 }
 0x1fa   :  { %v941_v7 = vpop.eup %940  ;;  %952 = vtanh.f32 %v440_v5 }
 0x1fb   :  { %v943_v8 = vpop.eup %942 }
 0x1fc   :  { %v945_v9 = vpop.eup %944  ;;  %v472_v10 = vpack.c.bf16 %v943_v8, %v939_v6 }
 0x1fd   :  { %v471_v11 = vpack.c.bf16 %v945_v9, %v941_v7 }
 0x1ff   :  { %834 = vmatprep.mubr.bf16.mxu1 %v471_v11 }
 0x200   :  { %835 = vmatmul.mubr.bf16.vlgmr.msra.gmra.mrb[16].mxu1 %v472_v10 }
 0x201   :  { %v947_v12 = vpop.eup %946 }
 0x202   :  { %v949_v13 = vpop.eup %948 }
 0x203   :  { %v951_v14 = vpop.eup %950 }
 0x204   :  { %v953_v15 = vpop.eup %952  ;;  %v474_v16 = vpack.c.bf16 %v951_v14, %v947_v12 }
 0x205   :  { %v473_v17 = vpack.c.bf16 %v953_v15, %v949_v13 }
 0x207   :  { %838 = vmatprep.mubr.bf16.mxu1 %v473_v17 }
 0x208   :  { %839 = vmatmul.mubr.bf16.gmra.mrb[20].mxu1 %v474_v16 }
 0x2c3   :  { %v828_v19 = vpop.f32.mrb[16].mxu0 }
 0x2c4   :  { %v589_v20 = vadd.f32 %v828_v19, %v689_v18  ;;  %v580_v21 = vpop.f32.mrb[17].mxu0 }
 0x2c5   :  { %v581_v22 = vadd.f32 %v689_v18, %v580_v21  ;;  %v829_v23 = vpop.f32.mrb[18].mxu0 }
 0x2c6   :  { %645 = vst [vmem:[%s1184_s7 + $0x10] sm:$0xff] %v589_v20  ;;  %v592_v24 = vadd.f32 %v829_v23, %v689_v18  ;;  %v583_v25 = vpop.f32.mrb[19].mxu0 }
 0x2c7   :  { %643 = vst [vmem:[%s1184_s7] sm:$0xff] %v581_v22  ;;  %v584_v26 = vadd.f32 %v689_v18, %v583_v25 }
 0x2c8   :  { %646 = vst [vmem:[%s1184_s7 + $0x18] sm:$0xff] %v592_v24 }
 0x2c9   :  { %644 = vst [vmem:[%s1184_s7 + $0x8] sm:$0xff] %v584_v26 }
 0x2cb   :  { %v832_v27 = vpop.f32.mrb[20].mxu0 }
 0x2cc   :  { %v605_v28 = vadd.f32 %v832_v27, %v689_v18  ;;  %v596_v29 = vpop.f32.mrb[21].mxu0 }
 0x2cd   :  { %v597_v30 = vadd.f32 %v689_v18, %v596_v29  ;;  %v833_v31 = vpop.f32.mrb[22].mxu0 }
 0x2ce   :  { %649 = vst [vmem:[%s1184_s7 + $0x30] sm:$0xff] %v605_v28  ;;  %v608_v32 = vadd.f32 %v833_v31, %v689_v18  ;;  %v599_v33 = vpop.f32.mrb[23].mxu0 }
 0x2cf   :  { %647 = vst [vmem:[%s1184_s7 + $0x20] sm:$0xff] %v597_v30  ;;  %v600_v34 = vadd.f32 %v689_v18, %v599_v33 }
 0x2d0   :  { %650 = vst [vmem:[%s1184_s7 + $0x38] sm:$0xff] %v608_v32 }
 0x2d1   :  { %648 = vst [vmem:[%s1184_s7 + $0x28] sm:$0xff] %v600_v34 }
 0x2d3   :  { %v836_v35 = vpop.f32.mrb[16].mxu1 }
 0x2d4   :  { %v621_v36 = vadd.f32 %v836_v35, %v689_v18  ;;  %v612_v37 = vpop.f32.mrb[17].mxu1 }
 0x2d5   :  { %v613_v38 = vadd.f32 %v689_v18, %v612_v37  ;;  %v837_v39 = vpop.f32.mrb[18].mxu1 }
 0x2d6   :  { %653 = vst [vmem:[%s1184_s7 + $0x50] sm:$0xff] %v621_v36  ;;  %v624_v40 = vadd.f32 %v837_v39, %v689_v18  ;;  %v615_v41 = vpop.f32.mrb[19].mxu1 }
 0x2d7   :  { %651 = vst [vmem:[%s1184_s7 + $0x40] sm:$0xff] %v613_v38  ;;  %v616_v42 = vadd.f32 %v689_v18, %v615_v41 }
 0x2d8   :  { %654 = vst [vmem:[%s1184_s7 + $0x58] sm:$0xff] %v624_v40 }
 0x2d9   :  { %652 = vst [vmem:[%s1184_s7 + $0x48] sm:$0xff] %v616_v42 }
 0x2db   :  { %v840_v43 = vpop.f32.mrb[20].mxu1 }
 0x2dc   :  { %v637_v44 = vadd.f32 %v840_v43, %v689_v18  ;;  %v628_v45 = vpop.f32.mrb[21].mxu1 }
 0x2dd   :  { %v629_v46 = vadd.f32 %v689_v18, %v628_v45  ;;  %v841_v47 = vpop.f32.mrb[22].mxu1 }
 0x2de   :  { %657 = vst [vmem:[%s1184_s7 + $0x70] sm:$0xff] %v637_v44  ;;  %v640_v48 = vadd.f32 %v841_v47, %v689_v18  ;;  %v631_v49 = vpop.f32.mrb[23].mxu1 }
 0x2df   :  { %655 = vst [vmem:[%s1184_s7 + $0x60] sm:$0xff] %v629_v46  ;;  %v632_v50 = vadd.f32 %v689_v18, %v631_v49 }
 0x2e0   :  { %658 = vst [vmem:[%s1184_s7 + $0x78] sm:$0xff] %v640_v48 }
 0x2e1   :  { %656 = vst [vmem:[%s1184_s7 + $0x68] sm:$0xff] %v632_v50 }

</bundles_post_ra>
